<compile_context>
chip_gen: v7x
topology: tpu7x:2x2x1
jax: 0.10.0
libtpu: 0.0.40
codegen_flags: <defaults>
</compile_context>

<pallas_src>
import functools

import jax
import jax.numpy as jnp
import numpy as np
from jax.experimental import pallas as pl
from jax.experimental.pallas import tpu as pltpu


def _bilinear_score_kernel(kid_ref, loc_ref, ctx_ref, w_ref, tgt_ref, out_ref,
                           *, num_samples):
    # ctx_ref : (C_ctx, TN)      context columns c_t (positions on lanes), bf16
    # w_ref   : (1, C_in, C_ctx) W_k^T (1x1 Conv2d weight, transposed), bf16
    # tgt_ref : (S, C_in, TN)    S = 1 + negative_samples target columns, bf16
    # out_ref : (S, TN)          log f_k scores, f32, lane-dense in position
    del kid_ref, loc_ref  # only consumed by the index_maps
    # (C_in, C_ctx) @ (C_ctx, TN) -> (C_in, TN): native bf16 MXU matmul, f32 accum.
    cw = jnp.dot(w_ref[0], ctx_ref[...], preferred_element_type=jnp.float32)
    for s in range(num_samples):  # static unroll; S is small (17)
        # Elementwise math in f32 (v5e VPU has no bf16); sublane reduce over C.
        t_s = tgt_ref[s].astype(jnp.float32)                       # (C_in, TN)
        out_ref[s:s + 1, :] = jnp.sum(cw * t_s, axis=0, keepdims=True)


def init_bilinear_info(key, in_channels, out_channels, k_predictions):
    """Deterministic stand-in for nn.Conv2d(in, out, 1, bias=False) weights."""
    keys = jax.random.split(key, k_predictions)
    scale = 1.0 / np.sqrt(in_channels)
    return [scale * jax.random.normal(k, (out_channels, in_channels), jnp.float32)
            for k in keys]


def bilinear_info_forward(z, c, w_list, idx_list, negative_samples=16,
                          skip_step=1, tile_n=512):
    """JAX/Pallas equivalent of BilinearInfo.forward (all k fused into one call).

    Returns (log_f_list, true_f_list) with the PyTorch shapes:
      log_fk : (B, 1 + negative_samples, H - (k+skip_step), W)
      true_fk: (B, H - (k+skip_step), W) int32 zeros
    """
    B, c_in, H, W = z.shape
    Bc, c_ctx, Hc, Wc = c.shape
    assert (Bc, Hc, Wc) == (B, H, W)
    assert tile_n % 128 == 0, "tile_n must be a multiple of 128 (lane aligned)"
    k_pred = len(w_list)
    S = 1 + negative_samples
    for wk in w_list:
        # Conv2d weight is (out_channels, in_channels); context carries out_channels,
        # z carries in_channels -> guards the c^T W z orientation for non-square W.
        assert wk.shape == (c_ctx, c_in), (wk.shape, (c_ctx, c_in))

    total = H * W * B
    # Hoisted, done ONCE (not per k): channel-major, position-on-lanes layouts + bf16.
    z_pm_t = jnp.transpose(z, (1, 2, 3, 0)).reshape(c_in, total).astype(jnp.bfloat16)
    c_pm_t = jnp.transpose(c, (1, 2, 3, 0)).reshape(c_ctx, total).astype(jnp.bfloat16)
    w_t_all = jnp.stack([wk.T for wk in w_list]).astype(jnp.bfloat16)  # (K, c_in, c_ctx)

    # Static per-k geometry (Python ints).
    n_rows, n_pads, bases = [], [], []
    for k in range(1, k_pred + 1):
        cut = k + skip_step
        hp = H - cut
        assert hp > 0, "k_predictions + skip_step too large for H"
        n_k = hp * W * B
        n_rows.append(n_k)
        n_pads.append(pl.cdiv(n_k, tile_n) * tile_n)
        bases.append(cut * W * B)
    tiles = [p // tile_n for p in n_pads]
    t_total = sum(tiles)
    r_total = sum(n_pads)

    # Pad the context once so the ragged last tile of every k reads in-bounds columns.
    max_pad = max(n_pads)
    if max_pad > total:
        c_pm_t = jnp.pad(c_pm_t, ((0, 0), (0, max_pad - total)))

    # Scalar-prefetch tables: which W_k and which local context tile each grid step uses.
    kid = jnp.asarray(
        np.concatenate([np.full(t, i, np.int32) for i, t in enumerate(tiles)]))
    loc = jnp.asarray(
        np.concatenate([np.arange(t, dtype=np.int32) for t in tiles]))

    # Absolute gather indices into the position axis of z: row 0 = positive sample
    # z_{t+k}, rows 1: = random negatives.  Padded tail columns point at valid rows
    # (clipped / base), so no OOB and no extra pad of the big gathered tensor.
    cols = []
    for i in range(k_pred):
        n_k, n_pad, base = n_rows[i], n_pads[i], bases[i]
        pos = base + np.minimum(np.arange(n_pad, dtype=np.int32), n_k - 1)
        neg = base + jnp.pad(idx_list[i].astype(jnp.int32),
                             ((0, n_pad - n_k), (0, 0)))
        cols.append(jnp.concatenate(
            [jnp.asarray(pos, jnp.int32)[None, :], neg.T], axis=0))     # (S, n_pad)
    tgt_idx = jnp.concatenate(cols, axis=1)                              # (S, r_total)

    # One HBM gather of all positive+negative target columns, already bf16 and already
    # in the (S, C, position) layout the kernel consumes (no extra transpose copy).
    tgt_all = jax.vmap(lambda ix: jnp.take(z_pm_t, ix, axis=1))(tgt_idx)  # (S, c_in, r_total)

    out = pl.pallas_call(
        functools.partial(_bilinear_score_kernel, num_samples=S),
        out_shape=jax.ShapeDtypeStruct((S, r_total), jnp.float32),
        grid_spec=pltpu.PrefetchScalarGridSpec(
            num_scalar_prefetch=2,
            grid=(t_total,),
            in_specs=[
                pl.BlockSpec((c_ctx, tile_n), lambda i, kr, lr: (0, lr[i])),
                pl.BlockSpec((1, c_in, c_ctx), lambda i, kr, lr: (kr[i], 0, 0)),
                pl.BlockSpec((S, c_in, tile_n), lambda i, kr, lr: (0, 0, i)),
            ],
            out_specs=pl.BlockSpec((S, tile_n), lambda i, kr, lr: (0, i)),
        ),
        compiler_params=pltpu.CompilerParams(dimension_semantics=("parallel",)),
    )(kid, loc, c_pm_t, w_t_all, tgt_all)

    # Unpack back to the PyTorch layouts (cheap: output is only S * n_k floats per k).
    log_f_list, true_f_list = [], []
    row = 0
    for i, k in enumerate(range(1, k_pred + 1)):
        hp = H - (k + skip_step)
        n_k, n_pad = n_rows[i], n_pads[i]
        scores = out[:, row:row + n_k]                                   # (S, n_k)
        log_f_list.append(
            jnp.transpose(scores.reshape(S, hp, W, B), (3, 0, 1, 2)))    # (B, S, hp, W)
        # TODO(synk): torch uses int64 labels; JAX default x32 -> int32 zeros here.
        true_f_list.append(jnp.zeros((B, hp, W), dtype=jnp.int32))
        row += n_pad
    return log_f_list, true_f_list


def reference_forward(z, c, w_list, idx_list, negative_samples=16, skip_step=1):
    """Plain-JAX replica of the PyTorch math (conv -> gather -> bilinear)."""
    B, _, H, W = z.shape
    outs = []
    for k in range(1, len(w_list) + 1):
        cut = k + skip_step
        hp = H - cut
        n = hp * W * B
        wk = w_list[k - 1]
        z_flat = jnp.transpose(z[:, :, cut:, :], (2, 3, 0, 1)).reshape(n, -1)
        ztwk = z_flat @ wk.T                                   # the 1x1 conv
        ctx = jnp.transpose(c[:, :, : H - cut, :], (2, 3, 0, 1)).reshape(n, -1)
        main = jnp.sum(ctx * ztwk, axis=-1, keepdims=True)
        shuf = jnp.einsum("nc,nsc->ns", ctx, ztwk[idx_list[k - 1]])
        scores = jnp.concatenate([main, shuf], axis=1)
        outs.append(jnp.transpose(
            scores.reshape(hp, W, B, 1 + negative_samples), (2, 3, 0, 1)))
    return outs


if __name__ == "__main__":
    B, C, H, W = 2, 32, 16, 16
    negative_samples, k_predictions, skip_step = 16, 5, 1

    key = jax.random.PRNGKey(0)
    kz, kc, kw, kidx = jax.random.split(key, 4)
    z = jax.random.normal(kz, (B, C, H, W), jnp.float32)
    c = jax.random.normal(kc, (B, C, H, W), jnp.float32)
    w_list = init_bilinear_info(kw, C, C, k_predictions)

    # Deterministic stand-in for torch.randint negative-sample indices.
    idx_keys = jax.random.split(kidx, k_predictions)
    idx_list = []
    for k in range(1, k_predictions + 1):
        n = (H - (k + skip_step)) * W * B
        idx_list.append(
            jax.random.randint(idx_keys[k - 1], (n, negative_samples), 0, n))

    log_f_list, true_f_list = bilinear_info_forward(
        z, c, w_list, idx_list,
        negative_samples=negative_samples, skip_step=skip_step)
    jax.block_until_ready(log_f_list)
    jax.block_until_ready(true_f_list)

    # (1) Tight check: identical math at the kernel's bf16 storage precision.
    bf = lambda x: x.astype(jnp.bfloat16).astype(jnp.float32)
    ref_bf = reference_forward(bf(z), bf(c), [bf(wk) for wk in w_list],
                               idx_list, negative_samples, skip_step)
    for got, want in zip(log_f_list, ref_bf):
        np.testing.assert_allclose(np.asarray(got), np.asarray(want),
                                   rtol=1e-2, atol=1e-2)

    # (2) Loose check vs the full-f32 PyTorch math: only bf16 input rounding differs
    #     (score sigma ~ sqrt(C) ~ 5.7; bf16 rounding error sigma ~ 0.03 for C=32).
    ref_f32 = reference_forward(z, c, w_list, idx_list, negative_samples, skip_step)
    for got, want in zip(log_f_list, ref_f32):
        np.testing.assert_allclose(np.asarray(got), np.asarray(want),
                                   rtol=5e-2, atol=0.35)

    for k, t in zip(range(1, k_predictions + 1), true_f_list):
        assert t.shape == (B, H - (k + skip_step), W)

    print("KERNEL_OK")
</pallas_src>

<mosaic_0001>
module attributes {stable_mosaic.version = 11 : i64} {
  func.func @_bilinear_score_kernel(%arg0: i32, %arg1: memref<5xi32, #tpu.memory_space<smem>>, %arg2: memref<5xi32, #tpu.memory_space<smem>>, %arg3: memref<32x512xbf16, #tpu.memory_space<vmem>>, %arg4: memref<1x32x32xbf16, #tpu.memory_space<vmem>>, %arg5: memref<17x32x512xbf16, #tpu.memory_space<vmem>>, %arg6: memref<17x512xf32, #tpu.memory_space<vmem>>) attributes {dimension_semantics = [#tpu.dimension_semantics<parallel>], iteration_bounds = array<i64: 5>, scalar_prefetch = 2 : i64, scratch_operands = 0 : i64, tpu.core_type = #tpu.core_type<tc>, window_params = [{transform_indices = @transform_0, window_bounds = array<i64: 32, 512>}, {transform_indices = @transform_1, window_bounds = array<i64: 1, 32, 32>}, {transform_indices = @transform_2, window_bounds = array<i64: 17, 32, 512>}, {transform_indices = @transform_3, window_bounds = array<i64: 17, 512>}]} {
    %c0 = arith.constant 0 : index
    %c0_0 = arith.constant 0 : index
    %c0_1 = arith.constant 0 : index
    %0 = vector.load %arg4[%c0, %c0_0, %c0_1] : memref<1x32x32xbf16, #tpu.memory_space<vmem>>, vector<1x32x32xbf16>
    %1 = vector.shape_cast %0 : vector<1x32x32xbf16> to vector<32x32xbf16>
    %c0_2 = arith.constant 0 : index
    %c0_3 = arith.constant 0 : index
    %2 = vector.load %arg3[%c0_2, %c0_3] : memref<32x512xbf16, #tpu.memory_space<vmem>>, vector<32x512xbf16>
    %cst = arith.constant dense<0.000000e+00> : vector<32x512xf32>
    %3 = tpu.matmul %1, %2, %cst {dimension_numbers = #tpu.dot_dimension_numbers<[1], [0], [0], [1], [0, 0, 1, 1], [], []>} : vector<32x32xbf16>, vector<32x512xbf16>, vector<32x512xf32> -> vector<32x512xf32>
    %c0_4 = arith.constant 0 : index
    %c0_5 = arith.constant 0 : index
    %c0_6 = arith.constant 0 : index
    %4 = vector.load %arg5[%c0_4, %c0_5, %c0_6] : memref<17x32x512xbf16, #tpu.memory_space<vmem>>, vector<1x32x512xbf16>
    %5 = vector.shape_cast %4 : vector<1x32x512xbf16> to vector<32x512xbf16>
    %6 = arith.extf %5 : vector<32x512xbf16> to vector<32x512xf32>
    %7 = arith.mulf %3, %6 : vector<32x512xf32>
    %cst_7 = arith.constant dense<0.000000e+00> : vector<512xf32>
    %8 = vector.multi_reduction <add>, %7, %cst_7 [0] : vector<32x512xf32> to vector<512xf32>
    %9 = vector.shape_cast %8 : vector<512xf32> to vector<1x512xf32>
    %c0_8 = arith.constant 0 : index
    %c0_9 = arith.constant 0 : index
    %10 = vector.load %arg6[%c0_8, %c0_9] : memref<17x512xf32, #tpu.memory_space<vmem>>, vector<1x512xf32>
    tpu.vector_store %arg6[%c0_8, %c0_9], %9 {strides = array<i32>} : memref<17x512xf32, #tpu.memory_space<vmem>>, vector<1x512xf32>,
    %c1 = arith.constant 1 : index
    %c0_10 = arith.constant 0 : index
    %c0_11 = arith.constant 0 : index
    %11 = vector.load %arg5[%c1, %c0_10, %c0_11] : memref<17x32x512xbf16, #tpu.memory_space<vmem>>, vector<1x32x512xbf16>
    %12 = vector.shape_cast %11 : vector<1x32x512xbf16> to vector<32x512xbf16>
    %13 = arith.extf %12 : vector<32x512xbf16> to vector<32x512xf32>
    %14 = arith.mulf %3, %13 : vector<32x512xf32>
    %cst_12 = arith.constant dense<0.000000e+00> : vector<512xf32>
    %15 = vector.multi_reduction <add>, %14, %cst_12 [0] : vector<32x512xf32> to vector<512xf32>
    %16 = vector.shape_cast %15 : vector<512xf32> to vector<1x512xf32>
    %c1_13 = arith.constant 1 : index
    %c0_14 = arith.constant 0 : index
    %17 = vector.load %arg6[%c1_13, %c0_14] : memref<17x512xf32, #tpu.memory_space<vmem>>, vector<1x512xf32>
    tpu.vector_store %arg6[%c1_13, %c0_14], %16 {strides = array<i32>} : memref<17x512xf32, #tpu.memory_space<vmem>>, vector<1x512xf32>,
    %c2 = arith.constant 2 : index
    %c0_15 = arith.constant 0 : index
    %c0_16 = arith.constant 0 : index
    %18 = vector.load %arg5[%c2, %c0_15, %c0_16] : memref<17x32x512xbf16, #tpu.memory_space<vmem>>, vector<1x32x512xbf16>
    %19 = vector.shape_cast %18 : vector<1x32x512xbf16> to vector<32x512xbf16>
    %20 = arith.extf %19 : vector<32x512xbf16> to vector<32x512xf32>
    %21 = arith.mulf %3, %20 : vector<32x512xf32>
    %cst_17 = arith.constant dense<0.000000e+00> : vector<512xf32>
    %22 = vector.multi_reduction <add>, %21, %cst_17 [0] : vector<32x512xf32> to vector<512xf32>
    %23 = vector.shape_cast %22 : vector<512xf32> to vector<1x512xf32>
    %c2_18 = arith.constant 2 : index
    %c0_19 = arith.constant 0 : index
    %24 = vector.load %arg6[%c2_18, %c0_19] : memref<17x512xf32, #tpu.memory_space<vmem>>, vector<1x512xf32>
    tpu.vector_store %arg6[%c2_18, %c0_19], %23 {strides = array<i32>} : memref<17x512xf32, #tpu.memory_space<vmem>>, vector<1x512xf32>,
    %c3 = arith.constant 3 : index
    %c0_20 = arith.constant 0 : index
    %c0_21 = arith.constant 0 : index
    %25 = vector.load %arg5[%c3, %c0_20, %c0_21] : memref<17x32x512xbf16, #tpu.memory_space<vmem>>, vector<1x32x512xbf16>
    %26 = vector.shape_cast %25 : vector<1x32x512xbf16> to vector<32x512xbf16>
    %27 = arith.extf %26 : vector<32x512xbf16> to vector<32x512xf32>
    %28 = arith.mulf %3, %27 : vector<32x512xf32>
    %cst_22 = arith.constant dense<0.000000e+00> : vector<512xf32>
    %29 = vector.multi_reduction <add>, %28, %cst_22 [0] : vector<32x512xf32> to vector<512xf32>
    %30 = vector.shape_cast %29 : vector<512xf32> to vector<1x512xf32>
    %c3_23 = arith.constant 3 : index
    %c0_24 = arith.constant 0 : index
    %31 = vector.load %arg6[%c3_23, %c0_24] : memref<17x512xf32, #tpu.memory_space<vmem>>, vector<1x512xf32>
    tpu.vector_store %arg6[%c3_23, %c0_24], %30 {strides = array<i32>} : memref<17x512xf32, #tpu.memory_space<vmem>>, vector<1x512xf32>,
    %c4 = arith.constant 4 : index
    %c0_25 = arith.constant 0 : index
    %c0_26 = arith.constant 0 : index
    %32 = vector.load %arg5[%c4, %c0_25, %c0_26] : memref<17x32x512xbf16, #tpu.memory_space<vmem>>, vector<1x32x512xbf16>
    %33 = vector.shape_cast %32 : vector<1x32x512xbf16> to vector<32x512xbf16>
    %34 = arith.extf %33 : vector<32x512xbf16> to vector<32x512xf32>
    %35 = arith.mulf %3, %34 : vector<32x512xf32>
    %cst_27 = arith.constant dense<0.000000e+00> : vector<512xf32>
    %36 = vector.multi_reduction <add>, %35, %cst_27 [0] : vector<32x512xf32> to vector<512xf32>
    %37 = vector.shape_cast %36 : vector<512xf32> to vector<1x512xf32>
    %c4_28 = arith.constant 4 : index
    %c0_29 = arith.constant 0 : index
    %38 = vector.load %arg6[%c4_28, %c0_29] : memref<17x512xf32, #tpu.memory_space<vmem>>, vector<1x512xf32>
    tpu.vector_store %arg6[%c4_28, %c0_29], %37 {strides = array<i32>} : memref<17x512xf32, #tpu.memory_space<vmem>>, vector<1x512xf32>,
    %c5 = arith.constant 5 : index
    %c0_30 = arith.constant 0 : index
    %c0_31 = arith.constant 0 : index
    %39 = vector.load %arg5[%c5, %c0_30, %c0_31] : memref<17x32x512xbf16, #tpu.memory_space<vmem>>, vector<1x32x512xbf16>
    %40 = vector.shape_cast %39 : vector<1x32x512xbf16> to vector<32x512xbf16>
    %41 = arith.extf %40 : vector<32x512xbf16> to vector<32x512xf32>
    %42 = arith.mulf %3, %41 : vector<32x512xf32>
    %cst_32 = arith.constant dense<0.000000e+00> : vector<512xf32>
    %43 = vector.multi_reduction <add>, %42, %cst_32 [0] : vector<32x512xf32> to vector<512xf32>
    %44 = vector.shape_cast %43 : vector<512xf32> to vector<1x512xf32>
    %c5_33 = arith.constant 5 : index
    %c0_34 = arith.constant 0 : index
    %45 = vector.load %arg6[%c5_33, %c0_34] : memref<17x512xf32, #tpu.memory_space<vmem>>, vector<1x512xf32>
    tpu.vector_store %arg6[%c5_33, %c0_34], %44 {strides = array<i32>} : memref<17x512xf32, #tpu.memory_space<vmem>>, vector<1x512xf32>,
    %c6 = arith.constant 6 : index
    %c0_35 = arith.constant 0 : index
    %c0_36 = arith.constant 0 : index
    %46 = vector.load %arg5[%c6, %c0_35, %c0_36] : memref<17x32x512xbf16, #tpu.memory_space<vmem>>, vector<1x32x512xbf16>
    %47 = vector.shape_cast %46 : vector<1x32x512xbf16> to vector<32x512xbf16>
    %48 = arith.extf %47 : vector<32x512xbf16> to vector<32x512xf32>
    %49 = arith.mulf %3, %48 : vector<32x512xf32>
    %cst_37 = arith.constant dense<0.000000e+00> : vector<512xf32>
    %50 = vector.multi_reduction <add>, %49, %cst_37 [0] : vector<32x512xf32> to vector<512xf32>
    %51 = vector.shape_cast %50 : vector<512xf32> to vector<1x512xf32>
    %c6_38 = arith.constant 6 : index
    %c0_39 = arith.constant 0 : index
    %52 = vector.load %arg6[%c6_38, %c0_39] : memref<17x512xf32, #tpu.memory_space<vmem>>, vector<1x512xf32>
    tpu.vector_store %arg6[%c6_38, %c0_39], %51 {strides = array<i32>} : memref<17x512xf32, #tpu.memory_space<vmem>>, vector<1x512xf32>,
    %c7 = arith.constant 7 : index
    %c0_40 = arith.constant 0 : index
    %c0_41 = arith.constant 0 : index
    %53 = vector.load %arg5[%c7, %c0_40, %c0_41] : memref<17x32x512xbf16, #tpu.memory_space<vmem>>, vector<1x32x512xbf16>
    %54 = vector.shape_cast %53 : vector<1x32x512xbf16> to vector<32x512xbf16>
    %55 = arith.extf %54 : vector<32x512xbf16> to vector<32x512xf32>
    %56 = arith.mulf %3, %55 : vector<32x512xf32>
    %cst_42 = arith.constant dense<0.000000e+00> : vector<512xf32>
    %57 = vector.multi_reduction <add>, %56, %cst_42 [0] : vector<32x512xf32> to vector<512xf32>
    %58 = vector.shape_cast %57 : vector<512xf32> to vector<1x512xf32>
    %c7_43 = arith.constant 7 : index
    %c0_44 = arith.constant 0 : index
    %59 = vector.load %arg6[%c7_43, %c0_44] : memref<17x512xf32, #tpu.memory_space<vmem>>, vector<1x512xf32>
    tpu.vector_store %arg6[%c7_43, %c0_44], %58 {strides = array<i32>} : memref<17x512xf32, #tpu.memory_space<vmem>>, vector<1x512xf32>,
    %c8 = arith.constant 8 : index
    %c0_45 = arith.constant 0 : index
    %c0_46 = arith.constant 0 : index
    %60 = vector.load %arg5[%c8, %c0_45, %c0_46] : memref<17x32x512xbf16, #tpu.memory_space<vmem>>, vector<1x32x512xbf16>
    %61 = vector.shape_cast %60 : vector<1x32x512xbf16> to vector<32x512xbf16>
    %62 = arith.extf %61 : vector<32x512xbf16> to vector<32x512xf32>
    %63 = arith.mulf %3, %62 : vector<32x512xf32>
    %cst_47 = arith.constant dense<0.000000e+00> : vector<512xf32>
    %64 = vector.multi_reduction <add>, %63, %cst_47 [0] : vector<32x512xf32> to vector<512xf32>
    %65 = vector.shape_cast %64 : vector<512xf32> to vector<1x512xf32>
    %c8_48 = arith.constant 8 : index
    %c0_49 = arith.constant 0 : index
    %66 = vector.load %arg6[%c8_48, %c0_49] : memref<17x512xf32, #tpu.memory_space<vmem>>, vector<1x512xf32>
    tpu.vector_store %arg6[%c8_48, %c0_49], %65 {strides = array<i32>} : memref<17x512xf32, #tpu.memory_space<vmem>>, vector<1x512xf32>,
    %c9 = arith.constant 9 : index
    %c0_50 = arith.constant 0 : index
    %c0_51 = arith.constant 0 : index
    %67 = vector.load %arg5[%c9, %c0_50, %c0_51] : memref<17x32x512xbf16, #tpu.memory_space<vmem>>, vector<1x32x512xbf16>
    %68 = vector.shape_cast %67 : vector<1x32x512xbf16> to vector<32x512xbf16>
    %69 = arith.extf %68 : vector<32x512xbf16> to vector<32x512xf32>
    %70 = arith.mulf %3, %69 : vector<32x512xf32>
    %cst_52 = arith.constant dense<0.000000e+00> : vector<512xf32>
    %71 = vector.multi_reduction <add>, %70, %cst_52 [0] : vector<32x512xf32> to vector<512xf32>
    %72 = vector.shape_cast %71 : vector<512xf32> to vector<1x512xf32>
    %c9_53 = arith.constant 9 : index
    %c0_54 = arith.constant 0 : index
    %73 = vector.load %arg6[%c9_53, %c0_54] : memref<17x512xf32, #tpu.memory_space<vmem>>, vector<1x512xf32>
    tpu.vector_store %arg6[%c9_53, %c0_54], %72 {strides = array<i32>} : memref<17x512xf32, #tpu.memory_space<vmem>>, vector<1x512xf32>,
    %c10 = arith.constant 10 : index
    %c0_55 = arith.constant 0 : index
    %c0_56 = arith.constant 0 : index
    %74 = vector.load %arg5[%c10, %c0_55, %c0_56] : memref<17x32x512xbf16, #tpu.memory_space<vmem>>, vector<1x32x512xbf16>
    %75 = vector.shape_cast %74 : vector<1x32x512xbf16> to vector<32x512xbf16>
    %76 = arith.extf %75 : vector<32x512xbf16> to vector<32x512xf32>
    %77 = arith.mulf %3, %76 : vector<32x512xf32>
    %cst_57 = arith.constant dense<0.000000e+00> : vector<512xf32>
    %78 = vector.multi_reduction <add>, %77, %cst_57 [0] : vector<32x512xf32> to vector<512xf32>
    %79 = vector.shape_cast %78 : vector<512xf32> to vector<1x512xf32>
    %c10_58 = arith.constant 10 : index
    %c0_59 = arith.constant 0 : index
    %80 = vector.load %arg6[%c10_58, %c0_59] : memref<17x512xf32, #tpu.memory_space<vmem>>, vector<1x512xf32>
    tpu.vector_store %arg6[%c10_58, %c0_59], %79 {strides = array<i32>} : memref<17x512xf32, #tpu.memory_space<vmem>>, vector<1x512xf32>,
    %c11 = arith.constant 11 : index
    %c0_60 = arith.constant 0 : index
    %c0_61 = arith.constant 0 : index
    %81 = vector.load %arg5[%c11, %c0_60, %c0_61] : memref<17x32x512xbf16, #tpu.memory_space<vmem>>, vector<1x32x512xbf16>
    %82 = vector.shape_cast %81 : vector<1x32x512xbf16> to vector<32x512xbf16>
    %83 = arith.extf %82 : vector<32x512xbf16> to vector<32x512xf32>
    %84 = arith.mulf %3, %83 : vector<32x512xf32>
    %cst_62 = arith.constant dense<0.000000e+00> : vector<512xf32>
    %85 = vector.multi_reduction <add>, %84, %cst_62 [0] : vector<32x512xf32> to vector<512xf32>
    %86 = vector.shape_cast %85 : vector<512xf32> to vector<1x512xf32>
    %c11_63 = arith.constant 11 : index
    %c0_64 = arith.constant 0 : index
    %87 = vector.load %arg6[%c11_63, %c0_64] : memref<17x512xf32, #tpu.memory_space<vmem>>, vector<1x512xf32>
    tpu.vector_store %arg6[%c11_63, %c0_64], %86 {strides = array<i32>} : memref<17x512xf32, #tpu.memory_space<vmem>>, vector<1x512xf32>,
    %c12 = arith.constant 12 : index
    %c0_65 = arith.constant 0 : index
    %c0_66 = arith.constant 0 : index
    %88 = vector.load %arg5[%c12, %c0_65, %c0_66] : memref<17x32x512xbf16, #tpu.memory_space<vmem>>, vector<1x32x512xbf16>
    %89 = vector.shape_cast %88 : vector<1x32x512xbf16> to vector<32x512xbf16>
    %90 = arith.extf %89 : vector<32x512xbf16> to vector<32x512xf32>
    %91 = arith.mulf %3, %90 : vector<32x512xf32>
    %cst_67 = arith.constant dense<0.000000e+00> : vector<512xf32>
    %92 = vector.multi_reduction <add>, %91, %cst_67 [0] : vector<32x512xf32> to vector<512xf32>
    %93 = vector.shape_cast %92 : vector<512xf32> to vector<1x512xf32>
    %c12_68 = arith.constant 12 : index
    %c0_69 = arith.constant 0 : index
    %94 = vector.load %arg6[%c12_68, %c0_69] : memref<17x512xf32, #tpu.memory_space<vmem>>, vector<1x512xf32>
    tpu.vector_store %arg6[%c12_68, %c0_69], %93 {strides = array<i32>} : memref<17x512xf32, #tpu.memory_space<vmem>>, vector<1x512xf32>,
    %c13 = arith.constant 13 : index
    %c0_70 = arith.constant 0 : index
    %c0_71 = arith.constant 0 : index
    %95 = vector.load %arg5[%c13, %c0_70, %c0_71] : memref<17x32x512xbf16, #tpu.memory_space<vmem>>, vector<1x32x512xbf16>
    %96 = vector.shape_cast %95 : vector<1x32x512xbf16> to vector<32x512xbf16>
    %97 = arith.extf %96 : vector<32x512xbf16> to vector<32x512xf32>
    %98 = arith.mulf %3, %97 : vector<32x512xf32>
    %cst_72 = arith.constant dense<0.000000e+00> : vector<512xf32>
    %99 = vector.multi_reduction <add>, %98, %cst_72 [0] : vector<32x512xf32> to vector<512xf32>
    %100 = vector.shape_cast %99 : vector<512xf32> to vector<1x512xf32>
    %c13_73 = arith.constant 13 : index
    %c0_74 = arith.constant 0 : index
    %101 = vector.load %arg6[%c13_73, %c0_74] : memref<17x512xf32, #tpu.memory_space<vmem>>, vector<1x512xf32>
    tpu.vector_store %arg6[%c13_73, %c0_74], %100 {strides = array<i32>} : memref<17x512xf32, #tpu.memory_space<vmem>>, vector<1x512xf32>,
    %c14 = arith.constant 14 : index
    %c0_75 = arith.constant 0 : index
    %c0_76 = arith.constant 0 : index
    %102 = vector.load %arg5[%c14, %c0_75, %c0_76] : memref<17x32x512xbf16, #tpu.memory_space<vmem>>, vector<1x32x512xbf16>
    %103 = vector.shape_cast %102 : vector<1x32x512xbf16> to vector<32x512xbf16>
    %104 = arith.extf %103 : vector<32x512xbf16> to vector<32x512xf32>
    %105 = arith.mulf %3, %104 : vector<32x512xf32>
    %cst_77 = arith.constant dense<0.000000e+00> : vector<512xf32>
    %106 = vector.multi_reduction <add>, %105, %cst_77 [0] : vector<32x512xf32> to vector<512xf32>
    %107 = vector.shape_cast %106 : vector<512xf32> to vector<1x512xf32>
    %c14_78 = arith.constant 14 : index
    %c0_79 = arith.constant 0 : index
    %108 = vector.load %arg6[%c14_78, %c0_79] : memref<17x512xf32, #tpu.memory_space<vmem>>, vector<1x512xf32>
    tpu.vector_store %arg6[%c14_78, %c0_79], %107 {strides = array<i32>} : memref<17x512xf32, #tpu.memory_space<vmem>>, vector<1x512xf32>,
    %c15 = arith.constant 15 : index
    %c0_80 = arith.constant 0 : index
    %c0_81 = arith.constant 0 : index
    %109 = vector.load %arg5[%c15, %c0_80, %c0_81] : memref<17x32x512xbf16, #tpu.memory_space<vmem>>, vector<1x32x512xbf16>
    %110 = vector.shape_cast %109 : vector<1x32x512xbf16> to vector<32x512xbf16>
    %111 = arith.extf %110 : vector<32x512xbf16> to vector<32x512xf32>
    %112 = arith.mulf %3, %111 : vector<32x512xf32>
    %cst_82 = arith.constant dense<0.000000e+00> : vector<512xf32>
    %113 = vector.multi_reduction <add>, %112, %cst_82 [0] : vector<32x512xf32> to vector<512xf32>
    %114 = vector.shape_cast %113 : vector<512xf32> to vector<1x512xf32>
    %c15_83 = arith.constant 15 : index
    %c0_84 = arith.constant 0 : index
    %115 = vector.load %arg6[%c15_83, %c0_84] : memref<17x512xf32, #tpu.memory_space<vmem>>, vector<1x512xf32>
    tpu.vector_store %arg6[%c15_83, %c0_84], %114 {strides = array<i32>} : memref<17x512xf32, #tpu.memory_space<vmem>>, vector<1x512xf32>,
    %c16 = arith.constant 16 : index
    %c0_85 = arith.constant 0 : index
    %c0_86 = arith.constant 0 : index
    %116 = vector.load %arg5[%c16, %c0_85, %c0_86] : memref<17x32x512xbf16, #tpu.memory_space<vmem>>, vector<1x32x512xbf16>
    %117 = vector.shape_cast %116 : vector<1x32x512xbf16> to vector<32x512xbf16>
    %118 = arith.extf %117 : vector<32x512xbf16> to vector<32x512xf32>
    %119 = arith.mulf %3, %118 : vector<32x512xf32>
    %cst_87 = arith.constant dense<0.000000e+00> : vector<512xf32>
    %120 = vector.multi_reduction <add>, %119, %cst_87 [0] : vector<32x512xf32> to vector<512xf32>
    %121 = vector.shape_cast %120 : vector<512xf32> to vector<1x512xf32>
    %c16_88 = arith.constant 16 : index
    %c0_89 = arith.constant 0 : index
    %122 = vector.load %arg6[%c16_88, %c0_89] : memref<17x512xf32, #tpu.memory_space<vmem>>, vector<1x512xf32>
    tpu.vector_store %arg6[%c16_88, %c0_89], %121 {strides = array<i32>} : memref<17x512xf32, #tpu.memory_space<vmem>>, vector<1x512xf32>,
    return
  }
  func.func @transform_0(%arg0: i32, %arg1: memref<5xi32, #tpu.memory_space<smem>>, %arg2: memref<5xi32, #tpu.memory_space<smem>>) -> (i32, i32) {
    %0 = arith.index_cast %arg0 : i32 to index
    %1 = memref.load %arg2[%0] : memref<5xi32, #tpu.memory_space<smem>>
    %c0_i32 = arith.constant 0 : i32
    %c0_i32_0 = arith.constant 0 : i32
    return %c0_i32, %1 : i32, i32
  }
  func.func @transform_1(%arg0: i32, %arg1: memref<5xi32, #tpu.memory_space<smem>>, %arg2: memref<5xi32, #tpu.memory_space<smem>>) -> (i32, i32, i32) {
    %0 = arith.index_cast %arg0 : i32 to index
    %1 = memref.load %arg1[%0] : memref<5xi32, #tpu.memory_space<smem>>
    %c0_i32 = arith.constant 0 : i32
    %c0_i32_0 = arith.constant 0 : i32
    %c0_i32_1 = arith.constant 0 : i32
    return %1, %c0_i32, %c0_i32_0 : i32, i32, i32
  }
  func.func @transform_2(%arg0: i32, %arg1: memref<5xi32, #tpu.memory_space<smem>>, %arg2: memref<5xi32, #tpu.memory_space<smem>>) -> (i32, i32, i32) {
    %c0_i32 = arith.constant 0 : i32
    %c0_i32_0 = arith.constant 0 : i32
    %c0_i32_1 = arith.constant 0 : i32
    return %c0_i32, %c0_i32_0, %arg0 : i32, i32, i32
  }
  func.func @transform_3(%arg0: i32, %arg1: memref<5xi32, #tpu.memory_space<smem>>, %arg2: memref<5xi32, #tpu.memory_space<smem>>) -> (i32, i32) {
    %c0_i32 = arith.constant 0 : i32
    %c0_i32_0 = arith.constant 0 : i32
    return %c0_i32, %arg0 : i32, i32
  }
}

</mosaic_0001>

<bundles_post_ra>
// kernel: tpu_custom_call.1
= control target key start
LH: loop header
LB: loop body
LE: loop exit
PB: predicated region body
PF: predicated region fallthrough
CT: control target
= control target key end

     0   :  { %s5349_s0 = inlined_call_operand.hbm [shape: s32[5], index: 0, kind: input, shape index: {}]   ;;  %s5350_s2 = inlined_call_operand.hbm [shape: bf16[32,512], index: 2, kind: input, shape index: {}]   ;;  %s5351_s3 = inlined_call_operand.hbm [shape: bf16[5,32,32], index: 3, kind: input, shape index: {}]   ;;  %s5352_s4 = inlined_call_operand.hbm [shape: bf16[17,32,2560], index: 4, kind: input, shape index: {}]   ;;  %s5353_s5 = inlined_call_operand.hbm [shape: f32[17,2560], index: 5, kind: output, shape index: {}]   ;;  %s5354_s1 = inlined_call_operand.hbm [shape: s32[5], index: 1, kind: input, shape index: {}]  }
   0x1   :  { %5533 = sst [smem:[#allocation141_spill]] %s5350_s2  ;;  %s2816_s20 = scalar_lea.hbm %s5349_s0, 16 }
   0x2   :  { %5534 = sst [smem:[#allocation142_spill]] %s5351_s3  ;;  %p2817_p0 = scmp.ne.s32.totalorder %s5349_s0, %s2816_s20 }
   0x3   :  { %p2820_p1 = scmp.lt.u32.totalorder %s2816_s20, %s5349_s0 }
   0x5   :  { %p2822_p2 = pnand %p2820_p1, %p2817_p0 }
   0x7   :  { %2825 = shalt.err (!%p2822_p2)  }
   0x8   :  { %s3052_s25 = smov [#allocation3]   ;;  %s2826_s30 = scalar_lea.hbm %s5354_s1, 16 }
   0x9   :  { %11 = dma.hbm_to_smem %s5349_s0, 16, %s3052_s25, [#allocation2] }
   0xa   :  { %p2827_p3 = scmp.ne.s32.totalorder %s5354_s1, %s2826_s30  ;;  %p2830_p4 = scmp.lt.u32.totalorder %s2826_s30, %s5354_s1 }
   0xc   :  { %p2832_p5 = pnand %p2830_p4, %p2827_p3 }
   0xe   :  { %2835 = shalt.err (!%p2832_p5)  }
   0xf   :  { %s3053_s10 = smov [#allocation4]  }
  0x10   :  { %13 = dma.hbm_to_smem %s5354_s1, 16, %s3053_s10, [#allocation2] }
  0x11   :  { %2994 = dma.done.wait [#allocation2], 32 }
  0x12   :  { %2995 = vsyncadd [#allocation2], 4294967264 }
  0x13   :  { %15 = sfence }
  0x14   :  { %16 = vsyncpa [#allocation6], 0 }
  0x15   :  { %18 = vsyncpa [#allocation6 + $0x1], 0 }
  0x16   :  { %19 = vsyncpa [#allocation9], 0 }
  0x17   :  { %21 = vsyncpa [#allocation9 + $0x1], 0 }
  0x18   :  { %22 = vsyncpa [#allocation7], 0 }
  0x19   :  { %24 = vsyncpa [#allocation7 + $0x1], 0  ;;  %s3122_s0 = smov 0   ;;  %s3124_s13 = smov 0  }
  0x1a   :  { %s3126_s14 = smov 0   ;;  %s3128_s15 = smov 0  }
  0x1b   :  { %s3130_s16 = smov 0   ;;  %s3132_s1 = smov 0  }
  0x1c   :  { %s3134_s17 = smov 0   ;;  %s3136_s18 = smov 0  }
  0x1d   :  { %s3138_s19 = smov 0   ;;  %s3140_s20 = smov 0  }
  0x1e LB: > { %s3171_s21 = sadd.s32 4294967295, %s3050_s20   ;;  %s3174_s22 = sadd.s32 1, %s3050_s20   ;;  %s3050_s20 = sphi %s3140_s20, %s6130_s20   ;;  %s3046_s19 = sphi %s3138_s19, %s6129_s19   ;;  %s3042_s18 = sphi %s3136_s18, %s6128_s18   ;;  %s3038_s17 = sphi %s3134_s17, %s6127_s17   ;;  %s3034_s1 = sphi %s3132_s1, %s6126_s1   ;;  %s3030_s16 = sphi %s3130_s16, %s6125_s16   ;;  %s3026_s15 = sphi %s3128_s15, %s6124_s15   ;;  %s3022_s14 = sphi %s3126_s14, %s6123_s14   ;;  %s3018_s13 = sphi %s3124_s13, %s6122_s13   ;;  %s3014_s0 = sphi %s3122_s0, %s6121_s0  }
  0x1f   : > { %p5357_p6 = scmp.eq.s32.totalorder %s3050_s20, 0  ;;  %p5356_p7 = scmp.eq.s32.totalorder %s3171_s21, 0 }
  0x20   : > { %s62_s23 = sld [smem:[#allocation3 + %s3050_s20]]  ;;  %s67_s25 = sadd.s32 1, %s3034_s1 }
  0x21   : > { %s63_s24 = sld [smem:[#allocation3 + %s3174_s22]]  ;;  %p74_p8 = scmp.ne.s32.totalorder %s3034_s1, %s3030_s16 }
  0x22   : > { %p80_p9 = scmp.ne.s32.totalorder %s3030_s16, %s3026_s15  ;;  %p5355_p13 = scmp.lt.s32.totalorder %s3050_s20, 5 }
  0x23   : > { %p3187_p11 = por %p74_p8, %p5357_p6  ;;  %s178_s28 = sand.u32 1, %s3050_s20  }
  0x24   : > { %p3193_p12 = por %p80_p9, %p5356_p7  ;;  %s180_s29 = sand.u32 1, %s3034_s1  }
  0x25   : > { %s2452_s6 = sshll.u32 %s180_s29, 4  ;;  %p3204_p1 = pnand %p5355_p13, %p3187_p11 }
  0x26   : > { %s5536_s27 = scalar_select %p3193_p12, 1, 0 }
  0x27   : > { %s64_s30 = ssub.s32 %s62_s23, %s63_s24  ;;  %s182_s11 = scalar_lea.vmem [#allocation8], %s2452_s6 }
  0x28   : > { %p65_p0 = scmp.eq.s32.totalorder %s64_s30, 0  ;;  %s190_s12 = sshll.u32 %s182_s11, 4  ;;  %s3220_s12 = int_to_ptr.vmem [resolvable:$true] %s190_s12 }
  0x29   : > { %s2632_s9 = scalar_select %p3187_p11, [#allocation3], [#allocation13] }
  0x2a   : > { %s3209_s8 = scalar_select %p65_p0, %s3034_s1, %s67_s25  }
  0x2b   : > { %s2633_s10 = scalar_select %p3187_p11, %s3050_s20, 0 }
  0x2c   : > { %5538 = sst [smem:[#allocation21_spill]] %s3209_s8  ;;  %s6132_s9 = smov (!%p5355_p13, %s2632_s9), [#allocation15] }
  0x2d   : > { %s6134_s10 = smov (!%p5355_p13, %s2633_s10), 0  ;;  %p2457_p2 = scmp.ge.s32.totalorder %s3050_s20, 1 }
  0x2e   : > { %s183_s15 = sld [smem:[%s6132_s9 + %s6134_s10]]  ;;  %p219_p3 = scmp.lt.s32.totalorder %s3050_s20, 6 }
  0x2f   : > { %s5540_s3 = sld [smem:[#allocation142_spill]]  ;;  %s3236_s6 = scalar_lea.sflag [#allocation9], %s178_s28 }
  0x30   : > { %p3224_p4 = pnand %p2457_p2, %p219_p3  ;;  %s3234_s30 = sld [smem:[#allocation4 + %s3050_s20]] }
  0x31   : > { %p2838_p8 = pneg %p3204_p1 }
  0x32   : > { %s5539_s23 = scalar_select %p3224_p4, 1, 0 }
  0x34   : > { %s2623_s24 = sshll.u32 %s183_s15, 8 }
  0x35   : > { %s3231_s29 = scalar_lea.hbm %s5540_s3, %s2623_s24  ;;  %s2841_s15 = scalar_lea.hbm %s5540_s3, 1280 }
  0x36   : > { %s2836_s9 = scalar_lea.hbm %s3231_s29, 256  ;;  %p2842_p0 = scmp.lt.u32.totalorder %s3231_s29, %s5540_s3 }
  0x37   : > { %p2837_p5 = scmp.ne.s32.totalorder %s3231_s29, %s2836_s9  ;;  %p2843_p2 = scmp.lt.u32.totalorder %s2841_s15, %s2836_s9 }
  0x38   : > { %p2845_p10 = scmp.lt.u32.totalorder %s2836_s9, %s3231_s29 }
  0x39   : > { %p2839_p9 = pnand %p2838_p8, %p2837_p5  ;;  %p2844_p3 = por %p2843_p2, %p2842_p0 }
  0x3b   : > { %p2840_p11 = pneg %p2839_p9  ;;  %p2846_p13 = por %p2845_p10, %p2844_p3 }
  0x3d   : > { %p2847_p7 = pnand %p2846_p13, %p2840_p11 }
  0x3f   : > { %2850 = shalt.err (!%p2847_p7)
}
  0x40   : > { %s2851_s28 = scalar_lea.vmem %s3220_s12, 256  ;;  %s3054_s26 = smov [#allocation8]  }
  0x41   : > { %p2852_p5 = scmp.ne.s32.totalorder %s3220_s12, %s2851_s28  ;;  %s2856_s10 = sshll.u32 %s3054_s26, 4  ;;  %s2857_s10 = int_to_ptr.vmem [resolvable:$false] %s2856_s10 }
  0x42   : > { %s2858_s11 = scalar_lea.vmem %s2857_s10, 512  ;;  %p2859_p12 = scmp.lt.s32.totalorder %s3220_s12, %s2857_s10 }
  0x43   : > { %p2854_p9 = pnand %p2852_p5, %p2838_p8  ;;  %p2860_p0 = scmp.lt.s32.totalorder %s2858_s11, %s2851_s28 }
  0x45   : > { %p2855_p6 = pneg %p2854_p9  ;;  %p2861_p2 = por %p2860_p0, %p2859_p12 }
  0x47   : > { %p2862_p10 = pnand %p2861_p2, %p2855_p6 }
  0x49   : > { %2865 = shalt.err (!%p2862_p10)
}
  0x4a   : > { %s3055_s9 = smov 64   ;;  %s3056_s15 = smov 4  }
  0x4b   : > { %2651 = dma.hbm_to_vmem [thread:$0]  (!%p3204_p1), %s3231_s29, 256, %s3220_s12, %s3236_s6, %s3055_s9, %s3055_s9, %s3056_s15  }
  0x4c   : > { %s35_s24 = sld [smem:[#allocation4 + %s3174_s22]]  ;;  %s39_s25 = sadd.s32 1, %s3046_s19 }
  0x4d   : > { %p46_p6 = scmp.ne.s32.totalorder %s3046_s19, %s3042_s18  ;;  %p52_p7 = scmp.ne.s32.totalorder %s3042_s18, %s3038_s17 }
  0x4e   : > { %s156_s28 = sand.u32 1, %s3046_s19   ;;  %p5541_p12 = scmp.eq.s32.totalorder %s3050_s20, 0 }
  0x4f   : > { %p5543_p8 = scmp.eq.s32.totalorder %s3171_s21, 0  ;;  %s2449_s12 = sshll.u32 %s156_s28, 6 }
  0x50   : > { %p3273_p13 = por %p5541_p12, %p46_p6  ;;  %p5545_p11 = scmp.lt.s32.totalorder %s3050_s20, 5 }
  0x51   : > { %p3279_p1 = por %p5543_p8, %p52_p7  ;;  %s160_s10 = scalar_lea.vmem [#allocation5], %s2449_s12 }
  0x52   : > { %p3287_p3 = pnand %p5545_p11, %p3273_p13  ;;  %s36_s29 = ssub.s32 %s3234_s30, %s35_s24 }
  0x53   : > { %s5544_s7 = scalar_select %p3279_p1, 1, 0 }
  0x54   : > { %s168_s11 = sshll.u32 %s160_s10, 4  ;;  %p37_p5 = scmp.eq.s32.totalorder %s36_s29, 0  ;;  %s3292_s11 = int_to_ptr.vmem [resolvable:$true] %s168_s11 }
  0x55   : > { %s2629_s9 = scalar_select %p3273_p13, [#allocation4], [#allocation12] }
  0x56   : > { %s3297_s15 = scalar_select %p37_p5, %s3046_s19, %s39_s25  }
  0x57   : > { %s2630_s3 = scalar_select %p3273_p13, %s3050_s20, 0 }
  0x58   : > { %5547 = sst [smem:[#allocation22_spill]] %s3297_s15  ;;  %p5548_p9 = pmov %p5545_p11 }
  0x59   : > { %s90_s12 = ssub.s32 %s3050_s20, %s3174_s22  ;;  %s93_s29 = sadd.s32 1, %s3022_s14 }
  0x5a   : > { %s6136_s9 = smov (!%p5548_p9, %s2629_s9), [#allocation14]  ;;  %p5549_p0 = pmov %p5548_p9 }
  0x5b   : > { %p3310_p2 = scmp.eq.s32.totalorder %s90_s12, 0  ;;  %p5359_p10 = scmp.ne.s32.totalorder %s3022_s14, %s3018_s13 }
  0x5c   : > { %s6138_s3 = smov (!%p5549_p0, %s2630_s3), 0  ;;  %s5551_s2 = sld [smem:[#allocation141_spill]] }
  0x5d   : > { %s161_s30 = sld [smem:[%s6136_s9 + %s6138_s3]]  ;;  %p5552_p7 = pmov %p5541_p12 }
  0x5e   : > { %s3332_s9 = scalar_lea.sflag [#allocation6], %s156_s28  ;;  %p2868_p8 = pneg %p3287_p3 }
  0x5f   : > { %p3328_p12 = por %p5359_p10, %p5552_p7 }
  0x61   : > { %s5553_s3 = scalar_select %p3328_p12, 1, 0 }
  0x62   : > { %s2871_s25 = scalar_lea.hbm %s5551_s2, 1024 }
  0x63   : > { %s2622_s8 = sshll.u32 %s161_s30, 8 }
  0x64   : > { %s3321_s15 = scalar_lea.hbm %s5551_s2, %s2622_s8 }
  0x65   : > { %s2866_s12 = scalar_lea.hbm %s3321_s15, 1024  ;;  %p2872_p9 = scmp.lt.u32.totalorder %s3321_s15, %s5551_s2 }
  0x66   : > { %p2867_p13 = scmp.ne.s32.totalorder %s3321_s15, %s2866_s12  ;;  %p2873_p0 = scmp.lt.u32.totalorder %s2871_s25, %s2866_s12 }
  0x67   : > { %p2875_p10 = scmp.lt.u32.totalorder %s2866_s12, %s3321_s15 }
  0x68   : > { %p2869_p11 = pnand %p2868_p8, %p2867_p13  ;;  %p2874_p7 = por %p2873_p0, %p2872_p9 }
  0x6a   : > { %p2870_p5 = pneg %p2869_p11  ;;  %p2876_p6 = por %p2875_p10, %p2874_p7 }
  0x6c   : > { %p2877_p1 = pnand %p2876_p6, %p2870_p5 }
  0x6e   : > { %2880 = shalt.err (!%p2877_p1)
}
  0x6f   : > { %s2881_s28 = scalar_lea.vmem %s3292_s11, 1024  ;;  %s3057_s8 = smov [#allocation5]  }
  0x70   : > { %p2882_p13 = scmp.ne.s32.totalorder %s3292_s11, %s2881_s28  ;;  %s2886_s30 = sshll.u32 %s3057_s8, 4  ;;  %s2887_s30 = int_to_ptr.vmem [resolvable:$false] %s2886_s30 }
  0x71   : > { %s2888_s24 = scalar_lea.vmem %s2887_s30, 2048  ;;  %p2889_p12 = scmp.lt.s32.totalorder %s3292_s11, %s2887_s30 }
  0x72   : > { %p2884_p11 = pnand %p2882_p13, %p2868_p8  ;;  %p2890_p9 = scmp.lt.s32.totalorder %s2888_s24, %s2881_s28 }
  0x74   : > { %p2885_p4 = pneg %p2884_p11  ;;  %p2891_p0 = por %p2890_p9, %p2889_p12 }
  0x76   : > { %p2892_p10 = pnand %p2891_p0, %p2885_p4 }
  0x78   : > { %2895 = shalt.err (!%p2892_p10)
}
  0x79   : > { %s5361_s12 = smov 256   ;;  %s5362_s25 = smov 16  }
  0x7a   : > { %2646 = dma.hbm_to_vmem [thread:$0]  (!%p3287_p3), %s3321_s15, 1024, %s3292_s11, %s3332_s9, %s5361_s12, %s5361_s12, %s5362_s25  }
  0x7b   : > { %s3368_s26 = scalar_select %p3310_p2, %s3022_s14, %s93_s29  }
  0x7c   : > { %p5554_p4 = scmp.eq.s32.totalorder %s3171_s21, 0  ;;  %p5555_p1 = scmp.ne.s32.totalorder %s3018_s13, %s3014_s0 }
  0x7d   : > { %p5557_p12 = scmp.ne.s32.totalorder %s3022_s14, %s3018_s13  ;;  %p5558_p8 = scmp.eq.s32.totalorder %s3171_s21, 4 }
  0x7e   : > { %p3375_p6 = por %p5555_p1, %p5554_p4  ;;  %s5560_s17 = sadd.s32 4294967294, %s3050_s20  }
  0x7f   : > { %p3384_p5 = por %p5558_p8, %p5557_p12  ;;  %p136_p7 = scmp.eq.s32.totalorder %s5560_s17, 4 }
  0x80   : > { %s202_s30 = sand.u32 1, %s3022_s14   ;;  %s2624_s15 = sshll.u32 %s3050_s20, 8 }
  0x81   : > { %s5559_s8 = scalar_select %p3384_p5, 1, 0 }
  0x82   : > { %s2626_s11 = smul.u32 1088, %s202_s30  ;;  %p5561_p3 = pmov %p5555_p1 }
  0x83   : > { %s3402_s24 = scalar_lea.hbm %s5352_s4, %s2624_s15  ;;  %p5563_p13 = scmp.ne.s32.totalorder %s5553_s3, 0 }
  0x84   : > { %p3395_p2 = por %p136_p7, %p5561_p3  ;;  %p5564_p11 = scmp.lt.s32.totalorder %s3050_s20, 5 }
  0x85   : > { %s204_s30 = scalar_lea.vmem [#allocation10], %s2626_s11  ;;  %s2896_s25 = scalar_lea.hbm %s3402_s24, 17408 }
  0x86   : > { %s5562_s29 = scalar_select %p3395_p2, 1, 0 }
  0x87   : > { %p3408_p9 = pnand %p5564_p11, %p5563_p13  ;;  %s211_s12 = sshll.u32 %s204_s30, 4  ;;  %s3412_s12 = int_to_ptr.vmem [resolvable:$true] %s211_s12 }
  0x88   : > { %p2897_p0 = scmp.ne.s32.totalorder %s3402_s24, %s2896_s25  ;;  %s2901_s10 = scalar_lea.hbm %s5352_s4, 87040 }
  0x89   : > { %p2898_p10 = pneg %p3408_p9  ;;  %p2902_p12 = scmp.lt.u32.totalorder %s3402_s24, %s5352_s4 }
  0x8a   : > { %p2903_p8 = scmp.lt.u32.totalorder %s2901_s10, %s2896_s25  ;;  %p2905_p3 = scmp.lt.u32.totalorder %s2896_s25, %s3402_s24 }
  0x8b   : > { %p2899_p4 = pnand %p2898_p10, %p2897_p0 }
  0x8c   : > { %p2904_p7 = por %p2903_p8, %p2902_p12 }
  0x8d   : > { %p2900_p1 = pneg %p2899_p4 }
  0x8e   : > { %p2906_p13 = por %p2905_p3, %p2904_p7 }
  0x90   : > { %p2907_p11 = pnand %p2906_p13, %p2900_p1 }
  0x92   : > { %2910 = shalt.err (!%p2907_p11)
}
  0x93   : > { %s2911_s11 = scalar_lea.vmem %s3412_s12, 17408  ;;  %s3060_s30 = smov [#allocation10]  }
  0x94   : > { %p2912_p0 = scmp.ne.s32.totalorder %s3412_s12, %s2911_s11  ;;  %s2916_s3 = sshll.u32 %s3060_s30, 4  ;;  %s2917_s3 = int_to_ptr.vmem [resolvable:$false] %s2916_s3 }
  0x95   : > { %s2918_s2 = scalar_lea.vmem %s2917_s3, 34816  ;;  %p2919_p5 = scmp.lt.s32.totalorder %s3412_s12, %s2917_s3 }
  0x96   : > { %p2914_p4 = pnand %p2912_p0, %p2898_p10  ;;  %p2920_p12 = scmp.lt.s32.totalorder %s2918_s2, %s2911_s11 }
  0x98   : > { %p2915_p2 = pneg %p2914_p4  ;;  %p2921_p8 = por %p2920_p12, %p2919_p5 }
  0x9a   : > { %p2922_p7 = pnand %p2921_p8, %p2915_p2 }
  0x9c   : > { %2925 = shalt.err (!%p2922_p7)
}
  0x9d   : > { %s3061_s25 = smov 1280   ;;  %s5566_s15 = smov 16  }
  0x9e   : > { %s5567_s10 = smov 256   ;;  %p5568_p10 = scmp.ne.s32.totalorder %s5539_s23, 0 }
  0x9f   : > { %2654 = dma.hbm_to_vmem [thread:$0]  (!%p3408_p9), %s3402_s24, 17408, %s3412_s12, %s3236_s6, %s3061_s25, %s5567_s10, %s5566_s15  }
  0xa0   : > { %223 = sbr.rel (%p5568_p10) target bundleno = 753 (0x2f1), region = 32 }
  0xa7   : > { %s225_s9 = sand.u32 1, %s3042_s18   ;;  %p5569_p5 = scmp.ne.s32.totalorder %s5544_s7, 0 }
  0xa8   : > { %s2458_s30 = sshll.u32 %s225_s9, 6  ;;  %s226_s11 = scalar_lea.sflag [#allocation6], %s225_s9 }
  0xa9   : > { %s229_s3 = scalar_lea.vmem [#allocation5], %s2458_s30 }
  0xaa   : > { %2997 = dma.done.wait (%p5569_p5), %s226_s11, 1024  }
  0xab   : > { %2999 = vsyncadd (%p5569_p5), %s226_s11, 4294966272  ;;  %s234_s17 = sand.u32 1, %s3171_s21   ;;  %s236_s2 = sand.u32 1, %s3030_s16  }
  0xac   : > { %s3451_s6 = sshll.u32 %s236_s2, 4  ;;  %s235_s23 = scalar_lea.sflag [#allocation9], %s234_s17 }
  0xad   : > { %s238_s12 = scalar_lea.vmem [#allocation8], %s3451_s6  ;;  %p5570_p2 = scmp.ne.s32.totalorder %s5536_s27, 0 }
  0xaf   : > { %3001 = dma.done.wait (%p5570_p2), %s235_s23, 256  }
  0xb0   : > { %3003 = vsyncadd (%p5570_p2), %s235_s23, 4294967040  ;;  %s3459_s24 = sand.u32 1, %s3018_s13  }
  0xb1   : > { %s2627_s7 = smul.u32 1088, %s3459_s24 }
  0xb3   : > { %s3462_s25 = scalar_lea.vmem [#allocation10], %s2627_s7 }
  0xb4   : > { %3005 = dma.done.wait (%p3375_p6), %s235_s23, 17408  }
  0xb5   : > { %3007 = vsyncadd (%p3375_p6), %s235_s23, 4294949888  ;;  %v3062_v0 = vmov 0   ;;  %v2753_v1 = vld [vmem:[%s229_s3 + $0x4] ss:$16 sps:$4 sm:$0xff]   ;;  %v2755_v2 = vld [vmem:[%s229_s3 + $0xc] ss:$16 sps:$4 sm:$0xff]  }
  0xb6   : > { %387 = vmatprep.mubr.bf16.mxu0 %v3062_v0  ;;  %440 = vmatprep.mubr.bf16.mxu1 %v3062_v0  ;;  %v2757_v3 = vld [vmem:[%s229_s3] ss:$16 sps:$4 sm:$0xff]   ;;  %v2758_v4 = vld [vmem:[%s229_s3 + $0x8] ss:$16 sps:$4 sm:$0xff]   ;;  %v2759_v5 = vld [vmem:[%s229_s3 + $0x24] ss:$16 sps:$4 sm:$0xff]  }
  0xb7   : > { %355 = vmatprep.subr.bf16.mxu0 %v2753_v1  ;;  %408 = vmatprep.subr.bf16.mxu1 %v2755_v2  ;;  %v2761_v6 = vld [vmem:[%s229_s3 + $0x2c] ss:$16 sps:$4 sm:$0xff]   ;;  %v2763_v7 = vld [vmem:[%s229_s3 + $0x20] ss:$16 sps:$4 sm:$0xff]   ;;  %v2764_v8 = vld [vmem:[%s229_s3 + $0x28] ss:$16 sps:$4 sm:$0xff]  }
  0xb8   : > { %356 = vmatpush1.bf16.msra.mxu0 %v2757_v3  ;;  %409 = vmatpush1.bf16.msra.mxu1 %v2758_v4  ;;  %v2765_v9 = vld [vmem:[%s238_s12] sm:$0xff]   ;;  %vm348_vm0 = vcmask 261120   ;;  %v2766_v10 = vld [vmem:[%s238_s12 + $0x8] sm:$0xff]   ;;  %s2628_s27 = smul.u32 96, %s3459_s24  ;;  %s2625_s15 = sshll.u32 %s3171_s21, 9 }
  0xb9   : > { %357 = vmatprep.subr.bf16.mxu0 %v2759_v5  ;;  %410 = vmatprep.subr.bf16.mxu1 %v2761_v6  ;;  %v3473_v11 = vld [vmem:[%s3462_s25] sm:$0xff]  ;;  %v3524_v28 = vld [vmem:[%s3462_s25 + $0x8] sm:$0xff]  ;;  %v3590_v60 = vld [vmem:[%s3462_s25 + $0x10] sm:$0xff]  ;;  %s5282_s11 = scalar_lea.hbm %s5353_s5, %s2625_s15  ;;  %s2317_s21 = scalar_lea.sflag [#allocation7], %s3459_s24 }
  0xba   : > { %5571 = vst [vmem:[#allocation23_spill] sm:$0xff] %v3473_v11  ;;  %v3476_v12 = vld [vmem:[%s3462_s25 + $0x40] sm:$0xff]  ;;  %5588 = vst [vmem:[#allocation40_spill] sm:$0xff] %v3524_v28  ;;  %v3527_v29 = vld [vmem:[%s3462_s25 + $0x48] sm:$0xff]  ;;  %s5032_s28 = scalar_lea.vmem [#allocation11], %s2628_s27  ;;  %p6117_p9 = scmp.ne.s32.totalorder %s5559_s8, 0 }
  0xbb   : > { %5572 = vst [vmem:[#allocation24_spill] sm:$0xff] %v3476_v12  ;;  %v3479_v13 = vld [vmem:[%s3462_s25 + $0x80] sm:$0xff]  ;;  %5589 = vst [vmem:[#allocation41_spill] sm:$0xff] %v3527_v29  ;;  %v3533_v33 = vld [vmem:[%s3462_s25 + $0x88] sm:$0xff]  ;;  %s2330_s10 = sshll.u32 %s5032_s28, 4  ;;  %s3064_s17 = smov [#allocation11]   ;;  %s5284_s10 = int_to_ptr.vmem [resolvable:$true] %s2330_s10 }
  0xbc   : > { %358 = vmatpush1.bf16.msra.mxu0 %v2763_v7  ;;  %411 = vmatpush1.bf16.msra.mxu1 %v2764_v8  ;;  %5573 = vst [vmem:[#allocation25_spill] sm:$0xff] %v3479_v13  ;;  %v3482_v14 = vld [vmem:[%s3462_s25 + $0xc0] sm:$0xff]  ;;  %5590 = vst [vmem:[#allocation42_spill] sm:$0xff] %v3533_v33  ;;  %v3536_v34 = vld [vmem:[%s3462_s25 + $0xc8] sm:$0xff]  ;;  %s2926_s3 = scalar_lea.vmem %s5284_s10, 1536  ;;  %s2930_s2 = sshll.u32 %s3064_s17, 4  ;;  %s2931_s2 = int_to_ptr.vmem [resolvable:$false] %s2930_s2 }
  0xbd   : > { %5574 = vst [vmem:[#allocation26_spill] sm:$0xff] %v3482_v14  ;;  %v3485_v15 = vld [vmem:[%s3462_s25 + $0x100] sm:$0xff]  ;;  %5591 = vst [vmem:[#allocation43_spill] sm:$0xff] %v3536_v34  ;;  %v3539_v35 = vld [vmem:[%s3462_s25 + $0x108] sm:$0xff]  ;;  %p2927_p6 = scmp.ne.s32.totalorder %s5284_s10, %s2926_s3  ;;  %s2932_s6 = scalar_lea.vmem %s2931_s2, 3072 }
  0xbe   : > { %5575 = vst [vmem:[#allocation27_spill] sm:$0xff] %v3485_v15  ;;  %v3488_v16 = vld [vmem:[%s3462_s25 + $0x140] sm:$0xff]  ;;  %5592 = vst [vmem:[#allocation44_spill] sm:$0xff] %v3539_v35  ;;  %v3542_v36 = vld [vmem:[%s3462_s25 + $0x148] sm:$0xff]  ;;  %v5695_v34 = vunpack.c.l.bf16 %v3485_v15  ;;  %p2933_p13 = scmp.lt.s32.totalorder %s5284_s10, %s2931_s2  ;;  %p2934_p11 = scmp.lt.s32.totalorder %s2932_s6, %s2926_s3 }
  0xbf   : > { %2470 = vmatmul.mubr.msk.bf16.vlgmr.msra.gmra.mrb[0].mxu0 %vm348_vm0, %v2765_v9  ;;  %2472 = vmatmul.mubr.msk.bf16.vlgmr.msra.gmra.mrb[0].mxu1 %vm348_vm0, %v2765_v9  ;;  %5576 = vst [vmem:[#allocation28_spill] sm:$0xff] %v3488_v16  ;;  %v3491_v17 = vld [vmem:[%s3462_s25 + $0x180] sm:$0xff]  ;;  %5593 = vst [vmem:[#allocation45_spill] sm:$0xff] %v3542_v36  ;;  %v3549_v41 = vld [vmem:[%s3462_s25 + $0x188] sm:$0xff]  ;;  %p2928_p1 = pnand %p2927_p6, %p6117_p9 }
  0xc0   : > { %397 = vmatprep.mubr.bf16.mxu0 %v3062_v0  ;;  %450 = vmatprep.mubr.bf16.mxu1 %v3062_v0  ;;  %5577 = vst [vmem:[#allocation29_spill] sm:$0xff] %v3491_v17  ;;  %v3494_v18 = vld [vmem:[%s3462_s25 + $0x1c0] sm:$0xff]  ;;  %5594 = vst [vmem:[#allocation46_spill] sm:$0xff] %v3549_v41  ;;  %v3552_v42 = vld [vmem:[%s3462_s25 + $0x1c8] sm:$0xff]  ;;  %p2935_p0 = por %p2934_p11, %p2933_p13 }
  0xc1   : > { %5578 = vst [vmem:[#allocation30_spill] sm:$0xff] %v3494_v18  ;;  %v3497_v19 = vld [vmem:[%s3462_s25 + $0x200] sm:$0xff]  ;;  %5595 = vst [vmem:[#allocation47_spill] sm:$0xff] %v3552_v42  ;;  %v3555_v43 = vld [vmem:[%s3462_s25 + $0x208] sm:$0xff]  ;;  %p2929_p3 = pneg %p2928_p1 }
  0xc2   : > { %5579 = vst [vmem:[#allocation31_spill] sm:$0xff] %v3497_v19  ;;  %v3500_v20 = vld [vmem:[%s3462_s25 + $0x240] sm:$0xff]  ;;  %5596 = vst [vmem:[#allocation48_spill] sm:$0xff] %v3555_v43  ;;  %v3558_v44 = vld [vmem:[%s3462_s25 + $0x248] sm:$0xff] }
  0xc3   : > { %5580 = vst [vmem:[#allocation32_spill] sm:$0xff] %v3500_v20  ;;  %v3503_v21 = vld [vmem:[%s3462_s25 + $0x280] sm:$0xff]  ;;  %5597 = vst [vmem:[#allocation49_spill] sm:$0xff] %v3558_v44  ;;  %v3565_v49 = vld [vmem:[%s3462_s25 + $0x288] sm:$0xff]  ;;  %p2936_p4 = pnand %p2935_p0, %p2929_p3 }
  0xc4   : > { %5581 = vst [vmem:[#allocation33_spill] sm:$0xff] %v3503_v21  ;;  %v3506_v22 = vld [vmem:[%s3462_s25 + $0x2c0] sm:$0xff]  ;;  %5598 = vst [vmem:[#allocation50_spill] sm:$0xff] %v3565_v49  ;;  %v3568_v50 = vld [vmem:[%s3462_s25 + $0x2c8] sm:$0xff] }
  0xc5   : > { %5582 = vst [vmem:[#allocation34_spill] sm:$0xff] %v3506_v22  ;;  %v3509_v23 = vld [vmem:[%s3462_s25 + $0x300] sm:$0xff]  ;;  %5599 = vst [vmem:[#allocation51_spill] sm:$0xff] %v3568_v50  ;;  %v3571_v51 = vld [vmem:[%s3462_s25 + $0x308] sm:$0xff] }
  0xc6   : > { %5583 = vst [vmem:[#allocation35_spill] sm:$0xff] %v3509_v23  ;;  %v3512_v24 = vld [vmem:[%s3462_s25 + $0x340] sm:$0xff]  ;;  %5600 = vst [vmem:[#allocation52_spill] sm:$0xff] %v3571_v51  ;;  %v3574_v52 = vld [vmem:[%s3462_s25 + $0x348] sm:$0xff] }
  0xc7   : > { %2471 = vmatmul.mubr.msk.bf16.gmra.mrb[4].mxu0 %vm348_vm0, %v2766_v10  ;;  %2473 = vmatmul.mubr.msk.bf16.gmra.mrb[4].mxu1 %vm348_vm0, %v2766_v10  ;;  %5584 = vst [vmem:[#allocation36_spill] sm:$0xff] %v3512_v24  ;;  %v3515_v25 = vld [vmem:[%s3462_s25 + $0x380] sm:$0xff]  ;;  %5601 = vst [vmem:[#allocation53_spill] sm:$0xff] %v3574_v52  ;;  %v3581_v57 = vld [vmem:[%s3462_s25 + $0x388] sm:$0xff] }
  0xc8   : > { %5585 = vst [vmem:[#allocation37_spill] sm:$0xff] %v3515_v25  ;;  %v3518_v26 = vld [vmem:[%s3462_s25 + $0x3c0] sm:$0xff]  ;;  %5602 = vst [vmem:[#allocation54_spill] sm:$0xff] %v3581_v57  ;;  %v3584_v58 = vld [vmem:[%s3462_s25 + $0x3c8] sm:$0xff] }
  0xc9   : > { %5586 = vst [vmem:[#allocation38_spill] sm:$0xff] %v3518_v26  ;;  %v3521_v27 = vld [vmem:[%s3462_s25 + $0x400] sm:$0xff]  ;;  %5603 = vst [vmem:[#allocation55_spill] sm:$0xff] %v3584_v58  ;;  %v3587_v59 = vld [vmem:[%s3462_s25 + $0x408] sm:$0xff] }
  0xca   : > { %5587 = vst [vmem:[#allocation39_spill] sm:$0xff] %v3521_v27  ;;  %5604 = vst [vmem:[#allocation56_spill] sm:$0xff] %v3587_v59  ;;  %v3597_v1 = vld [vmem:[%s3462_s25 + $0x50] sm:$0xff]  ;;  %v3661_v8 = vld [vmem:[%s3462_s25 + $0x18] sm:$0xff] }
  0xcb   : > { %5605 = vst [vmem:[#allocation57_spill] sm:$0xff] %v3590_v60  ;;  %5606 = vst [vmem:[#allocation58_spill] sm:$0xff] %v3597_v1  ;;  %v3600_v2 = vld [vmem:[%s3462_s25 + $0x90] sm:$0xff]  ;;  %v3664_v45 = vld [vmem:[%s3462_s25 + $0x58] sm:$0xff] }
  0xcc   : > { %5607 = vst [vmem:[#allocation59_spill] sm:$0xff] %v3600_v2  ;;  %v3603_v3 = vld [vmem:[%s3462_s25 + $0xd0] sm:$0xff]  ;;  %5617 = vst [vmem:[#allocation69_spill] sm:$0xff] %v3661_v8  ;;  %v3667_v40 = vld [vmem:[%s3462_s25 + $0x98] sm:$0xff] }
  0xcd   : > { %5608 = vst [vmem:[#allocation60_spill] sm:$0xff] %v3603_v3  ;;  %v3606_v4 = vld [vmem:[%s3462_s25 + $0x110] sm:$0xff]  ;;  %5618 = vst [vmem:[#allocation70_spill] sm:$0xff] %v3664_v45  ;;  %v3670_v39 = vld [vmem:[%s3462_s25 + $0xd8] sm:$0xff] }
  0xce   : > { %5609 = vst [vmem:[#allocation61_spill] sm:$0xff] %v3606_v4  ;;  %v3613_v9 = vld [vmem:[%s3462_s25 + $0x150] sm:$0xff]  ;;  %5619 = vst [vmem:[#allocation71_spill] sm:$0xff] %v3667_v40  ;;  %v3677_v6 = vld [vmem:[%s3462_s25 + $0x118] sm:$0xff] }
  0xcf   : > { %5610 = vst [vmem:[#allocation62_spill] sm:$0xff] %v3613_v9  ;;  %v3616_v10 = vld [vmem:[%s3462_s25 + $0x190] sm:$0xff]  ;;  %5620 = vst [vmem:[#allocation72_spill] sm:$0xff] %v3670_v39  ;;  %v3680_v37 = vld [vmem:[%s3462_s25 + $0x158] sm:$0xff] }
  0xd0   : > { %v3619_v0 = vld [vmem:[%s3462_s25 + $0x1d0] sm:$0xff]  ;;  %5621 = vst [vmem:[#allocation73_spill] sm:$0xff] %v3677_v6  ;;  %5622 = vst [vmem:[#allocation74_spill] sm:$0xff] %v3680_v37  ;;  %v3683_v32 = vld [vmem:[%s3462_s25 + $0x198] sm:$0xff] }
  0xd1   : > { %v3622_v63 = vld [vmem:[%s3462_s25 + $0x210] sm:$0xff]  ;;  %5623 = vst [vmem:[#allocation75_spill] sm:$0xff] %v3683_v32  ;;  %v3690_v46 = vld [vmem:[%s3462_s25 + $0x1d8] sm:$0xff]  ;;  %v3732_v31 = vld [vmem:[%s3462_s25 + $0x20] sm:$0xff] }
  0xd2   : > { %v3629_v62 = vld [vmem:[%s3462_s25 + $0x250] sm:$0xff]  ;;  %5624 = vst [vmem:[#allocation76_spill] sm:$0xff] %v3690_v46  ;;  %v3693_v7 = vld [vmem:[%s3462_s25 + $0x218] sm:$0xff]  ;;  %5634 = vst [vmem:[#allocation86_spill] sm:$0xff] %v3732_v31 }
  0xd3   : > { %v3632_v61 = vld [vmem:[%s3462_s25 + $0x290] sm:$0xff]  ;;  %5625 = vst [vmem:[#allocation77_spill] sm:$0xff] %v3693_v7  ;;  %v3696_v59 = vld [vmem:[%s3462_s25 + $0x258] sm:$0xff]  ;;  %v3735_v42 = vld [vmem:[%s3462_s25 + $0x60] sm:$0xff] }
  0xd4   : > { %v3635_v56 = vld [vmem:[%s3462_s25 + $0x2d0] sm:$0xff]  ;;  %5626 = vst [vmem:[#allocation78_spill] sm:$0xff] %v3696_v59  ;;  %v3703_v30 = vld [vmem:[%s3462_s25 + $0x298] sm:$0xff]  ;;  %5635 = vst [vmem:[#allocation87_spill] sm:$0xff] %v3735_v42 }
  0xd5   : > { %5611 = vst [vmem:[#allocation63_spill] sm:$0xff] %v3635_v56  ;;  %v3638_v55 = vld [vmem:[%s3462_s25 + $0x310] sm:$0xff]  ;;  %5627 = vst [vmem:[#allocation79_spill] sm:$0xff] %v3703_v30  ;;  %v3706_v5 = vld [vmem:[%s3462_s25 + $0x2d8] sm:$0xff] }
  0xd6   : > { %5612 = vst [vmem:[#allocation64_spill] sm:$0xff] %v3638_v55  ;;  %v3645_v54 = vld [vmem:[%s3462_s25 + $0x350] sm:$0xff]  ;;  %5628 = vst [vmem:[#allocation80_spill] sm:$0xff] %v3706_v5  ;;  %v3709_v52 = vld [vmem:[%s3462_s25 + $0x318] sm:$0xff] }
  0xd7   : > { %5613 = vst [vmem:[#allocation65_spill] sm:$0xff] %v3645_v54  ;;  %v3648_v53 = vld [vmem:[%s3462_s25 + $0x390] sm:$0xff]  ;;  %5629 = vst [vmem:[#allocation81_spill] sm:$0xff] %v3709_v52  ;;  %v3716_v57 = vld [vmem:[%s3462_s25 + $0x358] sm:$0xff] }
  0xd8   : > { %5614 = vst [vmem:[#allocation66_spill] sm:$0xff] %v3648_v53  ;;  %v3651_v48 = vld [vmem:[%s3462_s25 + $0x3d0] sm:$0xff]  ;;  %5630 = vst [vmem:[#allocation82_spill] sm:$0xff] %v3716_v57  ;;  %v3719_v38 = vld [vmem:[%s3462_s25 + $0x398] sm:$0xff] }
  0xd9   : > { %5615 = vst [vmem:[#allocation67_spill] sm:$0xff] %v3651_v48  ;;  %v3654_v47 = vld [vmem:[%s3462_s25 + $0x410] sm:$0xff]  ;;  %5631 = vst [vmem:[#allocation83_spill] sm:$0xff] %v3719_v38  ;;  %v3722_v49 = vld [vmem:[%s3462_s25 + $0x3d8] sm:$0xff] }
  0xda   : > { %5616 = vst [vmem:[#allocation68_spill] sm:$0xff] %v3654_v47  ;;  %5632 = vst [vmem:[#allocation84_spill] sm:$0xff] %v3722_v49  ;;  %v3729_v50 = vld [vmem:[%s3462_s25 + $0x418] sm:$0xff]  ;;  %v3742_v43 = vld [vmem:[%s3462_s25 + $0xa0] sm:$0xff] }
  0xdb   : > { %5633 = vst [vmem:[#allocation85_spill] sm:$0xff] %v3729_v50  ;;  %5636 = vst [vmem:[#allocation88_spill] sm:$0xff] %v3742_v43  ;;  %v3745_v58 = vld [vmem:[%s3462_s25 + $0xe0] sm:$0xff]  ;;  %v3807_v57 = vld [vmem:[%s3462_s25 + $0x28] sm:$0xff] }
  0xdc   : > { %5637 = vst [vmem:[#allocation89_spill] sm:$0xff] %v3745_v58  ;;  %v3748_v39 = vld [vmem:[%s3462_s25 + $0x120] sm:$0xff]  ;;  %5651 = vst [vmem:[#allocation103_spill] sm:$0xff] %v3807_v57  ;;  %v3810_v59 = vld [vmem:[%s3462_s25 + $0x68] sm:$0xff] }
  0xdd   : > { %5638 = vst [vmem:[#allocation90_spill] sm:$0xff] %v3748_v39  ;;  %v3755_v51 = vld [vmem:[%s3462_s25 + $0x160] sm:$0xff]  ;;  %5652 = vst [vmem:[#allocation104_spill] sm:$0xff] %v3810_v59  ;;  %v3813_v45 = vld [vmem:[%s3462_s25 + $0xa8] sm:$0xff] }
  0xde   : > { %5639 = vst [vmem:[#allocation91_spill] sm:$0xff] %v3755_v51  ;;  %v3758_v46 = vld [vmem:[%s3462_s25 + $0x1a0] sm:$0xff]  ;;  %5653 = vst [vmem:[#allocation105_spill] sm:$0xff] %v3813_v45  ;;  %v3820_v60 = vld [vmem:[%s3462_s25 + $0xe8] sm:$0xff] }
  0xdf   : > { %5640 = vst [vmem:[#allocation92_spill] sm:$0xff] %v3758_v46  ;;  %v3761_v32 = vld [vmem:[%s3462_s25 + $0x1e0] sm:$0xff]  ;;  %5654 = vst [vmem:[#allocation106_spill] sm:$0xff] %v3820_v60  ;;  %v3823_v30 = vld [vmem:[%s3462_s25 + $0x128] sm:$0xff] }
  0xe0   : > { %5641 = vst [vmem:[#allocation93_spill] sm:$0xff] %v3761_v32  ;;  %v3768_v36 = vld [vmem:[%s3462_s25 + $0x220] sm:$0xff]  ;;  %5655 = vst [vmem:[#allocation107_spill] sm:$0xff] %v3823_v30  ;;  %v3830_v33 = vld [vmem:[%s3462_s25 + $0x168] sm:$0xff] }
  0xe1   : > { %5642 = vst [vmem:[#allocation94_spill] sm:$0xff] %v3768_v36  ;;  %v3771_v44 = vld [vmem:[%s3462_s25 + $0x260] sm:$0xff]  ;;  %5656 = vst [vmem:[#allocation108_spill] sm:$0xff] %v3830_v33  ;;  %v3833_v49 = vld [vmem:[%s3462_s25 + $0x1a8] sm:$0xff]  ;;  %v3063_v33 = vmov 1966171168  }
  0xe2   : > { %5643 = vst [vmem:[#allocation95_spill] sm:$0xff] %v3771_v44  ;;  %v3774_v5 = vld [vmem:[%s3462_s25 + $0x2a0] sm:$0xff]  ;;  %5657 = vst [vmem:[#allocation109_spill] sm:$0xff] %v3833_v49  ;;  %v3836_v29 = vld [vmem:[%s3462_s25 + $0x1e8] sm:$0xff]  ;;  %v544_v38 = vunpack.c.l.s4 %v3063_v33  ;;  %v5696_v33 = vunpack.c.l.bf16 %v3488_v16 }
  0xe3   : > { %5644 = vst [vmem:[#allocation96_spill] sm:$0xff] %v3774_v5  ;;  %v3779_v37 = vld [vmem:[%s3462_s25 + $0x2e0] sm:$0xff]  ;;  %5658 = vst [vmem:[#allocation110_spill] sm:$0xff] %v3836_v29  ;;  %v3842_v11 = vld [vmem:[%s3462_s25 + $0x228] sm:$0xff]  ;;  %v5673_v29 = vlaneseq }
  0xe4   : > { %5645 = vst [vmem:[#allocation97_spill] sm:$0xff] %v3779_v37  ;;  %v3782_v6 = vld [vmem:[%s3462_s25 + $0x320] sm:$0xff]  ;;  %5659 = vst [vmem:[#allocation111_spill] sm:$0xff] %v3842_v11  ;;  %v3845_v8 = vld [vmem:[%s3462_s25 + $0x268] sm:$0xff] }
  0xe5   : > { %5646 = vst [vmem:[#allocation98_spill] sm:$0xff] %v3782_v6  ;;  %v3785_v40 = vld [vmem:[%s3462_s25 + $0x360] sm:$0xff]  ;;  %5660 = vst [vmem:[#allocation112_spill] sm:$0xff] %v3845_v8  ;;  %v3848_v41 = vld [vmem:[%s3462_s25 + $0x2a8] sm:$0xff]  ;;  %v545_v8 = vunpack.c.0.s8 %v544_v38  ;;  %v547_v49 = vshrl.u32 %v5673_v29, 7  ;;  %v5692_v29 = vunpack.c.l.bf16 %v3482_v14 }
  0xe6   : > { %5647 = vst [vmem:[#allocation99_spill] sm:$0xff] %v3785_v40  ;;  %v3794_v50 = vld [vmem:[%s3462_s25 + $0x3a0] sm:$0xff]  ;;  %5661 = vst [vmem:[#allocation113_spill] sm:$0xff] %v3848_v41  ;;  %v3854_v57 = vld [vmem:[%s3462_s25 + $0x2e8] sm:$0xff] }
  0xe7   : > { %5648 = vst [vmem:[#allocation100_spill] sm:$0xff] %v3794_v50  ;;  %v3797_v52 = vld [vmem:[%s3462_s25 + $0x3e0] sm:$0xff]  ;;  %5662 = vst [vmem:[#allocation114_spill] sm:$0xff] %v3854_v57  ;;  %v3857_v35 = vld [vmem:[%s3462_s25 + $0x328] sm:$0xff]  ;;  %v5706_v50 = vunpack.c.l.bf16 %v3512_v24 }
  0xe8   : > { %5649 = vst [vmem:[#allocation101_spill] sm:$0xff] %v3797_v52  ;;  %v3800_v7 = vld [vmem:[%s3462_s25 + $0x420] sm:$0xff]  ;;  %5663 = vst [vmem:[#allocation115_spill] sm:$0xff] %v3857_v35  ;;  %v3867_v31 = vld [vmem:[%s3462_s25 + $0x3a8] sm:$0xff] }
  0xe9   : > { %5650 = vst [vmem:[#allocation102_spill] sm:$0xff] %v3800_v7  ;;  %v3864_v7 = vld [vmem:[%s3462_s25 + $0x368] sm:$0xff]  ;;  %5665 = vst [vmem:[#allocation117_spill] sm:$0xff] %v3867_v31  ;;  %v3880_v59 = vld [vmem:[%s3462_s25 + $0x30] sm:$0xff]  ;;  %v3930_v31 = vsub.s32 %v545_v8, %v547_v49  ;;  %v5691_v8 = vunpack.c.l.bf16 %v3479_v13 }
  0xea   : > { %5664 = vst [vmem:[#allocation116_spill] sm:$0xff] %v3864_v7  ;;  %v3870_v28 = vld [vmem:[%s3462_s25 + $0x3e8] sm:$0xff]  ;;  %5668 = vst [vmem:[#allocation120_spill] sm:$0xff] %v3880_v59  ;;  %v3886_v11 = vld [vmem:[%s3462_s25 + $0x70] sm:$0xff] }
  0xeb   : > { %5666 = vst [vmem:[#allocation118_spill] sm:$0xff] %v3870_v28  ;;  %v3877_v45 = vld [vmem:[%s3462_s25 + $0x428] sm:$0xff]  ;;  %5669 = vst [vmem:[#allocation121_spill] sm:$0xff] %v3886_v11  ;;  %v3896_v35 = vld [vmem:[%s3462_s25 + $0xb0] sm:$0xff] }
  0xec   : > { %5667 = vst [vmem:[#allocation119_spill] sm:$0xff] %v3877_v45  ;;  %5670 = vst [vmem:[#allocation122_spill] sm:$0xff] %v3896_v35  ;;  %v3902_v7 = vld [vmem:[%s3462_s25 + $0xf0] sm:$0xff]  ;;  %v5687_v35 = vld [vmem:[#allocation40_spill] sm:$0xff] }
  0xed   : > { %5671 = vst [vmem:[#allocation123_spill] sm:$0xff] %v3902_v7  ;;  %v3906_v60 = vld [vmem:[%s3462_s25 + $0x130] sm:$0xff]  ;;  %5676 = vst [vmem:[#allocation127_spill] sm:$0xff] %v3930_v31  ;;  %v5688_v11 = vld [vmem:[#allocation23_spill] sm:$0xff] }
  0xee   : > { %5672 = vst [vmem:[#allocation124_spill] sm:$0xff] %v3906_v60  ;;  %v3921_v45 = vld [vmem:[%s3462_s25 + $0x170] sm:$0xff]  ;;  %v5689_v30 = vunpack.c.l.bf16 %v5688_v11  ;;  %v5713_v24 = vld [vmem:[#allocation42_spill] sm:$0xff]  ;;  %v5723_v37 = vld [vmem:[#allocation47_spill] sm:$0xff] }
  0xef   : > { %5674 = vst [vmem:[#allocation125_spill] sm:$0xff] %v3921_v45  ;;  %v3927_v28 = vld [vmem:[%s3462_s25 + $0x1b0] sm:$0xff]  ;;  %v5721_v6 = vld [vmem:[#allocation46_spill] sm:$0xff]  ;;  %v5725_v5 = vld [vmem:[#allocation48_spill] sm:$0xff] }
  0xf0   : > { %5675 = vst [vmem:[#allocation126_spill] sm:$0xff] %v3927_v28  ;;  %v3935_v38 = vld [vmem:[%s3462_s25 + $0x1f0] sm:$0xff]  ;;  %v5729_v36 = vld [vmem:[#allocation50_spill] sm:$0xff]  ;;  %v5731_v32 = vld [vmem:[#allocation51_spill] sm:$0xff] }
  0xf1   : > { %5677 = vst [vmem:[#allocation128_spill] sm:$0xff] %v3935_v38  ;;  %v3943_v41 = vld [vmem:[%s3462_s25 + $0x230] sm:$0xff]  ;;  %v5733_v46 = vld [vmem:[#allocation52_spill] sm:$0xff]  ;;  %v5737_v39 = vld [vmem:[#allocation54_spill] sm:$0xff] }
  0xf2   : > { %5678 = vst [vmem:[#allocation129_spill] sm:$0xff] %v3943_v41  ;;  %v3950_v47 = vld [vmem:[%s3462_s25 + $0x270] sm:$0xff]  ;;  %v5743_v43 = vld [vmem:[#allocation56_spill] sm:$0xff] }
  0xf3   : > { %5679 = vst [vmem:[#allocation130_spill] sm:$0xff] %v3950_v47  ;;  %v3961_v7 = vld [vmem:[%s3462_s25 + $0x2b0] sm:$0xff]  ;;  %v5690_v47 = vunpack.c.l.bf16 %v3476_v12 }
  0xf4   : > { %5680 = vst [vmem:[#allocation131_spill] sm:$0xff] %v3961_v7  ;;  %v3968_v60 = vld [vmem:[%s3462_s25 + $0x2f0] sm:$0xff] }
  0xf5   : > { %5681 = vst [vmem:[#allocation132_spill] sm:$0xff] %v3968_v60  ;;  %v3975_v41 = vld [vmem:[%s3462_s25 + $0x330] sm:$0xff] }
  0xf6   : > { %5682 = vst [vmem:[#allocation133_spill] sm:$0xff] %v3975_v41  ;;  %v3982_v28 = vld [vmem:[%s3462_s25 + $0x370] sm:$0xff] }
  0xf7   : > { %5683 = vst [vmem:[#allocation134_spill] sm:$0xff] %v3982_v28  ;;  %v3993_v7 = vld [vmem:[%s3462_s25 + $0x3b0] sm:$0xff]  ;;  %v5686_v28 = vld [vmem:[#allocation68_spill] sm:$0xff] }
  0xf8   : > { %5684 = vst [vmem:[#allocation135_spill] sm:$0xff] %v3993_v7  ;;  %v4000_v60 = vld [vmem:[%s3462_s25 + $0x3f0] sm:$0xff] }
  0xf9   : > { %5685 = vst [vmem:[#allocation136_spill] sm:$0xff] %v4000_v60  ;;  %v5727_v44 = vld [vmem:[#allocation49_spill] sm:$0xff] }
  0xfa   : > { %v5735_v51 = vld [vmem:[#allocation53_spill] sm:$0xff] }
 0x192   : > { %v389_v41 = vpop.f32.mrb[0].mxu0  ;;  %v442_v49 = vpop.f32.mrb[0].mxu1 }
 0x193   : > { %v485_v59 = vmul.f32 %v5689_v30, %v389_v41  ;;  %v597_v38 = vmul.f32 %v5690_v47, %v389_v41  ;;  %v706_v7 = vmul.f32 %v5691_v8, %v389_v41  ;;  %v815_v57 = vmul.f32 %v5692_v29, %v389_v41  ;;  %v4022_v52 = vpop.f32.mrb[1].mxu0  ;;  %v4024_v45 = vpop.f32.mrb[1].mxu1 }
 0x194   : > { %5693 = vst [vmem:[#allocation137_spill] sm:$0xff] %v4022_v52  ;;  %5694 = vst [vmem:[#allocation138_spill] sm:$0xff] %v4024_v45  ;;  %v924_v31 = vmul.f32 %v5695_v34, %v389_v41  ;;  %v1033_v60 = vmul.f32 %v5696_v33, %v389_v41  ;;  %v5697_v30 = vunpack.c.l.bf16 %v3491_v17  ;;  %v5698_v47 = vunpack.c.l.bf16 %v3494_v18  ;;  %v4034_v8 = vpop.f32.mrb[2].mxu0  ;;  %v4036_v14 = vpop.f32.mrb[2].mxu1 }
 0x195   : > { %v5699_v29 = vunpack.c.l.bf16 %v3497_v19  ;;  %v5700_v45 = vunpack.c.l.bf16 %v3500_v20  ;;  %v5701_v34 = vunpack.c.l.bf16 %v3503_v21  ;;  %v5702_v33 = vunpack.c.l.bf16 %v3506_v22  ;;  %v4048_v18 = vpop.f32.mrb[3].mxu1 }
 0x196   : > { %v1142_v12 = vmul.f32 %v5697_v30, %v389_v41  ;;  %v1251_v13 = vmul.f32 %v5698_v47, %v389_v41  ;;  %v4046_v30 = vpop.f32.mrb[3].mxu0  ;;  %5704 = vst [vmem:[#allocation140_spill] sm:$0xff] %v4048_v18  ;;  %v5705_v47 = vunpack.c.l.bf16 %v3509_v23  ;;  %v1905_v19 = vmul.f32 %v5706_v50, %v389_v41  ;;  %v5711_v18 = vld [vmem:[#allocation41_spill] sm:$0xff] }
 0x197   : > { %v1360_v11 = vmul.f32 %v5699_v29, %v389_v41  ;;  %v1469_v15 = vmul.f32 %v5700_v45, %v389_v41  ;;  %v1578_v16 = vmul.f32 %v5701_v34, %v389_v41  ;;  %v1687_v17 = vmul.f32 %v5702_v33, %v389_v41  ;;  %5703 = vst [vmem:[#allocation139_spill] sm:$0xff] %v4046_v30 }
 0x198   : > { %v1796_v52 = vmul.f32 %v5705_v47, %v389_v41  ;;  %v5707_v29 = vunpack.c.l.bf16 %v3515_v25  ;;  %v5708_v45 = vunpack.c.l.bf16 %v3518_v26  ;;  %v5709_v34 = vunpack.c.l.bf16 %v3521_v27 }
 0x199   : > { %v5710_v33 = vunpack.c.l.bf16 %v5687_v35  ;;  %v5712_v23 = vunpack.c.l.bf16 %v5711_v18  ;;  %v5714_v50 = vunpack.c.l.bf16 %v5713_v24  ;;  %v5722_v18 = vunpack.c.l.bf16 %v5721_v6 }
 0x19a   : > { %v2014_v20 = vmul.f32 %v5707_v29, %v389_v41  ;;  %v2123_v21 = vmul.f32 %v5708_v45, %v389_v41  ;;  %v4060_v22 = vmul.f32 %v5709_v34, %v389_v41  ;;  %v5715_v29 = vld [vmem:[#allocation43_spill] sm:$0xff]  ;;  %v5717_v45 = vld [vmem:[#allocation44_spill] sm:$0xff]  ;;  %v5719_v34 = vld [vmem:[#allocation45_spill] sm:$0xff]  ;;  %v5724_v24 = vunpack.c.l.bf16 %v5723_v37  ;;  %v4122_v58 = vpop.f32.mrb[4].mxu0 }
 0x19b   : > { %v4064_v30 = vmul.f32 %v5710_v33, %v442_v49  ;;  %v4068_v47 = vmul.f32 %v5712_v23, %v442_v49  ;;  %v4072_v40 = vmul.f32 %v5714_v50, %v442_v49  ;;  %v5716_v25 = vunpack.c.l.bf16 %v5715_v29  ;;  %5740 = vst [vmem:[#allocation42_spill] sm:$0xff] %v4122_v58 }
 0x19c   : > { %v5718_v27 = vunpack.c.l.bf16 %v5717_v45  ;;  %v5720_v35 = vunpack.c.l.bf16 %v5719_v34  ;;  %v4088_v23 = vmul.f32 %v5722_v18, %v442_v49  ;;  %v4092_v50 = vmul.f32 %v5724_v24, %v442_v49 }
 0x19d   : > { %v4076_v26 = vmul.f32 %v5716_v25, %v442_v49  ;;  %v5726_v29 = vunpack.c.l.bf16 %v5725_v5  ;;  %v5728_v45 = vunpack.c.l.bf16 %v5727_v44  ;;  %v5730_v34 = vunpack.c.l.bf16 %v5729_v36  ;;  %v4124_v36 = vpop.f32.mrb[4].mxu1 }
 0x19e   : > { %v4080_v41 = vmul.f32 %v5718_v27, %v442_v49  ;;  %v4084_v33 = vmul.f32 %v5720_v35, %v442_v49  ;;  %v5732_v6 = vunpack.c.l.bf16 %v5731_v32  ;;  %v5734_v37 = vunpack.c.l.bf16 %v5733_v46  ;;  %v4142_v58 = vpop.f32.mrb[5].mxu1 }
 0x19f   : > { %v4096_v25 = vmul.f32 %v5726_v29, %v442_v49  ;;  %v4100_v27 = vmul.f32 %v5728_v45, %v442_v49  ;;  %v4104_v35 = vmul.f32 %v5730_v34, %v442_v49  ;;  %v5736_v5 = vunpack.c.l.bf16 %v5735_v51  ;;  %v5741_v34 = vld [vmem:[#allocation55_spill] sm:$0xff]  ;;  %v5745_v51 = vld [vmem:[#allocation57_spill] sm:$0xff]  ;;  %5749 = vst [vmem:[#allocation44_spill] sm:$0xff] %v4142_v58 }
 0x1a0   : > { %v4108_v18 = vmul.f32 %v5732_v6, %v442_v49  ;;  %v4112_v24 = vmul.f32 %v5734_v37, %v442_v49  ;;  %v5738_v44 = vunpack.c.l.bf16 %v5737_v39  ;;  %v5742_v32 = vunpack.c.l.bf16 %v5741_v34 }
 0x1a1   : > { %v4116_v29 = vmul.f32 %v5736_v5, %v442_v49  ;;  %v5744_v46 = vunpack.c.l.bf16 %v5743_v43  ;;  %v5746_v5 = vunpack.c.l.bf16 %v5745_v51  ;;  %v5747_v39 = vunpack.c.l.bf16 %v3597_v1 }
 0x1a2   : > { %v4120_v45 = vmul.f32 %v5738_v44, %v442_v49  ;;  %v4128_v6 = vmul.f32 %v5742_v32, %v442_v49  ;;  %v5750_v34 = vunpack.c.l.bf16 %v3600_v2  ;;  %v5751_v43 = vunpack.c.l.bf16 %v3603_v3 }
 0x1a3   : > { %v4132_v37 = vmul.f32 %v5744_v46, %v442_v49  ;;  %v489_v42 = vmul.f32 %v5746_v5, %v4034_v8  ;;  %v601_v44 = vmul.f32 %v5747_v39, %v4034_v8  ;;  %v5752_v46 = vunpack.c.l.bf16 %v3606_v4 }
 0x1a4   : > { %5739 = vst [vmem:[#allocation41_spill] sm:$0xff] %v4120_v45  ;;  %v4140_v45 = vpop.f32.mrb[5].mxu0  ;;  %v710_v32 = vmul.f32 %v5750_v34, %v4034_v8  ;;  %v819_v49 = vmul.f32 %v5751_v43, %v4034_v8  ;;  %v5753_v1 = vunpack.c.l.bf16 %v3613_v9  ;;  %v5756_v34 = vunpack.c.l.bf16 %v3616_v10 }
 0x1a5   : > { %5748 = vst [vmem:[#allocation43_spill] sm:$0xff] %v4140_v45  ;;  %v928_v5 = vmul.f32 %v5752_v46, %v4034_v8  ;;  %v4156_v51 = vpop.f32.mrb[6].mxu0  ;;  %v4158_v45 = vpop.f32.mrb[6].mxu1  ;;  %v4160_v58 = vadd.f32 %v489_v42, %v485_v59  ;;  %v4162_v2 = vadd.f32 %v601_v44, %v597_v38  ;;  %v5757_v4 = vunpack.c.l.bf16 %v3619_v0 }
 0x1a6   : > { %v1037_v39 = vmul.f32 %v5753_v1, %v4034_v8  ;;  %5754 = vst [vmem:[#allocation45_spill] sm:$0xff] %v4156_v51  ;;  %5755 = vst [vmem:[#allocation46_spill] sm:$0xff] %v4158_v45  ;;  %v1146_v43 = vmul.f32 %v5756_v34, %v4034_v8  ;;  %v4170_v3 = vpop.f32.mrb[7].mxu0  ;;  %v4172_v9 = vpop.f32.mrb[7].mxu1  ;;  %v4174_v1 = vadd.f32 %v710_v32, %v706_v7  ;;  %v5759_v34 = vunpack.c.l.bf16 %v3622_v63 }
 0x1a7   : > { %v1255_v46 = vmul.f32 %v5757_v4, %v4034_v8  ;;  %5758 = vst [vmem:[#allocation47_spill] sm:$0xff] %v4172_v9  ;;  %v4176_v51 = vadd.f32 %v819_v49, %v815_v57  ;;  %v4178_v42 = vadd.f32 %v928_v5, %v924_v31  ;;  %v5760_v45 = vunpack.c.l.bf16 %v3629_v62 }
 0x1a8   : > { %v4180_v59 = vadd.f32 %v1037_v39, %v1033_v60  ;;  %v4182_v38 = vadd.f32 %v1146_v43, %v1142_v12  ;;  %v1364_v4 = vmul.f32 %v5759_v34, %v4034_v8  ;;  %v5761_v57 = vunpack.c.l.bf16 %v3632_v61 }
 0x1a9   : > { %v4184_v44 = vadd.f32 %v1255_v46, %v1251_v13  ;;  %v1473_v9 = vmul.f32 %v5760_v45, %v4034_v8  ;;  %v5762_v31 = vunpack.c.l.bf16 %v3635_v56  ;;  %v5763_v12 = vunpack.c.l.bf16 %v3638_v55 }
 0x1aa   : > { %v1582_v7 = vmul.f32 %v5761_v57, %v4034_v8  ;;  %v5764_v32 = vunpack.c.l.bf16 %v3645_v54  ;;  %v4204_v5 = vadd.f32 %v1364_v4, %v1360_v11  ;;  %v5765_v45 = vunpack.c.l.bf16 %v3648_v53 }
 0x1ab   : > { %v1691_v60 = vmul.f32 %v5762_v31, %v4034_v8  ;;  %v1800_v13 = vmul.f32 %v5763_v12, %v4034_v8  ;;  %v4206_v39 = vadd.f32 %v1473_v9, %v1469_v15  ;;  %v5766_v46 = vunpack.c.l.bf16 %v3651_v48 }
 0x1ac   : > { %v1909_v49 = vmul.f32 %v5764_v32, %v4034_v8  ;;  %v2018_v43 = vmul.f32 %v5765_v45, %v4034_v8  ;;  %v4214_v57 = vadd.f32 %v1582_v7, %v1578_v16  ;;  %v5773_v9 = vunpack.c.l.bf16 %v5686_v28  ;;  %v5774_v32 = vld [vmem:[#allocation69_spill] sm:$0xff]  ;;  %v5776_v16 = vld [vmem:[#allocation70_spill] sm:$0xff] }
 0x1ad   : > { %v2127_v34 = vmul.f32 %v5766_v46, %v4034_v8  ;;  %v4216_v31 = vadd.f32 %v1691_v60, %v1687_v17  ;;  %v4218_v12 = vadd.f32 %v1800_v13, %v1796_v52  ;;  %v5775_v45 = vunpack.c.l.bf16 %v5774_v32  ;;  %v5778_v52 = vld [vmem:[#allocation71_spill] sm:$0xff]  ;;  %v5862_v32 = vld [vmem:[#allocation100_spill] sm:$0xff] }
 0x1ae   : > { %5767 = vst [vmem:[#allocation48_spill] sm:$0xff] %v4214_v57  ;;  %v4220_v54 = vadd.f32 %v1909_v49, %v1905_v19  ;;  %v4222_v11 = vadd.f32 %v2018_v43, %v2014_v20  ;;  %v2236_v4 = vmul.f32 %v5773_v9, %v4034_v8  ;;  %v5777_v17 = vunpack.c.l.bf16 %v5776_v16  ;;  %v5780_v20 = vld [vmem:[#allocation72_spill] sm:$0xff]  ;;  %v5782_v49 = vld [vmem:[#allocation73_spill] sm:$0xff] }
 0x1af   : > { %5768 = vst [vmem:[#allocation49_spill] sm:$0xff] %v4216_v31  ;;  %5769 = vst [vmem:[#allocation50_spill] sm:$0xff] %v4218_v12  ;;  %v4224_v15 = vadd.f32 %v2127_v34, %v2123_v21  ;;  %v491_v46 = vmul.f32 %v5775_v45, %v4036_v14  ;;  %v5779_v19 = vunpack.c.l.bf16 %v5778_v52  ;;  %v5781_v21 = vunpack.c.l.bf16 %v5780_v20  ;;  %v5786_v45 = vld [vmem:[#allocation74_spill] sm:$0xff]  ;;  %v5788_v52 = vld [vmem:[#allocation75_spill] sm:$0xff] }
 0x1b0   : > { %5770 = vst [vmem:[#allocation51_spill] sm:$0xff] %v4220_v54  ;;  %5771 = vst [vmem:[#allocation52_spill] sm:$0xff] %v4222_v11  ;;  %v603_v7 = vmul.f32 %v5777_v17, %v4036_v14  ;;  %v5783_v43 = vunpack.c.l.bf16 %v5782_v49  ;;  %v4245_v34 = vadd.f32 %v2236_v4, %v4060_v22  ;;  %v5787_v16 = vunpack.c.l.bf16 %v5786_v45  ;;  %v5796_v49 = vld [vmem:[#allocation76_spill] sm:$0xff]  ;;  %v5870_v11 = vld [vmem:[#allocation103_spill] sm:$0xff] }
 0x1b1   : > { %5772 = vst [vmem:[#allocation53_spill] sm:$0xff] %v4224_v15  ;;  %v712_v60 = vmul.f32 %v5779_v19, %v4036_v14  ;;  %v821_v13 = vmul.f32 %v5781_v21, %v4036_v14  ;;  %v4248_v9 = vadd.f32 %v491_v46, %v4064_v30  ;;  %v5789_v19 = vunpack.c.l.bf16 %v5788_v52  ;;  %v5873_v54 = vld [vmem:[#allocation104_spill] sm:$0xff] }
 0x1b2   : > { %v930_v8 = vmul.f32 %v5783_v43, %v4036_v14  ;;  %5784 = vst [vmem:[#allocation54_spill] sm:$0xff] %v4245_v34  ;;  %v1039_v17 = vmul.f32 %v5787_v16, %v4036_v14  ;;  %v4257_v20 = vadd.f32 %v603_v7, %v4068_v47  ;;  %v5797_v47 = vunpack.c.l.bf16 %v5796_v49  ;;  %v5798_v43 = vld [vmem:[#allocation77_spill] sm:$0xff]  ;;  %v5804_v16 = vld [vmem:[#allocation80_spill] sm:$0xff] }
 0x1b3   : > { %5785 = vst [vmem:[#allocation55_spill] sm:$0xff] %v4248_v9  ;;  %v1148_v28 = vmul.f32 %v5789_v19, %v4036_v14  ;;  %v4260_v21 = vadd.f32 %v712_v60, %v4072_v40  ;;  %v4263_v22 = vadd.f32 %v821_v13, %v4076_v26  ;;  %v5799_v40 = vunpack.c.l.bf16 %v5798_v43  ;;  %v5800_v26 = vld [vmem:[#allocation78_spill] sm:$0xff] }
 0x1b4   : > { %5790 = vst [vmem:[#allocation56_spill] sm:$0xff] %v4257_v20  ;;  %v4266_v30 = vadd.f32 %v930_v8, %v4080_v41  ;;  %v4269_v4 = vadd.f32 %v1039_v17, %v4084_v33  ;;  %v1257_v7 = vmul.f32 %v5797_v47, %v4036_v14  ;;  %v5801_v13 = vunpack.c.l.bf16 %v5800_v26  ;;  %v5802_v41 = vld [vmem:[#allocation79_spill] sm:$0xff]  ;;  %v5806_v17 = vld [vmem:[#allocation81_spill] sm:$0xff]  ;;  %v5810_v43 = vld [vmem:[#allocation82_spill] sm:$0xff] }
 0x1b5   : > { %5791 = vst [vmem:[#allocation70_spill] sm:$0xff] %v4260_v21  ;;  %5792 = vst [vmem:[#allocation71_spill] sm:$0xff] %v4263_v22  ;;  %v4272_v46 = vadd.f32 %v1148_v28, %v4088_v23  ;;  %v1366_v60 = vmul.f32 %v5799_v40, %v4036_v14  ;;  %v5803_v8 = vunpack.c.l.bf16 %v5802_v41  ;;  %v5805_v28 = vunpack.c.l.bf16 %v5804_v16  ;;  %v4305_v16 = vld [vmem:[%s3462_s25 + $0x430] sm:$0xff]  ;;  %v5856_v22 = vld [vmem:[#allocation98_spill] sm:$0xff] }
 0x1b6   : > { %5793 = vst [vmem:[#allocation72_spill] sm:$0xff] %v4266_v30  ;;  %5794 = vst [vmem:[#allocation73_spill] sm:$0xff] %v4269_v4  ;;  %v1475_v45 = vmul.f32 %v5801_v13, %v4036_v14  ;;  %v5807_v52 = vunpack.c.l.bf16 %v5806_v17  ;;  %v4293_v49 = vadd.f32 %v1257_v7, %v4092_v50  ;;  %v5811_v40 = vunpack.c.l.bf16 %v5810_v43  ;;  %v5812_v13 = vld [vmem:[#allocation83_spill] sm:$0xff]  ;;  %v5822_v43 = vld [vmem:[#allocation84_spill] sm:$0xff] }
 0x1b7   : > { %5795 = vst [vmem:[#allocation74_spill] sm:$0xff] %v4272_v46  ;;  %v1584_v33 = vmul.f32 %v5803_v8, %v4036_v14  ;;  %v1693_v23 = vmul.f32 %v5805_v28, %v4036_v14  ;;  %v4296_v47 = vadd.f32 %v1366_v60, %v4096_v25  ;;  %v5813_v41 = vunpack.c.l.bf16 %v5812_v13  ;;  %5814 = vst [vmem:[#allocation77_spill] sm:$0xff] %v4305_v16  ;;  %v5820_v60 = vld [vmem:[#allocation41_spill] sm:$0xff]  ;;  %v5826_v13 = vld [vmem:[#allocation102_spill] sm:$0xff] }
 0x1b8   : > { %v1802_v19 = vmul.f32 %v5807_v52, %v4036_v14  ;;  %5808 = vst [vmem:[#allocation75_spill] sm:$0xff] %v4293_v49  ;;  %v1911_v26 = vmul.f32 %v5811_v40, %v4036_v14  ;;  %v4308_v28 = vadd.f32 %v1475_v45, %v4100_v27  ;;  %v5823_v40 = vunpack.c.l.bf16 %v5822_v43  ;;  %v5824_v45 = vld [vmem:[#allocation85_spill] sm:$0xff]  ;;  %v5850_v49 = vld [vmem:[#allocation96_spill] sm:$0xff]  ;;  %v5859_v20 = vld [vmem:[#allocation99_spill] sm:$0xff] }
 0x1b9   : > { %5809 = vst [vmem:[#allocation76_spill] sm:$0xff] %v4296_v47  ;;  %v2020_v8 = vmul.f32 %v5813_v41, %v4036_v14  ;;  %v4311_v17 = vadd.f32 %v1584_v33, %v4104_v35  ;;  %v4314_v50 = vadd.f32 %v1693_v23, %v4108_v18  ;;  %v5825_v35 = vunpack.c.l.bf16 %v5824_v45  ;;  %v5829_v41 = vld [vmem:[#allocation42_spill] sm:$0xff]  ;;  %v5853_v4 = vld [vmem:[#allocation97_spill] sm:$0xff] }
 0x1ba   : > { %5815 = vst [vmem:[#allocation78_spill] sm:$0xff] %v4308_v28  ;;  %v4317_v25 = vadd.f32 %v1802_v19, %v4112_v24  ;;  %v4320_v7 = vadd.f32 %v1911_v26, %v4116_v29  ;;  %v2129_v27 = vmul.f32 %v5823_v40, %v4036_v14  ;;  %v5836_v29 = vld [vmem:[#allocation89_spill] sm:$0xff]  ;;  %v5848_v28 = vld [vmem:[#allocation95_spill] sm:$0xff]  ;;  %v5851_v46 = vunpack.c.l.bf16 %v5850_v49 }
 0x1bb   : > { %5816 = vst [vmem:[#allocation79_spill] sm:$0xff] %v4311_v17  ;;  %5817 = vst [vmem:[#allocation80_spill] sm:$0xff] %v4314_v50  ;;  %v4323_v52 = vadd.f32 %v2020_v8, %v5820_v60  ;;  %v2238_v33 = vmul.f32 %v5825_v35, %v4036_v14  ;;  %v5830_v8 = vld [vmem:[#allocation86_spill] sm:$0xff]  ;;  %v5832_v14 = vld [vmem:[#allocation87_spill] sm:$0xff]  ;;  %v5837_v18 = vunpack.c.l.bf16 %v5836_v29  ;;  %v5849_v47 = vunpack.c.l.bf16 %v5848_v28 }
 0x1bc   : > { %5818 = vst [vmem:[#allocation81_spill] sm:$0xff] %v4317_v25  ;;  %5819 = vst [vmem:[#allocation82_spill] sm:$0xff] %v4320_v7  ;;  %v4336_v19 = vadd.f32 %v2129_v27, %v4128_v6  ;;  %v5831_v60 = vunpack.c.l.bf16 %v5830_v8  ;;  %v5833_v40 = vunpack.c.l.bf16 %v5832_v14  ;;  %v5834_v35 = vld [vmem:[#allocation88_spill] sm:$0xff]  ;;  %v5846_v50 = vld [vmem:[#allocation94_spill] sm:$0xff]  ;;  %v5854_v30 = vunpack.c.l.bf16 %v5853_v4 }
 0x1bd   : > { %5821 = vst [vmem:[#allocation83_spill] sm:$0xff] %v4323_v52  ;;  %v4339_v26 = vadd.f32 %v2238_v33, %v4132_v37  ;;  %v5835_v23 = vunpack.c.l.bf16 %v5834_v35  ;;  %v4353_v6 = vmul.f32 %v5837_v18, %v5829_v41  ;;  %v5838_v37 = vld [vmem:[#allocation90_spill] sm:$0xff]  ;;  %v5847_v17 = vunpack.c.l.bf16 %v5846_v50  ;;  %v5865_v16 = vld [vmem:[#allocation101_spill] sm:$0xff] }
 0x1be   : > { %5827 = vst [vmem:[#allocation41_spill] sm:$0xff] %v4336_v19  ;;  %v493_v43 = vmul.f32 %v5831_v60, %v5829_v41  ;;  %v605_v45 = vmul.f32 %v5833_v40, %v5829_v41  ;;  %v5839_v27 = vunpack.c.l.bf16 %v5838_v37  ;;  %v5840_v60 = vld [vmem:[#allocation91_spill] sm:$0xff]  ;;  %v5842_v40 = vld [vmem:[#allocation92_spill] sm:$0xff]  ;;  %v5857_v21 = vunpack.c.l.bf16 %v5856_v22 }
 0x1bf   : > { %5828 = vst [vmem:[#allocation84_spill] sm:$0xff] %v4339_v26  ;;  %v714_v24 = vmul.f32 %v5835_v23, %v5829_v41  ;;  %v5841_v26 = vunpack.c.l.bf16 %v5840_v60  ;;  %v5843_v52 = vunpack.c.l.bf16 %v5842_v40  ;;  %v5844_v23 = vld [vmem:[#allocation93_spill] sm:$0xff]  ;;  %v5860_v9 = vunpack.c.l.bf16 %v5859_v20 }
 0x1c0   : > { %v4358_v33 = vmul.f32 %v5839_v27, %v5829_v41  ;;  %v5845_v25 = vunpack.c.l.bf16 %v5844_v23  ;;  %v4378_v27 = vmul.f32 %v5847_v17, %v5829_v41  ;;  %v4398_v17 = vmul.f32 %v5857_v21, %v5829_v41 }
 0x1c1   : > { %v4363_v19 = vmul.f32 %v5841_v26, %v5829_v41  ;;  %v4368_v7 = vmul.f32 %v5843_v52, %v5829_v41  ;;  %v4383_v26 = vmul.f32 %v5849_v47, %v5829_v41  ;;  %v4388_v52 = vmul.f32 %v5851_v46, %v5829_v41 }
 0x1c2   : > { %v4373_v18 = vmul.f32 %v5845_v25, %v5829_v41  ;;  %v4393_v25 = vmul.f32 %v5854_v30, %v5829_v41  ;;  %5858 = vst [vmem:[#allocation86_spill] sm:$0xff] %v4398_v17  ;;  %v4403_v47 = vmul.f32 %v5860_v9, %v5829_v41  ;;  %v5863_v34 = vunpack.c.l.bf16 %v5862_v32 }
 0x1c3   : > { %5852 = vst [vmem:[#allocation85_spill] sm:$0xff] %v4388_v52  ;;  %v5866_v15 = vunpack.c.l.bf16 %v5865_v16  ;;  %v5868_v48 = vunpack.c.l.bf16 %v5826_v13  ;;  %v5871_v53 = vunpack.c.l.bf16 %v5870_v11  ;;  %v5874_v32 = vunpack.c.l.bf16 %v5873_v54 }
 0x1c4   : > { %5855 = vst [vmem:[#allocation42_spill] sm:$0xff] %v4393_v25  ;;  %5861 = vst [vmem:[#allocation87_spill] sm:$0xff] %v4403_v47  ;;  %v4408_v46 = vmul.f32 %v5863_v34, %v5829_v41  ;;  %v5913_v47 = vld [vmem:[#allocation57_spill] sm:$0xff] }
 0x1c5   : > { %v4413_v30 = vmul.f32 %v5866_v15, %v5829_v41  ;;  %v4418_v21 = vmul.f32 %v5868_v48, %v5829_v41  ;;  %v4423_v9 = vmul.f32 %v5871_v53, %v4124_v36  ;;  %v4428_v34 = vmul.f32 %v5874_v32, %v4124_v36  ;;  %v5882_v41 = vld [vmem:[#allocation107_spill] sm:$0xff] }
 0x1c6   : > { %5864 = vst [vmem:[#allocation88_spill] sm:$0xff] %v4408_v46  ;;  %v5876_v46 = vld [vmem:[#allocation105_spill] sm:$0xff]  ;;  %v5883_v11 = vunpack.c.l.bf16 %v5882_v41  ;;  %v5914_v20 = vunpack.c.h.bf16 %v5913_v47 }
 0x1c7   : > { %5867 = vst [vmem:[#allocation89_spill] sm:$0xff] %v4413_v30  ;;  %5869 = vst [vmem:[#allocation90_spill] sm:$0xff] %v4418_v21  ;;  %v5877_v16 = vunpack.c.l.bf16 %v5876_v46  ;;  %v5879_v30 = vld [vmem:[#allocation106_spill] sm:$0xff]  ;;  %v5910_v21 = vld [vmem:[#allocation23_spill] sm:$0xff] }
 0x1c8   : > { %5872 = vst [vmem:[#allocation91_spill] sm:$0xff] %v4423_v9  ;;  %5875 = vst [vmem:[#allocation92_spill] sm:$0xff] %v4428_v34  ;;  %v5880_v13 = vunpack.c.l.bf16 %v5879_v30  ;;  %v4443_v53 = vmul.f32 %v5883_v11, %v4124_v36  ;;  %v5885_v9 = vld [vmem:[#allocation108_spill] sm:$0xff]  ;;  %v5888_v34 = vld [vmem:[#allocation109_spill] sm:$0xff] }
 0x1c9   : > { %v4433_v15 = vmul.f32 %v5877_v16, %v4124_v36  ;;  %v5886_v54 = vunpack.c.l.bf16 %v5885_v9  ;;  %v5889_v46 = vunpack.c.l.bf16 %v5888_v34 }
 0x1ca   : > { %v4438_v48 = vmul.f32 %v5880_v13, %v4124_v36  ;;  %5884 = vst [vmem:[#allocation95_spill] sm:$0xff] %v4443_v53  ;;  %v5897_v53 = vld [vmem:[#allocation112_spill] sm:$0xff] }
 0x1cb   : > { %5878 = vst [vmem:[#allocation93_spill] sm:$0xff] %v4433_v15  ;;  %v4448_v32 = vmul.f32 %v5886_v54, %v4124_v36  ;;  %v4453_v16 = vmul.f32 %v5889_v46, %v4124_v36  ;;  %v5891_v15 = vld [vmem:[#allocation110_spill] sm:$0xff]  ;;  %v5898_v9 = vunpack.c.l.bf16 %v5897_v53  ;;  %v5911_v53 = vunpack.c.h.bf16 %v5910_v21  ;;  %v5921_v21 = vld [vmem:[#allocation24_spill] sm:$0xff] }
 0x1cc   : > { %5881 = vst [vmem:[#allocation94_spill] sm:$0xff] %v4438_v48  ;;  %v5892_v30 = vunpack.c.l.bf16 %v5891_v15  ;;  %v5894_v48 = vld [vmem:[#allocation111_spill] sm:$0xff] }
 0x1cd   : > { %5887 = vst [vmem:[#allocation96_spill] sm:$0xff] %v4448_v32  ;;  %5890 = vst [vmem:[#allocation103_spill] sm:$0xff] %v4453_v16  ;;  %v5895_v41 = vunpack.c.l.bf16 %v5894_v48  ;;  %v4468_v54 = vmul.f32 %v5898_v9, %v4124_v36  ;;  %v5900_v32 = vld [vmem:[#allocation113_spill] sm:$0xff]  ;;  %v5903_v16 = vld [vmem:[#allocation114_spill] sm:$0xff] }
 0x1ce   : > { %v4458_v13 = vmul.f32 %v5892_v30, %v4124_v36  ;;  %v5901_v34 = vunpack.c.l.bf16 %v5900_v32  ;;  %v5904_v15 = vunpack.c.l.bf16 %v5903_v16  ;;  %v5917_v16 = vld [vmem:[#allocation45_spill] sm:$0xff] }
 0x1cf   : > { %v4463_v11 = vmul.f32 %v5895_v41, %v4124_v36  ;;  %5899 = vst [vmem:[#allocation106_spill] sm:$0xff] %v4468_v54  ;;  %v5912_v54 = vld [vmem:[#allocation139_spill] sm:$0xff] }
 0x1d0   : > { %5893 = vst [vmem:[#allocation104_spill] sm:$0xff] %v4458_v13  ;;  %v4473_v46 = vmul.f32 %v5901_v34, %v4124_v36  ;;  %v4478_v30 = vmul.f32 %v5904_v15, %v4124_v36  ;;  %v5906_v13 = vld [vmem:[#allocation115_spill] sm:$0xff]  ;;  %v490_v32 = vmul.f32 %v5914_v20, %v5912_v54  ;;  %v5918_v15 = vld [vmem:[#allocation120_spill] sm:$0xff]  ;;  %v5923_v20 = vld [vmem:[#allocation58_spill] sm:$0xff] }
 0x1d1   : > { %5896 = vst [vmem:[#allocation105_spill] sm:$0xff] %v4463_v11  ;;  %v5907_v48 = vunpack.c.l.bf16 %v5906_v13  ;;  %v5909_v11 = vld [vmem:[#allocation137_spill] sm:$0xff]  ;;  %v5915_v34 = vld [vmem:[#allocation43_spill] sm:$0xff]  ;;  %v5920_v13 = vunpack.c.h.bf16 %v5918_v15  ;;  %v5924_v47 = vunpack.c.h.bf16 %v5923_v20 }
 0x1d2   : > { %5902 = vst [vmem:[#allocation107_spill] sm:$0xff] %v4473_v46  ;;  %5905 = vst [vmem:[#allocation108_spill] sm:$0xff] %v4478_v30  ;;  %v486_v9 = vmul.f32 %v5911_v53, %v5909_v11  ;;  %v5916_v46 = vunpack.c.h.bf16 %v5830_v8  ;;  %v5919_v30 = vunpack.c.l.bf16 %v5918_v15  ;;  %v5922_v53 = vunpack.c.h.bf16 %v5921_v21  ;;  %v5929_v20 = vld [vmem:[#allocation25_spill] sm:$0xff] }
 0x1d3   : > { %v4483_v41 = vmul.f32 %v5907_v48, %v4124_v36  ;;  %v498_v48 = vmul.f32 %v5920_v13, %v4170_v3  ;;  %v602_v55 = vmul.f32 %v5924_v47, %v5912_v54  ;;  %v614_v21 = vadd.f32 %v4162_v2, %v605_v45 }
 0x1d4   : > { %v494_v12 = vmul.f32 %v5916_v46, %v5915_v34  ;;  %v497_v17 = vmul.f32 %v5919_v30, %v5917_v16  ;;  %v598_v22 = vmul.f32 %v5922_v53, %v5909_v11  ;;  %v510_v8 = vadd.f32 %v490_v32, %v486_v9  ;;  %v5926_v30 = vld [vmem:[#allocation121_spill] sm:$0xff] }
 0x1d5   : > { %5908 = vst [vmem:[#allocation109_spill] sm:$0xff] %v4483_v41  ;;  %v502_v41 = vadd.f32 %v4160_v58, %v493_v43  ;;  %v5925_v46 = vunpack.c.h.bf16 %v5832_v14  ;;  %v5927_v25 = vunpack.c.l.bf16 %v5926_v30  ;;  %v5928_v58 = vunpack.c.h.bf16 %v5926_v30  ;;  %v5931_v14 = vld [vmem:[#allocation59_spill] sm:$0xff]  ;;  %v5934_v30 = vld [vmem:[#allocation122_spill] sm:$0xff] }
 0x1d6   : > { %v622_v53 = vadd.f32 %v602_v55, %v598_v22  ;;  %v5930_v47 = vunpack.c.h.bf16 %v5929_v20  ;;  %v511_v32 = vadd.f32 %v510_v8, %v494_v12  ;;  %v5936_v22 = vunpack.c.h.bf16 %v5934_v30 }
 0x1d7   : > { %v606_v31 = vmul.f32 %v5925_v46, %v5915_v34  ;;  %v609_v15 = vmul.f32 %v5927_v25, %v5917_v16  ;;  %v610_v43 = vmul.f32 %v5928_v58, %v4170_v3  ;;  %v503_v13 = vadd.f32 %v502_v41, %v497_v17 }
 0x1d8   : > { %v707_v9 = vmul.f32 %v5930_v47, %v5909_v11  ;;  %v5932_v46 = vunpack.c.h.bf16 %v5931_v14  ;;  %v5933_v25 = vunpack.c.h.bf16 %v5834_v35  ;;  %v5935_v58 = vunpack.c.l.bf16 %v5934_v30  ;;  %v5937_v47 = vld [vmem:[#allocation26_spill] sm:$0xff] }
 0x1d9   : > { %v504_v41 = vrot.slane %v503_v13, 4  ;;  %v615_v2 = vadd.f32 %v614_v21, %v609_v15  ;;  %v623_v55 = vadd.f32 %v622_v53, %v606_v31  ;;  %v719_v45 = vmul.f32 %v5936_v22, %v4170_v3 }
 0x1da   : > { %v711_v4 = vmul.f32 %v5932_v46, %v5912_v54  ;;  %v715_v56 = vmul.f32 %v5933_v25, %v5915_v34  ;;  %v718_v17 = vmul.f32 %v5935_v58, %v5917_v16  ;;  %v512_v12 = vadd.f32 %v511_v32, %v498_v48  ;;  %v5939_v58 = vld [vmem:[#allocation60_spill] sm:$0xff] }
 0x1db   : > { %v723_v8 = vadd.f32 %v4174_v1, %v714_v24  ;;  %v5938_v14 = vunpack.c.h.bf16 %v5937_v47  ;;  %v505_v46 = vadd.f32 %v504_v41, %v503_v13  ;;  %v616_v25 = vrot.slane %v615_v2, 4 }
 0x1dc   : > { %v731_v20 = vadd.f32 %v711_v4, %v707_v9  ;;  %v624_v57 = vadd.f32 %v623_v55, %v610_v43  ;;  %v5940_v52 = vunpack.c.h.bf16 %v5939_v58  ;;  %v513_v31 = vrot.slane %v512_v12, 4  ;;  %v5942_v9 = vld [vmem:[#allocation123_spill] sm:$0xff] }
 0x1dd   : > { %v816_v35 = vmul.f32 %v5938_v14, %v5909_v11  ;;  %v724_v21 = vadd.f32 %v723_v8, %v718_v17  ;;  %v5941_v48 = vunpack.c.h.bf16 %v5836_v29  ;;  %v506_v1 = vrot.slane %v505_v46, 2 }
 0x1de   : > { %v820_v15 = vmul.f32 %v5940_v52, %v5912_v54  ;;  %v732_v53 = vadd.f32 %v731_v20, %v715_v56  ;;  %v617_v4 = vadd.f32 %v616_v25, %v615_v2  ;;  %v625_v24 = vrot.slane %v624_v57, 4 }
 0x1df   : > { %v824_v32 = vmul.f32 %v5941_v48, %v5915_v34  ;;  %v5943_v30 = vunpack.c.l.bf16 %v5942_v9  ;;  %v514_v41 = vadd.f32 %v513_v31, %v512_v12  ;;  %v725_v43 = vrot.slane %v724_v21, 4 }
 0x1e0   : > { %v733_v55 = vadd.f32 %v732_v53, %v719_v45  ;;  %v5944_v52 = vunpack.c.h.bf16 %v5942_v9  ;;  %v507_v17 = vadd.f32 %v506_v1, %v505_v46  ;;  %v618_v56 = vrot.slane %v617_v4, 2 }
 0x1e1   : > { %v827_v13 = vmul.f32 %v5943_v30, %v5917_v16  ;;  %v626_v8 = vadd.f32 %v625_v24, %v624_v57  ;;  %v832_v29 = vadd.f32 %v4176_v51, %v4353_v6  ;;  %v515_v20 = vrot.slane %v514_v41, 2 }
 0x1e2   : > { %v828_v22 = vmul.f32 %v5944_v52, %v4170_v3  ;;  %v726_v2 = vadd.f32 %v725_v43, %v724_v21  ;;  %v734_v47 = vrot.slane %v733_v55, 4  ;;  %v840_v14 = vadd.f32 %v820_v15, %v816_v35  ;;  %v5945_v21 = vld [vmem:[#allocation116_spill] sm:$0xff] }
 0x1e3   : > { %v508_v25 = vrot.slane %v507_v17, 1  ;;  %v619_v58 = vadd.f32 %v618_v56, %v617_v4  ;;  %v627_v48 = vrot.slane %v626_v8, 2  ;;  %v833_v12 = vadd.f32 %v832_v29, %v827_v13  ;;  %v5947_v29 = vld [vmem:[#allocation27_spill] sm:$0xff] }
 0x1e4   : > { %v516_v31 = vadd.f32 %v515_v20, %v514_v41  ;;  %v727_v45 = vrot.slane %v726_v2, 2  ;;  %v735_v53 = vadd.f32 %v734_v47, %v733_v55  ;;  %v841_v30 = vadd.f32 %v840_v14, %v824_v32 }
 0x1e5   : > { %v4550_v9 = vadd.f32 %v508_v25, %v507_v17  ;;  %v620_v46 = vrot.slane %v619_v58, 1  ;;  %v628_v1 = vadd.f32 %v627_v48, %v626_v8  ;;  %v834_v57 = vrot.slane %v833_v12, 4 }
 0x1e6   : > { %v517_v24 = vrot.slane %v516_v31, 1  ;;  %v728_v52 = vadd.f32 %v727_v45, %v726_v2  ;;  %v736_v51 = vrot.slane %v735_v53, 2  ;;  %v842_v6 = vadd.f32 %v841_v30, %v828_v22  ;;  %v5949_v2 = vld [vmem:[#allocation61_spill] sm:$0xff] }
 0x1e7   : > { %v5946_v35 = vunpack.c.l.bf16 %v5945_v21  ;;  %v4557_v4 = vadd.f32 %v620_v46, %v619_v58  ;;  %v629_v13 = vrot.slane %v628_v1, 1  ;;  %v835_v41 = vadd.f32 %v834_v57, %v833_v12  ;;  %v5952_v46 = vld [vmem:[#allocation124_spill] sm:$0xff] }
 0x1e8   : > { %v518_v43 = vadd.f32 %v517_v24, %v516_v31  ;;  %v729_v32 = vrot.slane %v728_v52, 1  ;;  %v737_v55 = vadd.f32 %v736_v51, %v735_v53  ;;  %v843_v17 = vrot.slane %v842_v6, 4  ;;  %v5954_v24 = vld [vmem:[#allocation117_spill] sm:$0xff] }
 0x1e9   : > { %v4555_v15 = vmul.f32 %v5946_v35, %v4124_v36  ;;  %v4559_v56 = vadd.f32 %v629_v13, %v628_v1  ;;  %v836_v8 = vrot.slane %v835_v41, 2  ;;  %v5948_v20 = vunpack.c.h.bf16 %v5947_v29  ;;  %v5956_v35 = vld [vmem:[#allocation118_spill] sm:$0xff] }
 0x1ea   : > { %v5950_v47 = vunpack.c.h.bf16 %v5949_v2  ;;  %v541_v25 = vcombine.low %v4550_v9, %v518_v43  ;;  %v4568_v58 = vadd.f32 %v729_v32, %v728_v52  ;;  %v738_v48 = vrot.slane %v737_v55, 1 }
 0x1eb   : > { %v925_v22 = vmul.f32 %v5948_v20, %v5909_v11  ;;  %v844_v12 = vadd.f32 %v843_v17, %v842_v6  ;;  %v653_v31 = vcombine.low %v4557_v4, %v4559_v56  ;;  %v837_v45 = vadd.f32 %v836_v8, %v835_v41  ;;  %v5959_v20 = vld [vmem:[#allocation62_spill] sm:$0xff] }
 0x1ec   : > { %v929_v14 = vmul.f32 %v5950_v47, %v5912_v54  ;;  %v5951_v53 = vunpack.c.h.bf16 %v5838_v37  ;;  %v5953_v1 = vunpack.c.l.bf16 %v5952_v46  ;;  %v5955_v51 = vunpack.c.l.bf16 %v5954_v24  ;;  %v5961_v47 = vld [vmem:[#allocation28_spill] sm:$0xff] }
 0x1ed   : > { %v4583_v52 = vadd.f32 %v738_v48, %v737_v55  ;;  %v845_v6 = vrot.slane %v844_v12, 2  ;;  %v941_v21 = vadd.f32 %v4178_v42, %v4358_v33  ;;  %v5957_v13 = vunpack.c.l.bf16 %v5956_v35 }
 0x1ee   : > { %v933_v30 = vmul.f32 %v5951_v53, %v5915_v34  ;;  %v936_v57 = vmul.f32 %v5953_v1, %v5917_v16  ;;  %v4581_v9 = vmul.f32 %v5955_v51, %v4124_v36  ;;  %v838_v41 = vrot.slane %v837_v45, 1 }
 0x1ef   : > { %v4590_v37 = vmul.f32 %v5957_v13, %v4124_v36  ;;  %v5958_v43 = vunpack.c.h.bf16 %v5952_v46  ;;  %v949_v17 = vadd.f32 %v929_v14, %v925_v22  ;;  %v762_v8 = vcombine.low %v4568_v58, %v4583_v52  ;;  %v5964_v22 = vld [vmem:[#allocation125_spill] sm:$0xff] }
 0x1f0   : > { %v846_v55 = vadd.f32 %v845_v6, %v844_v12  ;;  %v942_v29 = vadd.f32 %v941_v21, %v936_v57  ;;  %v5960_v2 = vunpack.c.h.bf16 %v5959_v20  ;;  %v5962_v48 = vunpack.c.h.bf16 %v5961_v47 }
 0x1f1   : > { %v937_v32 = vmul.f32 %v5958_v43, %v4170_v3  ;;  %v950_v33 = vadd.f32 %v949_v17, %v933_v30  ;;  %v5963_v1 = vunpack.c.h.bf16 %v5840_v60  ;;  %v5965_v14 = vunpack.c.l.bf16 %v5964_v22  ;;  %v5967_v60 = vld [vmem:[#allocation29_spill] sm:$0xff] }
 0x1f2   : > { %v1038_v42 = vmul.f32 %v5960_v2, %v5912_v54  ;;  %v1034_v53 = vmul.f32 %v5962_v48, %v5909_v11  ;;  %v4609_v51 = vadd.f32 %v838_v41, %v837_v45  ;;  %v847_v12 = vrot.slane %v846_v55, 1 }
 0x1f3   : > { %v1042_v46 = vmul.f32 %v5963_v1, %v5915_v34  ;;  %v1045_v24 = vmul.f32 %v5965_v14, %v5917_v16  ;;  %v943_v57 = vrot.slane %v942_v29, 4  ;;  %v5966_v6 = vunpack.c.h.bf16 %v5964_v22 }
 0x1f4   : > { %v951_v21 = vadd.f32 %v950_v33, %v937_v32  ;;  %v1050_v35 = vadd.f32 %v4180_v59, %v4363_v19  ;;  %v1058_v13 = vadd.f32 %v1038_v42, %v1034_v53  ;;  %v5968_v43 = vunpack.c.h.bf16 %v5967_v60  ;;  %v5971_v59 = vld [vmem:[#allocation126_spill] sm:$0xff] }
 0x1f5   : > { %v1046_v30 = vmul.f32 %v5966_v6, %v4170_v3  ;;  %v4619_v20 = vadd.f32 %v847_v12, %v846_v55  ;;  %v944_v2 = vadd.f32 %v943_v57, %v942_v29  ;;  %v5969_v45 = vunpack.c.h.bf16 %v3616_v10 }
 0x1f6   : > { %v1143_v17 = vmul.f32 %v5968_v43, %v5909_v11  ;;  %v5970_v47 = vunpack.c.h.bf16 %v5842_v40  ;;  %v952_v32 = vrot.slane %v951_v21, 4  ;;  %v1051_v33 = vadd.f32 %v1050_v35, %v1045_v24  ;;  %v5976_v35 = vld [vmem:[#allocation127_spill] sm:$0xff] }
 0x1f7   : > { %v1147_v41 = vmul.f32 %v5969_v45, %v5912_v54  ;;  %v1059_v1 = vadd.f32 %v1058_v13, %v1042_v46  ;;  %v5972_v19 = vunpack.c.l.bf16 %v5971_v59  ;;  %v871_v55 = vcombine.low %v4609_v51, %v4619_v20  ;;  %v5974_v46 = vld [vmem:[#allocation119_spill] sm:$0xff] }
 0x1f8   : > { %v1151_v48 = vmul.f32 %v5970_v47, %v5915_v34  ;;  %v945_v53 = vrot.slane %v944_v2, 2  ;;  %v5973_v29 = vunpack.c.h.bf16 %v5971_v59  ;;  %v1159_v22 = vadd.f32 %v4182_v38, %v4368_v7  ;;  %v5977_v7 = vld [vmem:[#allocation30_spill] sm:$0xff]  ;;  %v6007_v51 = vld [vmem:[#allocation63_spill] sm:$0xff] }
 0x1f9   : > { %v1154_v42 = vmul.f32 %v5972_v19, %v5917_v16  ;;  %v953_v40 = vadd.f32 %v952_v32, %v951_v21  ;;  %v1052_v14 = vrot.slane %v1051_v33, 4  ;;  %v1060_v12 = vadd.f32 %v1059_v1, %v1046_v30 }
 0x1fa   : > { %v1155_v10 = vmul.f32 %v5973_v29, %v4170_v3  ;;  %v1167_v24 = vadd.f32 %v1147_v41, %v1143_v17  ;;  %v5975_v57 = vunpack.c.l.bf16 %v5974_v46  ;;  %v4643_v13 = vrot.slane %v541_v25, %v5976_v35 }
 0x1fb   : > { %v946_v60 = vadd.f32 %v945_v53, %v944_v2  ;;  %v1160_v43 = vadd.f32 %v1159_v22, %v1154_v42  ;;  %v954_v45 = vrot.slane %v953_v40, 2  ;;  %v1053_v47 = vadd.f32 %v1052_v14, %v1051_v33  ;;  %v5981_v53 = vld [vmem:[#allocation128_spill] sm:$0xff] }
 0x1fc   : > { %v4640_v6 = vmul.f32 %v5975_v57, %v4124_v36  ;;  %v1061_v59 = vrot.slane %v1060_v12, 4  ;;  %v1168_v19 = vadd.f32 %v1167_v24, %v1151_v48  ;;  %v5978_v30 = vunpack.c.h.bf16 %v5977_v7 }
 0x1fd   : > { %v947_v29 = vrot.slane %v946_v60, 1  ;;  %v1161_v38 = vrot.slane %v1160_v43, 4  ;;  %v5979_v17 = vunpack.c.h.bf16 %v3619_v0  ;;  %v955_v41 = vadd.f32 %v954_v45, %v953_v40 }
 0x1fe   : > { %v1252_v21 = vmul.f32 %v5978_v30, %v5909_v11  ;;  %v1054_v32 = vrot.slane %v1053_v47, 2  ;;  %v1062_v25 = vadd.f32 %v1061_v59, %v1060_v12  ;;  %v1169_v1 = vadd.f32 %v1168_v19, %v1155_v10 }
 0x1ff   : > { %v1256_v36 = vmul.f32 %v5979_v17, %v5912_v54  ;;  %v4651_v2 = vadd.f32 %v947_v29, %v946_v60  ;;  %v1162_v42 = vadd.f32 %v1161_v38, %v1160_v43  ;;  %v5980_v48 = vunpack.c.h.bf16 %v5844_v23 }
 0x200   : > { %v5982_v22 = vunpack.c.l.bf16 %v5981_v53  ;;  %v956_v24 = vrot.slane %v955_v41, 1  ;;  %v1055_v46 = vadd.f32 %v1054_v32, %v1053_v47  ;;  %v1063_v57 = vrot.slane %v1062_v25, 2 }
 0x201   : > { %v1260_v33 = vmul.f32 %v5980_v48, %v5915_v34  ;;  %v1170_v0 = vrot.slane %v1169_v1, 4  ;;  %v1163_v7 = vrot.slane %v1162_v42, 2  ;;  %v5983_v40 = vunpack.c.h.bf16 %v5981_v53 }
 0x202   : > { %v1263_v14 = vmul.f32 %v5982_v22, %v5917_v16  ;;  %v1268_v12 = vadd.f32 %v4184_v44, %v4373_v18  ;;  %v1276_v60 = vadd.f32 %v1256_v36, %v1252_v21  ;;  %v4664_v43 = vadd.f32 %v956_v24, %v955_v41  ;;  %v5985_v41 = vld [vmem:[#allocation31_spill] sm:$0xff]  ;;  %v5988_v22 = vld [vmem:[#allocation129_spill] sm:$0xff] }
 0x203   : > { %v1264_v10 = vmul.f32 %v5983_v40, %v4170_v3  ;;  %v1056_v23 = vrot.slane %v1055_v46, 1  ;;  %v1064_v45 = vadd.f32 %v1063_v57, %v1062_v25  ;;  %v1171_v59 = vadd.f32 %v1170_v0, %v1169_v1 }
 0x204   : > { %v1164_v19 = vadd.f32 %v1163_v7, %v1162_v42  ;;  %v1269_v29 = vadd.f32 %v1268_v12, %v1263_v14  ;;  %v1277_v38 = vadd.f32 %v1276_v60, %v1260_v33  ;;  %v5984_v47 = vunpack.c.h.bf16 %v3622_v63 }
 0x205   : > { %v980_v17 = vcombine.low %v4651_v2, %v4664_v43  ;;  %v4671_v32 = vadd.f32 %v1056_v23, %v1055_v46  ;;  %v1065_v48 = vrot.slane %v1064_v45, 1  ;;  %v1172_v44 = vrot.slane %v1171_v59, 2 }
 0x206   : > { %v1365_v30 = vmul.f32 %v5984_v47, %v5912_v54  ;;  %v1165_v18 = vrot.slane %v1164_v19, 1  ;;  %v1270_v21 = vrot.slane %v1269_v29, 4  ;;  %v1278_v36 = vadd.f32 %v1277_v38, %v1264_v10 }
 0x207   : > { %v5986_v25 = vunpack.c.h.bf16 %v5985_v41  ;;  %v4676_v42 = vadd.f32 %v1065_v48, %v1064_v45  ;;  %v1173_v33 = vadd.f32 %v1172_v44, %v1171_v59  ;;  %v5987_v63 = vunpack.c.h.bf16 %v5846_v50  ;;  %v5992_v44 = vld [vmem:[#allocation32_spill] sm:$0xff] }
 0x208   : > { %v5989_v14 = vunpack.c.l.bf16 %v5988_v22  ;;  %v4684_v46 = vadd.f32 %v1165_v18, %v1164_v19  ;;  %v1271_v57 = vadd.f32 %v1270_v21, %v1269_v29  ;;  %v1279_v0 = vrot.slane %v1278_v36, 4 }
 0x209   : > { %v1361_v1 = vmul.f32 %v5986_v25, %v5909_v11  ;;  %v1369_v53 = vmul.f32 %v5987_v63, %v5915_v34  ;;  %v5990_v7 = vunpack.c.h.bf16 %v5988_v22  ;;  %v1089_v10 = vcombine.low %v4671_v32, %v4676_v42  ;;  %v6022_v32 = vld [vmem:[#allocation98_spill] sm:$0xff] }
 0x20a   : > { %v1372_v24 = vmul.f32 %v5989_v14, %v5917_v16  ;;  %v1174_v12 = vrot.slane %v1173_v33, 1  ;;  %v1377_v50 = vadd.f32 %v4204_v5, %v4378_v27  ;;  %v4697_v23 = vrot.slane %v653_v31, %v5976_v35  ;;  %v5995_v31 = vld [vmem:[#allocation130_spill] sm:$0xff] }
 0x20b   : > { %v1373_v40 = vmul.f32 %v5990_v7, %v4170_v3  ;;  %v1385_v60 = vadd.f32 %v1365_v30, %v1361_v1  ;;  %v1272_v45 = vrot.slane %v1271_v57, 2  ;;  %v1280_v59 = vadd.f32 %v1279_v0, %v1278_v36  ;;  %v5998_v0 = vld [vmem:[#allocation33_spill] sm:$0xff] }
 0x20c   : > { %v5991_v19 = vunpack.c.h.bf16 %v3629_v62  ;;  %v4702_v38 = vadd.f32 %v1174_v12, %v1173_v33  ;;  %v1378_v47 = vadd.f32 %v1377_v50, %v1372_v24  ;;  %v5993_v5 = vunpack.c.h.bf16 %v5992_v44 }
 0x20d   : > { %v1386_v48 = vadd.f32 %v1385_v60, %v1369_v53  ;;  %v1273_v30 = vadd.f32 %v1272_v45, %v1271_v57  ;;  %v1281_v18 = vrot.slane %v1280_v59, 2  ;;  %v5994_v4 = vunpack.c.h.bf16 %v5848_v28 }
 0x20e   : > { %v1474_v29 = vmul.f32 %v5991_v19, %v5912_v54  ;;  %v1470_v27 = vmul.f32 %v5993_v5, %v5909_v11  ;;  %v5996_v21 = vunpack.c.l.bf16 %v5995_v31  ;;  %v1198_v62 = vcombine.low %v4684_v46, %v4702_v38 }
 0x20f   : > { %v1478_v56 = vmul.f32 %v5994_v4, %v5915_v34  ;;  %v1379_v41 = vrot.slane %v1378_v47, 4  ;;  %v1387_v25 = vadd.f32 %v1386_v48, %v1373_v40  ;;  %v5997_v1 = vunpack.c.h.bf16 %v5995_v31  ;;  %v6002_v48 = vld [vmem:[#allocation131_spill] sm:$0xff] }
 0x210   : > { %v1481_v36 = vmul.f32 %v5996_v21, %v5917_v16  ;;  %v1274_v63 = vrot.slane %v1273_v30, 1  ;;  %v1282_v53 = vadd.f32 %v1281_v18, %v1280_v59  ;;  %v1486_v22 = vadd.f32 %v4206_v39, %v4383_v26 }
 0x211   : > { %v1482_v33 = vmul.f32 %v5997_v1, %v4170_v3  ;;  %v1494_v28 = vadd.f32 %v1474_v29, %v1470_v27  ;;  %v4724_v14 = vrot.slane %v762_v8, %v5976_v35  ;;  %v1380_v24 = vadd.f32 %v1379_v41, %v1378_v47 }
 0x212   : > { %v1388_v57 = vrot.slane %v1387_v25, 4  ;;  %v5999_v7 = vunpack.c.h.bf16 %v5998_v0  ;;  %v4729_v12 = vadd.f32 %v1274_v63, %v1273_v30  ;;  %v1283_v50 = vrot.slane %v1282_v53, 1 }
 0x213   : > { %v1487_v60 = vadd.f32 %v1486_v22, %v1481_v36  ;;  %v1495_v45 = vadd.f32 %v1494_v28, %v1478_v56  ;;  %v1381_v59 = vrot.slane %v1380_v24, 2  ;;  %v6000_v26 = vunpack.c.h.bf16 %v3632_v61  ;;  %v6005_v61 = vld [vmem:[#allocation85_spill] sm:$0xff]  ;;  %v6006_v56 = vld [vmem:[#allocation48_spill] sm:$0xff] }
 0x214   : > { %v1579_v40 = vmul.f32 %v5999_v7, %v5909_v11  ;;  %v1389_v39 = vadd.f32 %v1388_v57, %v1387_v25  ;;  %v6001_v58 = vunpack.c.h.bf16 %v5850_v49  ;;  %v4737_v8 = vadd.f32 %v1283_v50, %v1282_v53 }
 0x215   : > { %v1583_v19 = vmul.f32 %v6000_v26, %v5912_v54  ;;  %v1488_v29 = vrot.slane %v1487_v60, 4  ;;  %v1496_v47 = vadd.f32 %v1495_v45, %v1482_v33  ;;  %v6003_v44 = vunpack.c.l.bf16 %v6002_v48  ;;  %v6009_v45 = vld [vmem:[#allocation34_spill] sm:$0xff] }
 0x216   : > { %v1587_v52 = vmul.f32 %v6001_v58, %v5915_v34  ;;  %v1382_v27 = vadd.f32 %v1381_v59, %v1380_v24  ;;  %v1390_v30 = vrot.slane %v1389_v39, 2  ;;  %v6004_v18 = vunpack.c.h.bf16 %v6002_v48  ;;  %v6013_v58 = vld [vmem:[#allocation132_spill] sm:$0xff] }
 0x217   : > { %v1590_v5 = vmul.f32 %v6003_v44, %v5917_v16  ;;  %v1595_v31 = vadd.f32 %v6006_v56, %v6005_v61  ;;  %v1307_v49 = vcombine.low %v4729_v12, %v4737_v8  ;;  %v1489_v21 = vadd.f32 %v1488_v29, %v1487_v60  ;;  %v6051_v8 = vld [vmem:[#allocation67_spill] sm:$0xff] }
 0x218   : > { %v1591_v4 = vmul.f32 %v6004_v18, %v4170_v3  ;;  %v1497_v36 = vrot.slane %v1496_v47, 4  ;;  %v1603_v41 = vadd.f32 %v1583_v19, %v1579_v40  ;;  %v4753_v25 = vrot.slane %v871_v55, %v5976_v35 }
 0x219   : > { %v1383_v1 = vrot.slane %v1382_v27, 1  ;;  %v1391_v33 = vadd.f32 %v1390_v30, %v1389_v39  ;;  %v1596_v63 = vadd.f32 %v1595_v31, %v1590_v5  ;;  %v4759_v53 = vrot.slane %v980_v17, %v5976_v35  ;;  %v6011_v39 = vld [vmem:[#allocation97_spill] sm:$0xff]  ;;  %v6015_v5 = vld [vmem:[#allocation42_spill] sm:$0xff] }
 0x21a   : > { %v1490_v22 = vrot.slane %v1489_v21, 2  ;;  %v1498_v28 = vadd.f32 %v1497_v36, %v1496_v47  ;;  %v1604_v24 = vadd.f32 %v1603_v41, %v1587_v52  ;;  %v6008_v20 = vunpack.c.h.bf16 %v6007_v51 }
 0x21b   : > { %v4761_v57 = vadd.f32 %v1383_v1, %v1382_v27  ;;  %v1392_v0 = vrot.slane %v1391_v33, 1  ;;  %v1597_v7 = vrot.slane %v1596_v63, 4  ;;  %v6010_v59 = vunpack.c.h.bf16 %v6009_v45  ;;  %v6016_v27 = vld [vmem:[#allocation49_spill] sm:$0xff] }
 0x21c   : > { %v1692_v55 = vmul.f32 %v6008_v20, %v5912_v54  ;;  %v1491_v40 = vadd.f32 %v1490_v22, %v1489_v21  ;;  %v1499_v50 = vrot.slane %v1498_v28, 2  ;;  %v1605_v60 = vadd.f32 %v1604_v24, %v1591_v4 }
 0x21d   : > { %v1688_v2 = vmul.f32 %v6010_v59, %v5909_v11  ;;  %v4769_v43 = vadd.f32 %v1392_v0, %v1391_v33  ;;  %v1598_v17 = vadd.f32 %v1597_v7, %v1596_v63  ;;  %v6012_v26 = vunpack.c.h.bf16 %v6011_v39  ;;  %v6024_v59 = vld [vmem:[#allocation133_spill] sm:$0xff] }
 0x21e   : > { %v6014_v52 = vunpack.c.l.bf16 %v6013_v58  ;;  %v1492_v47 = vrot.slane %v1491_v40, 1  ;;  %v1500_v48 = vadd.f32 %v1499_v50, %v1498_v28  ;;  %v1606_v44 = vrot.slane %v1605_v60, 4  ;;  %v6018_v28 = vld [vmem:[#allocation64_spill] sm:$0xff] }
 0x21f   : > { %v1696_v19 = vmul.f32 %v6012_v26, %v5915_v34  ;;  %v1704_v30 = vadd.f32 %v6016_v27, %v6015_v5  ;;  %v1416_v18 = vcombine.low %v4761_v57, %v4769_v43  ;;  %v1599_v4 = vrot.slane %v1598_v17, 2 }
 0x220   : > { %v1699_v29 = vmul.f32 %v6014_v52, %v5917_v16  ;;  %v6017_v61 = vunpack.c.h.bf16 %v6013_v58  ;;  %v1712_v31 = vadd.f32 %v1692_v55, %v1688_v2  ;;  %v4784_v21 = vadd.f32 %v1492_v47, %v1491_v40  ;;  %v6020_v55 = vld [vmem:[#allocation35_spill] sm:$0xff]  ;;  %v6026_v58 = vld [vmem:[#allocation86_spill] sm:$0xff] }
 0x221   : > { %v1501_v36 = vrot.slane %v1500_v48, 1  ;;  %v1607_v41 = vadd.f32 %v1606_v44, %v1605_v60  ;;  %v4790_v33 = vrot.slane %v1089_v10, %v5976_v35  ;;  %v1600_v63 = vadd.f32 %v1599_v4, %v1598_v17  ;;  %v6027_v52 = vld [vmem:[#allocation50_spill] sm:$0xff] }
 0x222   : > { %v1700_v56 = vmul.f32 %v6017_v61, %v4170_v3  ;;  %v1705_v1 = vadd.f32 %v1704_v30, %v1699_v29  ;;  %v1713_v22 = vadd.f32 %v1712_v31, %v1696_v19  ;;  %v6019_v24 = vunpack.c.h.bf16 %v6018_v28 }
 0x223   : > { %v4795_v7 = vadd.f32 %v1501_v36, %v1500_v48  ;;  %v1608_v51 = vrot.slane %v1607_v41, 2  ;;  %v6021_v40 = vunpack.c.h.bf16 %v6020_v55  ;;  %v1601_v60 = vrot.slane %v1600_v63, 1 }
 0x224   : > { %v1801_v0 = vmul.f32 %v6019_v24, %v5912_v54  ;;  %v1706_v20 = vrot.slane %v1705_v1, 4  ;;  %v1714_v45 = vadd.f32 %v1713_v22, %v1700_v56  ;;  %v6023_v42 = vunpack.c.h.bf16 %v6022_v32  ;;  %v6029_v56 = vld [vmem:[#allocation36_spill] sm:$0xff]  ;;  %v6031_v22 = vld [vmem:[#allocation65_spill] sm:$0xff]  ;;  %v6033_v24 = vld [vmem:[#allocation99_spill] sm:$0xff] }
 0x225   : > { %v1797_v50 = vmul.f32 %v6021_v40, %v5909_v11  ;;  %v6025_v2 = vunpack.c.l.bf16 %v6024_v59  ;;  %v1525_v39 = vcombine.low %v4784_v21, %v4795_v7  ;;  %v1609_v26 = vadd.f32 %v1608_v51, %v1607_v41  ;;  %v6066_v21 = vld [vmem:[#allocation102_spill] sm:$0xff] }
 0x226   : > { %v1805_v10 = vmul.f32 %v6023_v42, %v5915_v34  ;;  %v1707_v19 = vadd.f32 %v1706_v20, %v1705_v1  ;;  %v1813_v29 = vadd.f32 %v6027_v52, %v6026_v58  ;;  %v4810_v47 = vadd.f32 %v1601_v60, %v1600_v63 }
 0x227   : > { %v1808_v17 = vmul.f32 %v6025_v2, %v5917_v16  ;;  %v1715_v48 = vrot.slane %v1714_v45, 4  ;;  %v6028_v44 = vunpack.c.h.bf16 %v6024_v59  ;;  %v1821_v27 = vadd.f32 %v1801_v0, %v1797_v50  ;;  %v6035_v50 = vld [vmem:[#allocation134_spill] sm:$0xff]  ;;  %v6038_v2 = vld [vmem:[#allocation87_spill] sm:$0xff] }
 0x228   : > { %v1610_v30 = vrot.slane %v1609_v26, 1  ;;  %v1708_v4 = vrot.slane %v1707_v19, 2  ;;  %v6030_v31 = vunpack.c.h.bf16 %v6029_v56  ;;  %v6032_v28 = vunpack.c.h.bf16 %v6031_v22 }
 0x229   : > { %v1809_v5 = vmul.f32 %v6028_v44, %v4170_v3  ;;  %v1814_v61 = vadd.f32 %v1813_v29, %v1808_v17  ;;  %v1716_v41 = vadd.f32 %v1715_v48, %v1714_v45  ;;  %v1822_v1 = vadd.f32 %v1821_v27, %v1805_v10  ;;  %v6039_v17 = vld [vmem:[#allocation51_spill] sm:$0xff] }
 0x22a   : > { %v1906_v36 = vmul.f32 %v6030_v31, %v5909_v11  ;;  %v1910_v63 = vmul.f32 %v6032_v28, %v5912_v54  ;;  %v6034_v51 = vunpack.c.h.bf16 %v6033_v24  ;;  %v4824_v55 = vadd.f32 %v1610_v30, %v1609_v26  ;;  %v6040_v31 = vld [vmem:[#allocation37_spill] sm:$0xff] }
 0x22b   : > { %v1709_v0 = vadd.f32 %v1708_v4, %v1707_v19  ;;  %v1815_v40 = vrot.slane %v1814_v61, 4  ;;  %v6036_v60 = vunpack.c.l.bf16 %v6035_v50  ;;  %v1717_v42 = vrot.slane %v1716_v41, 2 }
 0x22c   : > { %v1914_v20 = vmul.f32 %v6034_v51, %v5915_v34  ;;  %v1823_v59 = vadd.f32 %v1822_v1, %v1809_v5  ;;  %v6037_v45 = vunpack.c.h.bf16 %v6035_v50  ;;  %v1922_v58 = vadd.f32 %v6039_v17, %v6038_v2 }
 0x22d   : > { %v1917_v32 = vmul.f32 %v6036_v60, %v5917_v16  ;;  %v1634_v52 = vcombine.low %v4810_v47, %v4824_v55  ;;  %v1710_v26 = vrot.slane %v1709_v0, 1  ;;  %v1816_v29 = vadd.f32 %v1815_v40, %v1814_v61  ;;  %v6046_v40 = vld [vmem:[#allocation135_spill] sm:$0xff] }
 0x22e   : > { %v1918_v10 = vmul.f32 %v6037_v45, %v4170_v3  ;;  %v1930_v19 = vadd.f32 %v1910_v63, %v1906_v36  ;;  %v4840_v48 = vrot.slane %v1198_v62, %v5976_v35  ;;  %v1718_v44 = vadd.f32 %v1717_v42, %v1716_v41  ;;  %v6042_v63 = vld [vmem:[#allocation66_spill] sm:$0xff]  ;;  %v6044_v41 = vld [vmem:[#allocation100_spill] sm:$0xff] }
 0x22f   : > { %v1824_v5 = vrot.slane %v1823_v59, 4  ;;  %v1923_v27 = vadd.f32 %v1922_v58, %v1917_v32  ;;  %v4842_v30 = vadd.f32 %v1710_v26, %v1709_v0  ;;  %v1817_v4 = vrot.slane %v1816_v29, 2  ;;  %v6049_v58 = vld [vmem:[#allocation88_spill] sm:$0xff] }
 0x230   : > { %v1931_v56 = vadd.f32 %v1930_v19, %v1914_v20  ;;  %v6041_v1 = vunpack.c.h.bf16 %v6040_v31  ;;  %v1719_v28 = vrot.slane %v1718_v44, 1  ;;  %v6043_v24 = vunpack.c.h.bf16 %v6042_v63 }
 0x231   : > { %v1825_v61 = vadd.f32 %v1824_v5, %v1823_v59  ;;  %v1924_v36 = vrot.slane %v1923_v27, 4  ;;  %v1818_v38 = vadd.f32 %v1817_v4, %v1816_v29  ;;  %v6045_v51 = vunpack.c.h.bf16 %v6044_v41 }
 0x232   : > { %v2015_v22 = vmul.f32 %v6041_v1, %v5909_v11  ;;  %v2019_v46 = vmul.f32 %v6043_v24, %v5912_v54  ;;  %v1932_v62 = vadd.f32 %v1931_v56, %v1918_v10  ;;  %v6047_v20 = vunpack.c.l.bf16 %v6046_v40  ;;  %v6050_v10 = vld [vmem:[#allocation52_spill] sm:$0xff] }
 0x233   : > { %v2023_v0 = vmul.f32 %v6045_v51, %v5915_v34  ;;  %v4856_v60 = vadd.f32 %v1719_v28, %v1718_v44  ;;  %v1826_v32 = vrot.slane %v1825_v61, 2  ;;  %v1925_v42 = vadd.f32 %v1924_v36, %v1923_v27 }
 0x234   : > { %v2026_v50 = vmul.f32 %v6047_v20, %v5917_v16  ;;  %v6048_v59 = vunpack.c.h.bf16 %v6046_v40  ;;  %v1819_v2 = vrot.slane %v1818_v38, 1  ;;  %v1933_v17 = vrot.slane %v1932_v62, 4 }
 0x235   : > { %v2031_v26 = vadd.f32 %v6050_v10, %v6049_v58  ;;  %v2039_v29 = vadd.f32 %v2019_v46, %v2015_v22  ;;  %v4867_v19 = vrot.slane %v1307_v49, %v5976_v35  ;;  %v1743_v44 = vcombine.low %v4842_v30, %v4856_v60  ;;  %v6053_v46 = vld [vmem:[#allocation38_spill] sm:$0xff] }
 0x236   : > { %v2027_v45 = vmul.f32 %v6048_v59, %v4170_v3  ;;  %v1827_v5 = vadd.f32 %v1826_v32, %v1825_v61  ;;  %v1926_v27 = vrot.slane %v1925_v42, 2  ;;  %v4875_v4 = vrot.slane %v1416_v18, %v5976_v35  ;;  %v6059_v59 = vld [vmem:[#allocation89_spill] sm:$0xff]  ;;  %v2769_v30 = vld [vmem:[%s3462_s25 + $0x58] sm:$0xff] }
 0x237   : > { %v1934_v56 = vadd.f32 %v1933_v17, %v1932_v62  ;;  %v2032_v31 = vadd.f32 %v2031_v26, %v2026_v50  ;;  %v2040_v1 = vadd.f32 %v2039_v29, %v2023_v0  ;;  %v4877_v22 = vadd.f32 %v1819_v2, %v1818_v38  ;;  %v6055_v62 = vld [vmem:[#allocation101_spill] sm:$0xff]  ;;  %v6057_v0 = vld [vmem:[#allocation136_spill] sm:$0xff] }
 0x238   : > { %v1828_v28 = vrot.slane %v1827_v5, 1  ;;  %v1927_v12 = vadd.f32 %v1926_v27, %v1925_v42  ;;  %v6052_v49 = vunpack.c.h.bf16 %v6051_v8  ;;  %v6054_v41 = vunpack.c.h.bf16 %v6053_v46 }
 0x239   : > { %v1935_v63 = vrot.slane %v1934_v56, 2  ;;  %v2033_v61 = vrot.slane %v2032_v31, 4  ;;  %v2041_v24 = vadd.f32 %v2040_v1, %v2027_v45  ;;  %v6056_v38 = vunpack.c.h.bf16 %v6055_v62  ;;  %v6060_v45 = vld [vmem:[#allocation53_spill] sm:$0xff] }
 0x23a   : > { %v2128_v36 = vmul.f32 %v6052_v49, %v5912_v54  ;;  %v2124_v57 = vmul.f32 %v6054_v41, %v5909_v11  ;;  %v4885_v43 = vadd.f32 %v1828_v28, %v1827_v5  ;;  %v1928_v18 = vrot.slane %v1927_v12, 1  ;;  %v6068_v62 = vld [vmem:[#allocation77_spill] sm:$0xff] }
 0x23b   : > { %v2132_v51 = vmul.f32 %v6056_v38, %v5915_v34  ;;  %v6058_v40 = vunpack.c.l.bf16 %v6057_v0  ;;  %v1936_v50 = vadd.f32 %v1935_v63, %v1934_v56  ;;  %v2034_v32 = vadd.f32 %v2033_v61, %v2032_v31  ;;  %v6064_v63 = vld [vmem:[#allocation68_spill] sm:$0xff] }
 0x23c   : > { %v2042_v42 = vrot.slane %v2041_v24, 4  ;;  %v2140_v2 = vadd.f32 %v6060_v45, %v6059_v59  ;;  %v1852_v17 = vcombine.low %v4877_v22, %v4885_v43  ;;  %v4897_v58 = vadd.f32 %v1928_v18, %v1927_v12  ;;  %v6062_v12 = vld [vmem:[#allocation39_spill] sm:$0xff] }
 0x23d   : > { %v2135_v20 = vmul.f32 %v6058_v40, %v5917_v16  ;;  %v6061_v10 = vunpack.c.h.bf16 %v6057_v0  ;;  %v2148_v29 = vadd.f32 %v2128_v36, %v2124_v57  ;;  %v1937_v5 = vrot.slane %v1936_v50, 1  ;;  %v6071_v0 = vld [vmem:[#allocation54_spill] sm:$0xff] }
 0x23e   : > { %v2035_v27 = vrot.slane %v2034_v32, 2  ;;  %v2043_v1 = vadd.f32 %v2042_v42, %v2041_v24  ;;  %v4906_v56 = vrot.slane %v1525_v39, %v5976_v35  ;;  %v6063_v8 = vunpack.c.h.bf16 %v6062_v12  ;;  %v468_v42 = vld [vmem:[%s3462_s25 + $0x38] sm:$0xff] }
 0x23f   : > { %v2136_v26 = vmul.f32 %v6061_v10, %v4170_v3  ;;  %v2141_v28 = vadd.f32 %v2140_v2, %v2135_v20  ;;  %v2149_v31 = vadd.f32 %v2148_v29, %v2132_v51  ;;  %v6065_v61 = vunpack.c.h.bf16 %v6064_v63 }
 0x240   : > { %v2233_v49 = vmul.f32 %v6063_v8, %v5909_v11  ;;  %v4914_v46 = vadd.f32 %v1937_v5, %v1936_v50  ;;  %v2036_v24 = vadd.f32 %v2035_v27, %v2034_v32  ;;  %v2044_v41 = vrot.slane %v2043_v1, 2  ;;  %v6070_v11 = vld [vmem:[#allocation90_spill] sm:$0xff]  ;;  %v2767_v5 = vld [vmem:[%s3462_s25 + $0x28] sm:$0xff] }
 0x241   : > { %v2237_v36 = vmul.f32 %v6065_v61, %v5912_v54  ;;  %v2142_v57 = vrot.slane %v2141_v28, 4  ;;  %v2150_v18 = vadd.f32 %v2149_v31, %v2136_v26  ;;  %v6067_v7 = vunpack.c.h.bf16 %v6066_v21 }
 0x242   : > { %v6069_v38 = vunpack.c.l.bf16 %v6068_v62  ;;  %v2249_v40 = vadd.f32 %v6071_v0, %v6070_v11  ;;  %v1961_v54 = vcombine.low %v4897_v58, %v4914_v46  ;;  %v2037_v20 = vrot.slane %v2036_v24, 1  ;;  %v6079_v11 = vld [vmem:[#allocation44_spill] sm:$0xff] }
 0x243   : > { %v2241_v39 = vmul.f32 %v6067_v7, %v5915_v34  ;;  %v2045_v50 = vadd.f32 %v2044_v41, %v2043_v1  ;;  %v2143_v32 = vadd.f32 %v2142_v57, %v2141_v28  ;;  %v2151_v59 = vrot.slane %v2150_v18, 4  ;;  %v6073_v41 = vld [vmem:[#allocation138_spill] sm:$0xff]  ;;  %v6074_v57 = vld [vmem:[#allocation40_spill] sm:$0xff] }
 0x244   : > { %v2244_v51 = vmul.f32 %v6069_v38, %v5917_v16  ;;  %v6072_v45 = vunpack.c.h.bf16 %v6068_v62  ;;  %v2257_v10 = vadd.f32 %v2237_v36, %v2233_v49  ;;  %v4930_v26 = vadd.f32 %v2037_v20, %v2036_v24  ;;  %v6076_v24 = vld [vmem:[#allocation140_spill] sm:$0xff]  ;;  %v6077_v62 = vld [vmem:[#allocation69_spill] sm:$0xff] }
 0x245   : > { %v2046_v16 = vrot.slane %v2045_v50, 1  ;;  %v2144_v29 = vrot.slane %v2143_v32, 2  ;;  %v480_v27 = vunpack.c.h.bf16 %v2767_v5  ;;  %v2152_v31 = vadd.f32 %v2151_v59, %v2150_v18 }
 0x246   : > { %v2245_v2 = vmul.f32 %v6072_v45, %v4170_v3  ;;  %v2250_v34 = vadd.f32 %v2249_v40, %v2244_v51  ;;  %v2258_v8 = vadd.f32 %v2257_v10, %v2241_v39  ;;  %v483_v63 = vunpack.c.l.bf16 %v468_v42  ;;  %v6080_v40 = vld [vmem:[#allocation46_spill] sm:$0xff]  ;;  %v6082_v10 = vld [vmem:[#allocation91_spill] sm:$0xff] }
 0x247   : > { %v4933_v1 = vadd.f32 %v2046_v16, %v2045_v50  ;;  %v2145_v28 = vadd.f32 %v2144_v29, %v2143_v32  ;;  %v484_v61 = vunpack.c.h.bf16 %v468_v42  ;;  %v6075_v21 = vunpack.c.h.bf16 %v6074_v57  ;;  %v6083_v16 = vld [vmem:[#allocation55_spill] sm:$0xff] }
 0x248   : > { %v2251_v12 = vrot.slane %v2250_v34, 4  ;;  %v2153_v7 = vrot.slane %v2152_v31, 2  ;;  %v2259_v36 = vadd.f32 %v2258_v8, %v2245_v2  ;;  %v6078_v38 = vunpack.c.h.bf16 %v6077_v62  ;;  %v6081_v2 = vld [vmem:[#allocation47_spill] sm:$0xff] }
 0x249   : > { %v488_v3 = vmul.f32 %v6075_v21, %v6073_v41  ;;  %v2070_v18 = vcombine.low %v4930_v26, %v4933_v1  ;;  %v2146_v39 = vrot.slane %v2145_v28, 1  ;;  %v496_v0 = vmul.f32 %v480_v27, %v6079_v11 }
 0x24a   : > { %v2252_v49 = vadd.f32 %v2251_v12, %v2250_v34  ;;  %v492_v51 = vmul.f32 %v6078_v38, %v6076_v24  ;;  %v499_v20 = vmul.f32 %v483_v63, %v6080_v40  ;;  %v4949_v50 = vrot.slane %v1634_v52, %v5976_v35  ;;  %v2768_v63 = vld [vmem:[%s3462_s25 + $0x48] sm:$0xff] }
 0x24b   : > { %v2154_v32 = vadd.f32 %v2153_v7, %v2152_v31  ;;  %v2260_v59 = vrot.slane %v2259_v36, 4  ;;  %v4955_v45 = vrot.slane %v1743_v44, %v5976_v35  ;;  %v500_v34 = vmul.f32 %v484_v61, %v6081_v2  ;;  %v2481_v31 = vld [vmem:[%s3462_s25 + $0x78] sm:$0xff]  ;;  %v2770_v7 = vld [vmem:[%s3462_s25 + $0x68] sm:$0xff] }
 0x24c   : > { %v2253_v42 = vrot.slane %v2252_v49, 2  ;;  %v520_v29 = vadd.f32 %v6083_v16, %v6082_v10  ;;  %v528_v47 = vadd.f32 %v492_v51, %v488_v3  ;;  %v4960_v55 = vadd.f32 %v2146_v39, %v2145_v28 }
 0x24d   : > { %v2155_v52 = vrot.slane %v2154_v32, 1  ;;  %v2261_v27 = vadd.f32 %v2260_v59, %v2259_v36  ;;  %v584_v57 = vunpack.c.h.bf16 %v2768_v63  ;;  %v588_v60 = vunpack.c.h.bf16 %v2769_v30 }
 0x24e   : > { %v2254_v5 = vadd.f32 %v2253_v42, %v2252_v49  ;;  %v521_v12 = vadd.f32 %v520_v29, %v499_v20  ;;  %v529_v8 = vadd.f32 %v528_v47, %v496_v0  ;;  %v592_v62 = vunpack.c.h.bf16 %v2770_v7  ;;  %v6084_v29 = vld [vmem:[#allocation92_spill] sm:$0xff] }
 0x24f   : > { %v4965_v44 = vadd.f32 %v2155_v52, %v2154_v32  ;;  %v2262_v21 = vrot.slane %v2261_v27, 2  ;;  %v595_v28 = vunpack.c.l.bf16 %v2481_v31  ;;  %v596_v51 = vunpack.c.h.bf16 %v2481_v31  ;;  %v6085_v47 = vld [vmem:[#allocation56_spill] sm:$0xff]  ;;  %v2490_v31 = vld [vmem:[%s3462_s25 + $0xb8] sm:$0xff] }
 0x250   : > { %v2255_v61 = vrot.slane %v2254_v5, 1  ;;  %v522_v38 = vrot.slane %v521_v12, 4  ;;  %v530_v3 = vadd.f32 %v529_v8, %v500_v34  ;;  %v4972_v49 = vrot.slane %v1852_v17, %v5976_v35  ;;  %v2771_v8 = vld [vmem:[%s3462_s25 + $0x88] sm:$0xff] }
 0x251   : > { %v2263_v39 = vadd.f32 %v2262_v21, %v2261_v27  ;;  %v600_v0 = vmul.f32 %v584_v57, %v6073_v41  ;;  %v604_v42 = vmul.f32 %v588_v60, %v6076_v24  ;;  %v608_v59 = vmul.f32 %v592_v62, %v6079_v11  ;;  %v2772_v57 = vld [vmem:[%s3462_s25 + $0x98] sm:$0xff] }
 0x252   : > { %v523_v20 = vadd.f32 %v522_v38, %v521_v12  ;;  %v531_v32 = vrot.slane %v530_v3, 4  ;;  %v4979_v34 = vadd.f32 %v2255_v61, %v2254_v5  ;;  %v611_v43 = vmul.f32 %v595_v28, %v6080_v40  ;;  %v2773_v5 = vld [vmem:[%s3462_s25 + $0xa8] sm:$0xff] }
 0x253   : > { %v2264_v22 = vrot.slane %v2263_v39, 1  ;;  %v612_v17 = vmul.f32 %v596_v51, %v6081_v2  ;;  %v632_v52 = vadd.f32 %v6085_v47, %v6084_v29  ;;  %v640_v27 = vadd.f32 %v604_v42, %v600_v0  ;;  %v2499_v29 = vld [vmem:[%s3462_s25 + $0xf8] sm:$0xff] }
 0x254   : > { %v524_v10 = vrot.slane %v523_v20, 2  ;;  %v532_v16 = vadd.f32 %v531_v32, %v530_v3  ;;  %v693_v63 = vunpack.c.h.bf16 %v2771_v8  ;;  %v697_v30 = vunpack.c.h.bf16 %v2772_v57 }
 0x255   : > { %v4986_v12 = vadd.f32 %v2264_v22, %v2263_v39  ;;  %v701_v60 = vunpack.c.h.bf16 %v2773_v5  ;;  %v633_v7 = vadd.f32 %v632_v52, %v611_v43  ;;  %v641_v62 = vadd.f32 %v640_v27, %v608_v59  ;;  %v6089_v52 = vld [vmem:[#allocation93_spill] sm:$0xff]  ;;  %v6090_v27 = vld [vmem:[#allocation70_spill] sm:$0xff] }
 0x256   : > { %v525_v61 = vadd.f32 %v524_v10, %v523_v20  ;;  %v533_v21 = vrot.slane %v532_v16, 2  ;;  %v4995_v38 = vrot.slane %v1961_v54, %v5976_v35  ;;  %v704_v28 = vunpack.c.l.bf16 %v2490_v31 }
 0x257   : > { %v705_v51 = vunpack.c.h.bf16 %v2490_v31  ;;  %v634_v32 = vrot.slane %v633_v7, 4  ;;  %v642_v20 = vadd.f32 %v641_v62, %v612_v17  ;;  %v709_v42 = vmul.f32 %v693_v63, %v6073_v41  ;;  %v2774_v63 = vld [vmem:[%s3462_s25 + $0xc8] sm:$0xff] }
 0x258   : > { %v526_v39 = vrot.slane %v525_v61, 1  ;;  %v534_v0 = vadd.f32 %v533_v21, %v532_v16  ;;  %v713_v59 = vmul.f32 %v697_v30, %v6076_v24  ;;  %v717_v22 = vmul.f32 %v701_v60, %v6079_v11 }
 0x259   : > { %v720_v58 = vmul.f32 %v704_v28, %v6080_v40  ;;  %v635_v43 = vadd.f32 %v634_v32, %v633_v7  ;;  %v643_v10 = vrot.slane %v642_v20, 4  ;;  %v6086_v47 = vlaneseq  ;;  %v2776_v28 = vld [vmem:[%s3462_s25 + $0xe8] sm:$0xff] }
 0x25a   : > { %v527_v46 = vadd.f32 %v526_v39, %v525_v61  ;;  %v535_v54 = vrot.slane %v534_v0, 1  ;;  %v721_v17 = vmul.f32 %v705_v51, %v6081_v2  ;;  %v741_v31 = vadd.f32 %v6090_v27, %v6089_v52  ;;  %v2775_v61 = vld [vmem:[%s3462_s25 + $0xd8] sm:$0xff] }
 0x25b   : > { %vm5005_vm1 = vcmp.lt.s32.totalorder %v6086_v47, 512  ;;  %v749_v8 = vadd.f32 %v713_v59, %v709_v42  ;;  %v802_v57 = vunpack.c.h.bf16 %v2774_v63  ;;  %v636_v5 = vrot.slane %v635_v43, 2  ;;  %v6092_v63 = vld [vmem:[#allocation71_spill] sm:$0xff] }
 0x25c   : > { %v536_v30 = vadd.f32 %v535_v54, %v534_v0  ;;  %v644_v60 = vadd.f32 %v643_v10, %v642_v20  ;;  %v806_v21 = vunpack.c.h.bf16 %v2775_v61  ;;  %v742_v7 = vadd.f32 %v741_v31, %v720_v58  ;;  %v2508_v61 = vld [vmem:[%s3462_s25 + $0x138] sm:$0xff] }
 0x25d   : > { %v750_v62 = vadd.f32 %v749_v8, %v717_v22  ;;  %v810_v39 = vunpack.c.h.bf16 %v2776_v28  ;;  %v813_v32 = vunpack.c.l.bf16 %v2499_v29  ;;  %v637_v3 = vadd.f32 %v636_v5, %v635_v43  ;;  %v6091_v8 = vld [vmem:[#allocation94_spill] sm:$0xff] }
 0x25e   : > { %v542_v47 = vcombine.low %v527_v46, %v536_v30  ;;  %v645_v51 = vrot.slane %v644_v60, 2  ;;  %v814_v36 = vunpack.c.h.bf16 %v2499_v29  ;;  %v743_v52 = vrot.slane %v742_v7, 4 }
 0x25f   : > { %v751_v42 = vadd.f32 %v750_v62, %v721_v17  ;;  %v818_v59 = vmul.f32 %v802_v57, %v6073_v41  ;;  %v822_v0 = vmul.f32 %v806_v21, %v6076_v24  ;;  %v638_v58 = vrot.slane %v637_v3, 1  ;;  %v2777_v21 = vld [vmem:[%s3462_s25 + $0x108] sm:$0xff] }
 0x260   : > { %v556_v20 = vrot.slane %v542_v47, %v5976_v35  ;;  %v646_v22 = vadd.f32 %v645_v51, %v644_v60  ;;  %v826_v54 = vmul.f32 %v810_v39, %v6079_v11  ;;  %v744_v10 = vadd.f32 %v743_v52, %v742_v7  ;;  %v2779_v51 = vld [vmem:[%s3462_s25 + $0x128] sm:$0xff] }
 0x261   : > { %v752_v46 = vrot.slane %v751_v42, 4  ;;  %v829_v43 = vmul.f32 %v813_v32, %v6080_v40  ;;  %v830_v29 = vmul.f32 %v814_v36, %v6081_v2  ;;  %v639_v27 = vadd.f32 %v638_v58, %v637_v3  ;;  %v2778_v36 = vld [vmem:[%s3462_s25 + $0x118] sm:$0xff] }
 0x262   : > { %v557_v17 = vcombine.low %v4643_v13, %v556_v20  ;;  %v647_v31 = vrot.slane %v646_v22, 1  ;;  %v850_v57 = vadd.f32 %v6092_v63, %v6091_v8  ;;  %v745_v30 = vrot.slane %v744_v10, 2 }
 0x263   : > { %v753_v5 = vadd.f32 %v752_v46, %v751_v42  ;;  %v858_v60 = vadd.f32 %v822_v0, %v818_v59  ;;  %v911_v7 = vunpack.c.h.bf16 %v2777_v21  ;;  %v915_v32 = vunpack.c.h.bf16 %v2778_v36  ;;  %v2780_v36 = vld [vmem:[%s3462_s25 + $0x148] sm:$0xff] }
 0x264   : > { %v564_v62 = vrot.slane %v557_v17, %v5976_v35  ;;  %v648_v28 = vadd.f32 %v647_v31, %v646_v22  ;;  %v851_v39 = vadd.f32 %v850_v57, %v829_v43  ;;  %v746_v13 = vadd.f32 %v745_v30, %v744_v10 }
 0x265   : > { %v754_v3 = vrot.slane %v753_v5, 2  ;;  %v859_v47 = vadd.f32 %v858_v60, %v826_v54  ;;  %v919_v52 = vunpack.c.h.bf16 %v2779_v51  ;;  %v922_v0 = vunpack.c.l.bf16 %v2508_v61  ;;  %v6093_v60 = vld [vmem:[#allocation95_spill] sm:$0xff]  ;;  %v2781_v51 = vld [vmem:[%s3462_s25 + $0x158] sm:$0xff] }
 0x266   : > { %570 = vst.msk [vmem:[%s5032_s28] ss:$8 sm:$0xf] %vm5005_vm1, %v564_v62  ;;  %v654_v42 = vcombine.low %v639_v27, %v648_v28  ;;  %v852_v59 = vrot.slane %v851_v39, 4  ;;  %v923_v20 = vunpack.c.h.bf16 %v2508_v61  ;;  %v747_v58 = vrot.slane %v746_v13, 1  ;;  %v6094_v61 = vld [vmem:[#allocation72_spill] sm:$0xff] }
 0x267   : > { %v755_v22 = vadd.f32 %v754_v3, %v753_v5  ;;  %v860_v46 = vadd.f32 %v859_v47, %v830_v29  ;;  %v927_v10 = vmul.f32 %v911_v7, %v6073_v41  ;;  %v931_v17 = vmul.f32 %v915_v32, %v6076_v24 }
 0x268   : > { %v668_v54 = vrot.slane %v654_v42, %v5976_v35  ;;  %v853_v43 = vadd.f32 %v852_v59, %v851_v39  ;;  %v935_v31 = vmul.f32 %v919_v52, %v6079_v11  ;;  %v748_v8 = vadd.f32 %v747_v58, %v746_v13  ;;  %v2517_v39 = vld [vmem:[%s3462_s25 + $0x178] sm:$0xff] }
 0x269   : > { %v756_v63 = vrot.slane %v755_v22, 1  ;;  %v861_v27 = vrot.slane %v860_v46, 4  ;;  %v938_v57 = vmul.f32 %v922_v0, %v6080_v40  ;;  %v939_v5 = vmul.f32 %v923_v20, %v6081_v2  ;;  %v2782_v0 = vld [vmem:[%s3462_s25 + $0x168] sm:$0xff] }
 0x26a   : > { %v669_v30 = vcombine.low %v4697_v23, %v668_v54  ;;  %v854_v29 = vrot.slane %v853_v43, 2  ;;  %v959_v21 = vadd.f32 %v6094_v61, %v6093_v60  ;;  %v967_v28 = vadd.f32 %v931_v17, %v927_v10 }
 0x26b   : > { %v757_v7 = vadd.f32 %v756_v63, %v755_v22  ;;  %v862_v62 = vadd.f32 %v861_v27, %v860_v46  ;;  %v1020_v32 = vunpack.c.h.bf16 %v2780_v36  ;;  %v1024_v23 = vunpack.c.h.bf16 %v2781_v51  ;;  %v2526_v36 = vld [vmem:[%s3462_s25 + $0x1b8] sm:$0xff] }
 0x26c   : > { %v676_v13 = vrot.slane %v669_v30, %v5976_v35  ;;  %v855_v3 = vadd.f32 %v854_v29, %v853_v43  ;;  %v960_v47 = vadd.f32 %v959_v21, %v938_v57  ;;  %v968_v59 = vadd.f32 %v967_v28, %v935_v31 }
 0x26d   : > { %v763_v52 = vcombine.low %v748_v8, %v757_v7  ;;  %v863_v42 = vrot.slane %v862_v62, 2  ;;  %v1028_v20 = vunpack.c.h.bf16 %v2782_v0  ;;  %v1031_v46 = vunpack.c.l.bf16 %v2517_v39  ;;  %v6095_v7 = vld [vmem:[#allocation96_spill] sm:$0xff] }
 0x26e   : > { %2482 = vst.msk [vmem:[%s5032_s28 + $0x1] ss:$8 sm:$0xf] %vm5005_vm1, %v676_v13  ;;  %v856_v58 = vrot.slane %v855_v3, 1  ;;  %v961_v22 = vrot.slane %v960_v47, 4  ;;  %v1032_v10 = vunpack.c.h.bf16 %v2517_v39  ;;  %v969_v43 = vadd.f32 %v968_v59, %v939_v5 }
 0x26f   : > { %v777_v54 = vrot.slane %v763_v52, %v5976_v35  ;;  %v864_v17 = vadd.f32 %v863_v42, %v862_v62  ;;  %v1036_v63 = vmul.f32 %v1020_v32, %v6073_v41  ;;  %v1040_v31 = vmul.f32 %v1024_v23, %v6076_v24  ;;  %v6096_v62 = vld [vmem:[#allocation73_spill] sm:$0xff]  ;;  %v2784_v42 = vld [vmem:[%s3462_s25 + $0x198] sm:$0xff] }
 0x270   : > { %v857_v27 = vadd.f32 %v856_v58, %v855_v3  ;;  %v962_v8 = vadd.f32 %v961_v22, %v960_v47  ;;  %v1044_v57 = vmul.f32 %v1028_v20, %v6079_v11  ;;  %v970_v60 = vrot.slane %v969_v43, 4  ;;  %v2785_v58 = vld [vmem:[%s3462_s25 + $0x1a8] sm:$0xff] }
 0x271   : > { %v778_v30 = vcombine.low %v4724_v14, %v777_v54  ;;  %v865_v29 = vrot.slane %v864_v17, 1  ;;  %v1047_v61 = vmul.f32 %v1031_v46, %v6080_v40  ;;  %v1048_v5 = vmul.f32 %v1032_v10, %v6081_v2  ;;  %v2783_v14 = vld [vmem:[%s3462_s25 + $0x188] sm:$0xff] }
 0x272   : > { %v963_v21 = vrot.slane %v962_v8, 2  ;;  %v1068_v28 = vadd.f32 %v6096_v62, %v6095_v7  ;;  %v1076_v39 = vadd.f32 %v1040_v31, %v1036_v63  ;;  %v971_v3 = vadd.f32 %v970_v60, %v969_v43 }
 0x273   : > { %v785_v32 = vrot.slane %v778_v30, %v5976_v35  ;;  %v866_v13 = vadd.f32 %v865_v29, %v864_v17  ;;  %v1129_v47 = vunpack.c.h.bf16 %v2783_v14  ;;  %v1133_v59 = vunpack.c.h.bf16 %v2784_v42 }
 0x274   : > { %v964_v51 = vadd.f32 %v963_v21, %v962_v8  ;;  %v1069_v23 = vadd.f32 %v1068_v28, %v1047_v61  ;;  %v1077_v52 = vadd.f32 %v1076_v39, %v1044_v57  ;;  %v972_v20 = vrot.slane %v971_v3, 2  ;;  %v6097_v39 = vld [vmem:[#allocation103_spill] sm:$0xff] }
 0x275   : > { %2491 = vst.msk [vmem:[%s5032_s28 + $0x2] ss:$8 sm:$0xf] %vm5005_vm1, %v785_v32  ;;  %v872_v0 = vcombine.low %v857_v27, %v866_v13  ;;  %v1137_v22 = vunpack.c.h.bf16 %v2785_v58  ;;  %v1140_v46 = vunpack.c.l.bf16 %v2526_v36  ;;  %v1141_v17 = vunpack.c.h.bf16 %v2526_v36  ;;  %v6098_v36 = vld [vmem:[#allocation74_spill] sm:$0xff] }
 0x276   : > { %v965_v10 = vrot.slane %v964_v51, 1  ;;  %v1070_v54 = vrot.slane %v1069_v23, 4  ;;  %v1078_v63 = vadd.f32 %v1077_v52, %v1048_v5  ;;  %v973_v8 = vadd.f32 %v972_v20, %v971_v3  ;;  %v2535_v3 = vld [vmem:[%s3462_s25 + $0x1f8] sm:$0xff] }
 0x277   : > { %v886_v43 = vrot.slane %v872_v0, %v5976_v35  ;;  %v1145_v31 = vmul.f32 %v1129_v47, %v6073_v41  ;;  %v1149_v57 = vmul.f32 %v1133_v59, %v6076_v24  ;;  %v1153_v60 = vmul.f32 %v1137_v22, %v6079_v11  ;;  %v2788_v22 = vld [vmem:[%s3462_s25 + $0x1e8] sm:$0xff] }
 0x278   : > { %v966_v30 = vadd.f32 %v965_v10, %v964_v51  ;;  %v1071_v29 = vadd.f32 %v1070_v54, %v1069_v23  ;;  %v1079_v27 = vrot.slane %v1078_v63, 4  ;;  %v974_v21 = vrot.slane %v973_v8, 1  ;;  %v2786_v51 = vld [vmem:[%s3462_s25 + $0x1c8] sm:$0xff] }
 0x279   : > { %v887_v61 = vcombine.low %v4753_v25, %v886_v43  ;;  %v1156_v5 = vmul.f32 %v1140_v46, %v6080_v40  ;;  %v1157_v7 = vmul.f32 %v1141_v17, %v6081_v2  ;;  %v1177_v32 = vadd.f32 %v6098_v36, %v6097_v39  ;;  %v2787_v25 = vld [vmem:[%s3462_s25 + $0x1d8] sm:$0xff]  ;;  %v6100_v39 = vld [vmem:[#allocation75_spill] sm:$0xff] }
 0x27a   : > { %v1072_v62 = vrot.slane %v1071_v29, 2  ;;  %v1080_v28 = vadd.f32 %v1079_v27, %v1078_v63  ;;  %v1185_v13 = vadd.f32 %v1149_v57, %v1145_v31  ;;  %v975_v47 = vadd.f32 %v974_v21, %v973_v8 }
 0x27b   : > { %v894_v14 = vrot.slane %v887_v61, %v5976_v35  ;;  %v1238_v23 = vunpack.c.h.bf16 %v2786_v51  ;;  %v1242_v52 = vunpack.c.h.bf16 %v2787_v25  ;;  %v1178_v0 = vadd.f32 %v1177_v32, %v1156_v5  ;;  %v2789_v25 = vld [vmem:[%s3462_s25 + $0x208] sm:$0xff] }
 0x27c   : > { %v1073_v42 = vadd.f32 %v1072_v62, %v1071_v29  ;;  %v1081_v59 = vrot.slane %v1080_v28, 2  ;;  %v1186_v20 = vadd.f32 %v1185_v13, %v1153_v60  ;;  %v981_v58 = vcombine.low %v966_v30, %v975_v47  ;;  %v2544_v47 = vld [vmem:[%s3462_s25 + $0x238] sm:$0xff] }
 0x27d   : > { %2500 = vst.msk [vmem:[%s5032_s28 + $0x3] ss:$8 sm:$0xf] %vm5005_vm1, %v894_v14  ;;  %v1246_v46 = vunpack.c.h.bf16 %v2788_v22  ;;  %v1249_v10 = vunpack.c.l.bf16 %v2535_v3  ;;  %v1250_v54 = vunpack.c.h.bf16 %v2535_v3  ;;  %v1179_v43 = vrot.slane %v1178_v0, 4 }
 0x27e   : > { %v1074_v63 = vrot.slane %v1073_v42, 1  ;;  %v1082_v17 = vadd.f32 %v1081_v59, %v1080_v28  ;;  %v1187_v8 = vadd.f32 %v1186_v20, %v1157_v7  ;;  %v995_v31 = vrot.slane %v981_v58, %v5976_v35  ;;  %v6099_v28 = vld [vmem:[#allocation104_spill] sm:$0xff] }
 0x27f   : > { %v1254_v57 = vmul.f32 %v1238_v23, %v6073_v41  ;;  %v1258_v29 = vmul.f32 %v1242_v52, %v6076_v24  ;;  %v1262_v27 = vmul.f32 %v1246_v46, %v6079_v11  ;;  %v1180_v61 = vadd.f32 %v1179_v43, %v1178_v0  ;;  %v2791_v46 = vld [vmem:[%s3462_s25 + $0x228] sm:$0xff] }
 0x280   : > { %v1075_v60 = vadd.f32 %v1074_v63, %v1073_v42  ;;  %v1083_v30 = vrot.slane %v1082_v17, 1  ;;  %v1188_v21 = vrot.slane %v1187_v8, 4  ;;  %v996_v5 = vcombine.low %v4759_v53, %v995_v31  ;;  %v2790_v53 = vld [vmem:[%s3462_s25 + $0x218] sm:$0xff] }
 0x281   : > { %v1265_v62 = vmul.f32 %v1249_v10, %v6080_v40  ;;  %v1266_v7 = vmul.f32 %v1250_v54, %v6081_v2  ;;  %v1286_v36 = vadd.f32 %v6100_v39, %v6099_v28  ;;  %v1181_v13 = vrot.slane %v1180_v61, 2  ;;  %v6101_v39 = vld [vmem:[#allocation105_spill] sm:$0xff] }
 0x282   : > { %v1084_v32 = vadd.f32 %v1083_v30, %v1082_v17  ;;  %v1189_v3 = vadd.f32 %v1188_v21, %v1187_v8  ;;  %v1294_v14 = vadd.f32 %v1258_v29, %v1254_v57  ;;  %v1003_v51 = vrot.slane %v996_v5, %v5976_v35 }
 0x283   : > { %v1287_v23 = vadd.f32 %v1286_v36, %v1265_v62  ;;  %v1347_v52 = vunpack.c.h.bf16 %v2789_v25  ;;  %v1351_v42 = vunpack.c.h.bf16 %v2790_v53  ;;  %v1182_v0 = vadd.f32 %v1181_v13, %v1180_v61  ;;  %v6102_v36 = vld [vmem:[#allocation76_spill] sm:$0xff]  ;;  %v2793_v53 = vld [vmem:[%s3462_s25 + $0x258] sm:$0xff] }
 0x284   : > { %v1090_v59 = vcombine.low %v1075_v60, %v1084_v32  ;;  %v1190_v20 = vrot.slane %v1189_v3, 2  ;;  %v1295_v58 = vadd.f32 %v1294_v14, %v1262_v27  ;;  %2509 = vst.msk [vmem:[%s5032_s28 + $0x4] ss:$8 sm:$0xf] %vm5005_vm1, %v1003_v51  ;;  %v1355_v10 = vunpack.c.h.bf16 %v2791_v46  ;;  %v2792_v25 = vld [vmem:[%s3462_s25 + $0x248] sm:$0xff] }
 0x285   : > { %v1288_v22 = vrot.slane %v1287_v23, 4  ;;  %v1358_v54 = vunpack.c.l.bf16 %v2544_v47  ;;  %v1359_v63 = vunpack.c.h.bf16 %v2544_v47  ;;  %v1183_v43 = vrot.slane %v1182_v0, 1 }
 0x286   : > { %v1104_v17 = vrot.slane %v1090_v59, %v5976_v35  ;;  %v1191_v8 = vadd.f32 %v1190_v20, %v1189_v3  ;;  %v1296_v31 = vadd.f32 %v1295_v58, %v1266_v7  ;;  %v1363_v29 = vmul.f32 %v1347_v52, %v6073_v41  ;;  %v2794_v58 = vld [vmem:[%s3462_s25 + $0x268] sm:$0xff] }
 0x287   : > { %v1289_v57 = vadd.f32 %v1288_v22, %v1287_v23  ;;  %v1367_v60 = vmul.f32 %v1351_v42, %v6076_v24  ;;  %v1371_v27 = vmul.f32 %v1355_v10, %v6079_v11  ;;  %v1184_v61 = vadd.f32 %v1183_v43, %v1182_v0 }
 0x288   : > { %v1105_v30 = vcombine.low %v4790_v33, %v1104_v17  ;;  %v1192_v21 = vrot.slane %v1191_v8, 1  ;;  %v1297_v5 = vrot.slane %v1296_v31, 4  ;;  %v1374_v28 = vmul.f32 %v1358_v54, %v6080_v40  ;;  %v2553_v33 = vld [vmem:[%s3462_s25 + $0x278] sm:$0xff] }
 0x289   : > { %v1290_v62 = vrot.slane %v1289_v57, 2  ;;  %v1375_v7 = vmul.f32 %v1359_v63, %v6081_v2  ;;  %v1395_v32 = vadd.f32 %v6102_v36, %v6101_v39  ;;  %v1403_v47 = vadd.f32 %v1367_v60, %v1363_v29  ;;  %v6104_v39 = vld [vmem:[#allocation78_spill] sm:$0xff] }
 0x28a   : > { %v1112_v13 = vrot.slane %v1105_v30, %v5976_v35  ;;  %v1193_v3 = vadd.f32 %v1192_v21, %v1191_v8  ;;  %v1298_v14 = vadd.f32 %v1297_v5, %v1296_v31  ;;  %v1456_v52 = vunpack.c.h.bf16 %v2792_v25 }
 0x28b   : > { %v1291_v51 = vadd.f32 %v1290_v62, %v1289_v57  ;;  %v1396_v23 = vadd.f32 %v1395_v32, %v1374_v28  ;;  %v1460_v42 = vunpack.c.h.bf16 %v2793_v53  ;;  %v1404_v20 = vadd.f32 %v1403_v47, %v1371_v27 }
 0x28c   : > { %2518 = vst.msk [vmem:[%s5032_s28 + $0x5] ss:$8 sm:$0xf] %vm5005_vm1, %v1112_v13  ;;  %v1199_v59 = vcombine.low %v1184_v61, %v1193_v3  ;;  %v1299_v0 = vrot.slane %v1298_v14, 2  ;;  %v1464_v22 = vunpack.c.h.bf16 %v2794_v58  ;;  %v1467_v54 = vunpack.c.l.bf16 %v2553_v33  ;;  %v2562_v13 = vld [vmem:[%s3462_s25 + $0x2b8] sm:$0xff] }
 0x28d   : > { %v1292_v46 = vrot.slane %v1291_v51, 1  ;;  %v1397_v10 = vrot.slane %v1396_v23, 4  ;;  %v1468_v63 = vunpack.c.h.bf16 %v2553_v33  ;;  %v1405_v8 = vadd.f32 %v1404_v20, %v1375_v7  ;;  %v6103_v7 = vld [vmem:[#allocation106_spill] sm:$0xff] }
 0x28e   : > { %v1213_v17 = vrot.slane %v1199_v59, %v5976_v35  ;;  %v1300_v43 = vadd.f32 %v1299_v0, %v1298_v14  ;;  %v1472_v31 = vmul.f32 %v1456_v52, %v6073_v41  ;;  %v1476_v60 = vmul.f32 %v1460_v42, %v6076_v24  ;;  %v2796_v52 = vld [vmem:[%s3462_s25 + $0x298] sm:$0xff]  ;;  %v2797_v0 = vld [vmem:[%s3462_s25 + $0x2a8] sm:$0xff] }
 0x28f   : > { %v1293_v57 = vadd.f32 %v1292_v46, %v1291_v51  ;;  %v1398_v29 = vadd.f32 %v1397_v10, %v1396_v23  ;;  %v1480_v27 = vmul.f32 %v1464_v22, %v6079_v11  ;;  %v1406_v21 = vrot.slane %v1405_v8, 4 }
 0x290   : > { %v1214_v30 = vcombine.low %v4840_v48, %v1213_v17  ;;  %v1301_v61 = vrot.slane %v1300_v43, 1  ;;  %v1483_v5 = vmul.f32 %v1467_v54, %v6080_v40  ;;  %v1484_v28 = vmul.f32 %v1468_v63, %v6081_v2  ;;  %v2795_v48 = vld [vmem:[%s3462_s25 + $0x288] sm:$0xff] }
 0x291   : > { %v1399_v62 = vrot.slane %v1398_v29, 2  ;;  %v1504_v36 = vadd.f32 %v6104_v39, %v6103_v7  ;;  %v1512_v32 = vadd.f32 %v1476_v60, %v1472_v31  ;;  %v1407_v47 = vadd.f32 %v1406_v21, %v1405_v8  ;;  %v6106_v7 = vld [vmem:[#allocation79_spill] sm:$0xff] }
 0x292   : > { %v1221_v3 = vrot.slane %v1214_v30, %v5976_v35  ;;  %v1302_v14 = vadd.f32 %v1301_v61, %v1300_v43  ;;  %v1565_v33 = vunpack.c.h.bf16 %v2795_v48  ;;  %v1569_v53 = vunpack.c.h.bf16 %v2796_v52 }
 0x293   : > { %v1400_v51 = vadd.f32 %v1399_v62, %v1398_v29  ;;  %v1505_v23 = vadd.f32 %v1504_v36, %v1483_v5  ;;  %v1513_v25 = vadd.f32 %v1512_v32, %v1480_v27  ;;  %v1408_v59 = vrot.slane %v1407_v47, 2  ;;  %v2571_v32 = vld [vmem:[%s3462_s25 + $0x2f8] sm:$0xff] }
 0x294   : > { %2527 = vst.msk [vmem:[%s5032_s28 + $0x6] ss:$8 sm:$0xf] %vm5005_vm1, %v1221_v3  ;;  %v1308_v42 = vcombine.low %v1293_v57, %v1302_v14  ;;  %v1573_v20 = vunpack.c.h.bf16 %v2797_v0  ;;  %v1576_v58 = vunpack.c.l.bf16 %v2562_v13  ;;  %v1577_v54 = vunpack.c.h.bf16 %v2562_v13  ;;  %v2798_v14 = vld [vmem:[%s3462_s25 + $0x2c8] sm:$0xff] }
 0x295   : > { %v1401_v22 = vrot.slane %v1400_v51, 1  ;;  %v1506_v46 = vrot.slane %v1505_v23, 4  ;;  %v1514_v10 = vadd.f32 %v1513_v25, %v1484_v28  ;;  %v1409_v17 = vadd.f32 %v1408_v59, %v1407_v47  ;;  %v6105_v28 = vld [vmem:[#allocation107_spill] sm:$0xff] }
 0x296   : > { %v1322_v63 = vrot.slane %v1308_v42, %v5976_v35  ;;  %v1581_v43 = vmul.f32 %v1565_v33, %v6073_v41  ;;  %v1585_v8 = vmul.f32 %v1569_v53, %v6076_v24  ;;  %v1589_v60 = vmul.f32 %v1573_v20, %v6079_v11  ;;  %v2800_v53 = vld [vmem:[%s3462_s25 + $0x2e8] sm:$0xff] }
 0x297   : > { %v1402_v31 = vadd.f32 %v1401_v22, %v1400_v51  ;;  %v1507_v29 = vadd.f32 %v1506_v46, %v1505_v23  ;;  %v1515_v57 = vrot.slane %v1514_v10, 4  ;;  %v1410_v30 = vrot.slane %v1409_v17, 1 }
 0x298   : > { %v1323_v27 = vcombine.low %v4867_v19, %v1322_v63  ;;  %v1592_v61 = vmul.f32 %v1576_v58, %v6080_v40  ;;  %v1593_v21 = vmul.f32 %v1577_v54, %v6081_v2  ;;  %v1613_v39 = vadd.f32 %v6106_v7, %v6105_v28  ;;  %v2799_v19 = vld [vmem:[%s3462_s25 + $0x2d8] sm:$0xff] }
 0x299   : > { %v1508_v5 = vrot.slane %v1507_v29, 2  ;;  %v1516_v62 = vadd.f32 %v1515_v57, %v1514_v10  ;;  %v1621_v36 = vadd.f32 %v1585_v8, %v1581_v43  ;;  %v1411_v3 = vadd.f32 %v1410_v30, %v1409_v17  ;;  %v6107_v30 = vld [vmem:[#allocation108_spill] sm:$0xff] }
 0x29a   : > { %v1330_v13 = vrot.slane %v1323_v27, %v5976_v35  ;;  %v1674_v47 = vunpack.c.h.bf16 %v2798_v14  ;;  %v1678_v48 = vunpack.c.h.bf16 %v2799_v19  ;;  %v1614_v23 = vadd.f32 %v1613_v39, %v1592_v61  ;;  %v6108_v61 = vld [vmem:[#allocation80_spill] sm:$0xff]  ;;  %v2580_v39 = vld [vmem:[%s3462_s25 + $0x338] sm:$0xff] }
 0x29b   : > { %v1509_v33 = vadd.f32 %v1508_v5, %v1507_v29  ;;  %v1517_v51 = vrot.slane %v1516_v62, 2  ;;  %v1622_v25 = vadd.f32 %v1621_v36, %v1589_v60  ;;  %v1417_v52 = vcombine.low %v1402_v31, %v1411_v3 }
 0x29c   : > { %2536 = vst.msk [vmem:[%s5032_s28 + $0x7] ss:$8 sm:$0xf] %vm5005_vm1, %v1330_v13  ;;  %v1682_v42 = vunpack.c.h.bf16 %v2800_v53  ;;  %v1685_v59 = vunpack.c.l.bf16 %v2571_v32  ;;  %v1686_v0 = vunpack.c.h.bf16 %v2571_v32  ;;  %v1615_v22 = vrot.slane %v1614_v23, 4  ;;  %v2801_v13 = vld [vmem:[%s3462_s25 + $0x308] sm:$0xff] }
 0x29d   : > { %v1510_v20 = vrot.slane %v1509_v33, 1  ;;  %v1518_v58 = vadd.f32 %v1517_v51, %v1516_v62  ;;  %v1623_v46 = vadd.f32 %v1622_v25, %v1593_v21  ;;  %v1431_v10 = vrot.slane %v1417_v52, %v5976_v35 }
 0x29e   : > { %v1690_v54 = vmul.f32 %v1674_v47, %v6073_v41  ;;  %v1694_v63 = vmul.f32 %v1678_v48, %v6076_v24  ;;  %v1698_v17 = vmul.f32 %v1682_v42, %v6079_v11  ;;  %v1616_v31 = vadd.f32 %v1615_v22, %v1614_v23  ;;  %v2803_v23 = vld [vmem:[%s3462_s25 + $0x328] sm:$0xff] }
 0x29f   : > { %v1511_v43 = vadd.f32 %v1510_v20, %v1509_v33  ;;  %v1519_v8 = vrot.slane %v1518_v58, 1  ;;  %v1624_v29 = vrot.slane %v1623_v46, 4  ;;  %v1432_v57 = vcombine.low %v4875_v4, %v1431_v10  ;;  %v2802_v4 = vld [vmem:[%s3462_s25 + $0x318] sm:$0xff] }
 0x2a0   : > { %v1701_v60 = vmul.f32 %v1685_v59, %v6080_v40  ;;  %v1702_v27 = vmul.f32 %v1686_v0, %v6081_v2  ;;  %v1722_v21 = vadd.f32 %v6108_v61, %v6107_v30  ;;  %v1617_v62 = vrot.slane %v1616_v31, 2 }
 0x2a1   : > { %v1520_v5 = vadd.f32 %v1519_v8, %v1518_v58  ;;  %v1625_v28 = vadd.f32 %v1624_v29, %v1623_v46  ;;  %v1730_v7 = vadd.f32 %v1694_v63, %v1690_v54  ;;  %v1439_v36 = vrot.slane %v1432_v57, %v5976_v35  ;;  %v6109_v57 = vld [vmem:[#allocation109_spill] sm:$0xff] }
 0x2a2   : > { %v1723_v32 = vadd.f32 %v1722_v21, %v1701_v60  ;;  %v1783_v3 = vunpack.c.h.bf16 %v2801_v13  ;;  %v1787_v14 = vunpack.c.h.bf16 %v2802_v4  ;;  %v1618_v19 = vadd.f32 %v1617_v62, %v1616_v31  ;;  %v6110_v60 = vld [vmem:[#allocation81_spill] sm:$0xff] }
 0x2a3   : > { %v1526_v47 = vcombine.low %v1511_v43, %v1520_v5  ;;  %v1626_v48 = vrot.slane %v1625_v28, 2  ;;  %v1731_v33 = vadd.f32 %v1730_v7, %v1698_v17  ;;  %2545 = vst.msk [vmem:[%s5032_s28 + $0x20] ss:$8 sm:$0xf] %vm5005_vm1, %v1439_v36  ;;  %v1791_v25 = vunpack.c.h.bf16 %v2803_v23  ;;  %v2804_v7 = vld [vmem:[%s3462_s25 + $0x348] sm:$0xff]  ;;  %v2805_v36 = vld [vmem:[%s3462_s25 + $0x358] sm:$0xff] }
 0x2a4   : > { %v1724_v51 = vrot.slane %v1723_v32, 4  ;;  %v1794_v52 = vunpack.c.l.bf16 %v2580_v39  ;;  %v1795_v53 = vunpack.c.h.bf16 %v2580_v39  ;;  %v1619_v59 = vrot.slane %v1618_v19, 1 }
 0x2a5   : > { %v1540_v42 = vrot.slane %v1526_v47, %v5976_v35  ;;  %v1627_v0 = vadd.f32 %v1626_v48, %v1625_v28  ;;  %v1732_v20 = vadd.f32 %v1731_v33, %v1702_v27  ;;  %v1799_v22 = vmul.f32 %v1783_v3, %v6073_v41 }
 0x2a6   : > { %v1725_v58 = vadd.f32 %v1724_v51, %v1723_v32  ;;  %v1803_v46 = vmul.f32 %v1787_v14, %v6076_v24  ;;  %v1807_v10 = vmul.f32 %v1791_v25, %v6079_v11  ;;  %v1620_v63 = vadd.f32 %v1619_v59, %v1618_v19  ;;  %v2806_v14 = vld [vmem:[%s3462_s25 + $0x368] sm:$0xff] }
 0x2a7   : > { %v1541_v54 = vcombine.low %v4906_v56, %v1540_v42  ;;  %v1628_v17 = vrot.slane %v1627_v0, 1  ;;  %v1733_v43 = vrot.slane %v1732_v20, 4  ;;  %v1810_v31 = vmul.f32 %v1794_v52, %v6080_v40  ;;  %v2589_v56 = vld [vmem:[%s3462_s25 + $0x378] sm:$0xff] }
 0x2a8   : > { %v1726_v8 = vrot.slane %v1725_v58, 2  ;;  %v1811_v29 = vmul.f32 %v1795_v53, %v6081_v2  ;;  %v1831_v27 = vadd.f32 %v6110_v60, %v6109_v57  ;;  %v1839_v5 = vadd.f32 %v1803_v46, %v1799_v22 }
 0x2a9   : > { %v1548_v30 = vrot.slane %v1541_v54, %v5976_v35  ;;  %v1629_v61 = vadd.f32 %v1628_v17, %v1627_v0  ;;  %v1734_v21 = vadd.f32 %v1733_v43, %v1732_v20  ;;  %v1892_v39 = vunpack.c.h.bf16 %v2804_v7  ;;  %v6111_v17 = vld [vmem:[#allocation82_spill] sm:$0xff] }
 0x2aa   : > { %v1727_v62 = vadd.f32 %v1726_v8, %v1725_v58  ;;  %v1832_v28 = vadd.f32 %v1831_v27, %v1810_v31  ;;  %v1896_v32 = vunpack.c.h.bf16 %v2805_v36  ;;  %v1840_v4 = vadd.f32 %v1839_v5, %v1807_v10  ;;  %v2598_v31 = vld [vmem:[%s3462_s25 + $0x3b8] sm:$0xff] }
 0x2ab   : > { %2554 = vst.msk [vmem:[%s5032_s28 + $0x21] ss:$8 sm:$0xf] %vm5005_vm1, %v1548_v30  ;;  %v1635_v13 = vcombine.low %v1620_v63, %v1629_v61  ;;  %v1735_v3 = vrot.slane %v1734_v21, 2  ;;  %v1900_v47 = vunpack.c.h.bf16 %v2806_v14  ;;  %v1903_v33 = vunpack.c.l.bf16 %v2589_v56  ;;  %v2808_v5 = vld [vmem:[%s3462_s25 + $0x398] sm:$0xff] }
 0x2ac   : > { %v1728_v19 = vrot.slane %v1727_v62, 1  ;;  %v1833_v48 = vrot.slane %v1832_v28, 4  ;;  %v1904_v51 = vunpack.c.h.bf16 %v2589_v56  ;;  %v1841_v52 = vadd.f32 %v1840_v4, %v1811_v29 }
 0x2ad   : > { %v1649_v23 = vrot.slane %v1635_v13, %v5976_v35  ;;  %v1736_v25 = vadd.f32 %v1735_v3, %v1734_v21  ;;  %v1908_v53 = vmul.f32 %v1892_v39, %v6073_v41  ;;  %v1912_v0 = vmul.f32 %v1896_v32, %v6076_v24 }
 0x2ae   : > { %v1729_v42 = vadd.f32 %v1728_v19, %v1727_v62  ;;  %v1834_v59 = vadd.f32 %v1833_v48, %v1832_v28  ;;  %v1916_v20 = vmul.f32 %v1900_v47, %v6079_v11  ;;  %v1842_v46 = vrot.slane %v1841_v52, 4 }
 0x2af   : > { %v1650_v58 = vcombine.low %v4949_v50, %v1649_v23  ;;  %v1737_v22 = vrot.slane %v1736_v25, 1  ;;  %v1919_v10 = vmul.f32 %v1903_v33, %v6080_v40  ;;  %v1920_v63 = vmul.f32 %v1904_v51, %v6081_v2  ;;  %v2807_v50 = vld [vmem:[%s3462_s25 + $0x388] sm:$0xff] }
 0x2b0   : > { %v1835_v54 = vrot.slane %v1834_v59, 2  ;;  %v1940_v43 = vadd.f32 %v6111_v17, %v4555_v15  ;;  %v1948_v8 = vadd.f32 %v1912_v0, %v1908_v53  ;;  %v1843_v60 = vadd.f32 %v1842_v46, %v1841_v52  ;;  %v2809_v15 = vld [vmem:[%s3462_s25 + $0x3a8] sm:$0xff]  ;;  %v2607_v46 = vld [vmem:[%s3462_s25 + $0x3f8] sm:$0xff] }
 0x2b1   : > { %v1657_v29 = vrot.slane %v1650_v58, %v5976_v35  ;;  %v1738_v57 = vadd.f32 %v1737_v22, %v1736_v25  ;;  %v2001_v27 = vunpack.c.h.bf16 %v2807_v50  ;;  %v2005_v56 = vunpack.c.h.bf16 %v2808_v5  ;;  %v2812_v50 = vld [vmem:[%s3462_s25 + $0x3e8] sm:$0xff] }
 0x2b2   : > { %v1836_v30 = vadd.f32 %v1835_v54, %v1834_v59  ;;  %v1941_v61 = vadd.f32 %v1940_v43, %v1919_v10  ;;  %v1949_v21 = vadd.f32 %v1948_v8, %v1916_v20  ;;  %v1844_v28 = vrot.slane %v1843_v60, 2  ;;  %v6112_v20 = vld [vmem:[#allocation83_spill] sm:$0xff] }
 0x2b3   : > { %2563 = vst.msk [vmem:[%s5032_s28 + $0x22] ss:$8 sm:$0xf] %vm5005_vm1, %v1657_v29  ;;  %v1744_v62 = vcombine.low %v1729_v42, %v1738_v57  ;;  %v2009_v7 = vunpack.c.h.bf16 %v2809_v15  ;;  %v2012_v39 = vunpack.c.l.bf16 %v2598_v31  ;;  %v2013_v3 = vunpack.c.h.bf16 %v2598_v31 }
 0x2b4   : > { %v1837_v36 = vrot.slane %v1836_v30, 1  ;;  %v1942_v32 = vrot.slane %v1941_v61, 4  ;;  %v1950_v13 = vadd.f32 %v1949_v21, %v1920_v63  ;;  %v1845_v14 = vadd.f32 %v1844_v28, %v1843_v60  ;;  %v2810_v63 = vld [vmem:[%s3462_s25 + $0x3c8] sm:$0xff] }
 0x2b5   : > { %v1758_v4 = vrot.slane %v1744_v62, %v5976_v35  ;;  %v2017_v47 = vmul.f32 %v2001_v27, %v6073_v41  ;;  %v2021_v19 = vmul.f32 %v2005_v56, %v6076_v24  ;;  %v2025_v23 = vmul.f32 %v2009_v7, %v6079_v11 }
 0x2b6   : > { %v1838_v48 = vadd.f32 %v1837_v36, %v1836_v30  ;;  %v1943_v33 = vadd.f32 %v1942_v32, %v1941_v61  ;;  %v1951_v51 = vrot.slane %v1950_v13, 4  ;;  %v1846_v52 = vrot.slane %v1845_v14, 1 }
 0x2b7   : > { %v1759_v25 = vcombine.low %v4955_v45, %v1758_v4  ;;  %v2028_v53 = vmul.f32 %v2012_v39, %v6080_v40  ;;  %v2029_v42 = vmul.f32 %v2013_v3, %v6081_v2  ;;  %v2049_v58 = vadd.f32 %v6112_v20, %v4581_v9  ;;  %v2811_v45 = vld [vmem:[%s3462_s25 + $0x3d8] sm:$0xff] }
 0x2b8   : > { %v1944_v59 = vrot.slane %v1943_v33, 2  ;;  %v1952_v0 = vadd.f32 %v1951_v51, %v1950_v13  ;;  %v2057_v22 = vadd.f32 %v2021_v19, %v2017_v47  ;;  %v1847_v54 = vadd.f32 %v1846_v52, %v1845_v14  ;;  %v6113_v47 = vld [vmem:[#allocation41_spill] sm:$0xff] }
 0x2b9   : > { %v1766_v10 = vrot.slane %v1759_v25, %v5976_v35  ;;  %v2110_v17 = vunpack.c.h.bf16 %v2810_v63  ;;  %v2114_v43 = vunpack.c.h.bf16 %v2811_v45  ;;  %v2050_v29 = vadd.f32 %v2049_v58, %v2028_v53  ;;  %v2616_v25 = vld [vmem:[%s3462_s25 + $0x438] sm:$0xff] }
 0x2ba   : > { %v1945_v8 = vadd.f32 %v1944_v59, %v1943_v33  ;;  %v1953_v31 = vrot.slane %v1952_v0, 2  ;;  %v2058_v57 = vadd.f32 %v2057_v22, %v2025_v23  ;;  %v1853_v60 = vcombine.low %v1838_v48, %v1847_v54 }
 0x2bb   : > { %2572 = vst.msk [vmem:[%s5032_s28 + $0x23] ss:$8 sm:$0xf] %vm5005_vm1, %v1766_v10  ;;  %v2118_v27 = vunpack.c.h.bf16 %v2812_v50  ;;  %v2121_v9 = vunpack.c.l.bf16 %v2607_v46  ;;  %v2122_v30 = vunpack.c.h.bf16 %v2607_v46  ;;  %v2051_v5 = vrot.slane %v2050_v29, 4  ;;  %v2815_v10 = vld [vmem:[%s3462_s25 + $0x428] sm:$0xff] }
 0x2bc   : > { %v1946_v61 = vrot.slane %v1945_v8, 1  ;;  %v1954_v21 = vadd.f32 %v1953_v31, %v1952_v0  ;;  %v2059_v56 = vadd.f32 %v2058_v57, %v2029_v42  ;;  %v1867_v62 = vrot.slane %v1853_v60, %v5976_v35  ;;  %v2813_v42 = vld [vmem:[%s3462_s25 + $0x408] sm:$0xff] }
 0x2bd   : > { %v2126_v28 = vmul.f32 %v2110_v17, %v6073_v41  ;;  %v2130_v15 = vmul.f32 %v2114_v43, %v6076_v24  ;;  %v2134_v7 = vmul.f32 %v2118_v27, %v6079_v11  ;;  %v2052_v32 = vadd.f32 %v2051_v5, %v2050_v29 }
 0x2be   : > { %v1947_v39 = vadd.f32 %v1946_v61, %v1945_v8  ;;  %v1955_v36 = vrot.slane %v1954_v21, 1  ;;  %v2060_v13 = vrot.slane %v2059_v56, 4  ;;  %v1868_v3 = vcombine.low %v4972_v49, %v1867_v62  ;;  %v2814_v49 = vld [vmem:[%s3462_s25 + $0x418] sm:$0xff]  ;;  %v6114_v62 = vld [vmem:[#allocation84_spill] sm:$0xff] }
 0x2bf   : > { %v2137_v4 = vmul.f32 %v2121_v9, %v6080_v40  ;;  %v2138_v14 = vmul.f32 %v2122_v30, %v6081_v2  ;;  %v2158_v19 = vadd.f32 %v6113_v47, %v4590_v37  ;;  %v2053_v33 = vrot.slane %v2052_v32, 2 }
 0x2c0   : > { %v1956_v48 = vadd.f32 %v1955_v36, %v1954_v21  ;;  %v2061_v51 = vadd.f32 %v2060_v13, %v2059_v56  ;;  %v2166_v23 = vadd.f32 %v2130_v15, %v2126_v28  ;;  %v1875_v52 = vrot.slane %v1868_v3, %v5976_v35 }
 0x2c1   : > { %v2159_v53 = vadd.f32 %v2158_v19, %v2137_v4  ;;  %v2219_v59 = vunpack.c.h.bf16 %v2813_v42  ;;  %v2223_v0 = vunpack.c.h.bf16 %v2814_v49  ;;  %v2054_v58 = vadd.f32 %v2053_v33, %v2052_v32 }
 0x2c2   : > { %v1962_v20 = vcombine.low %v1947_v39, %v1956_v48  ;;  %v2062_v22 = vrot.slane %v2061_v51, 2  ;;  %v2167_v46 = vadd.f32 %v2166_v23, %v2134_v7  ;;  %2581 = vst.msk [vmem:[%s5032_s28 + $0x24] ss:$8 sm:$0xf] %vm5005_vm1, %v1875_v52  ;;  %v2227_v54 = vunpack.c.h.bf16 %v2815_v10 }
 0x2c3   : > { %v2160_v37 = vrot.slane %v2159_v53, 4  ;;  %v2230_v63 = vunpack.c.l.bf16 %v2616_v25  ;;  %v2231_v17 = vunpack.c.h.bf16 %v2616_v25  ;;  %v2055_v43 = vrot.slane %v2054_v58, 1 }
 0x2c4   : > { %v1976_v45 = vrot.slane %v1962_v20, %v5976_v35  ;;  %v2063_v8 = vadd.f32 %v2062_v22, %v2061_v51  ;;  %v2168_v31 = vadd.f32 %v2167_v46, %v2138_v14  ;;  %v2235_v57 = vmul.f32 %v2219_v59, %v6073_v41 }
 0x2c5   : > { %v2161_v29 = vadd.f32 %v2160_v37, %v2159_v53  ;;  %v2239_v60 = vmul.f32 %v2223_v0, %v6076_v24  ;;  %v2243_v50 = vmul.f32 %v2227_v54, %v6079_v11  ;;  %v2056_v9 = vadd.f32 %v2055_v43, %v2054_v58 }
 0x2c6   : > { %v1977_v27 = vcombine.low %v4995_v38, %v1976_v45  ;;  %v2064_v30 = vrot.slane %v2063_v8, 1  ;;  %v2169_v61 = vrot.slane %v2168_v31, 4  ;;  %v2246_v5 = vmul.f32 %v2230_v63, %v6080_v40 }
 0x2c7   : > { %v2162_v21 = vrot.slane %v2161_v29, 2  ;;  %v2247_v56 = vmul.f32 %v2231_v17, %v6081_v2  ;;  %v2267_v28 = vadd.f32 %v6114_v62, %v4640_v6  ;;  %v2275_v7 = vadd.f32 %v2239_v60, %v2235_v57 }
 0x2c8   : > { %v1984_v41 = vrot.slane %v1977_v27, %v5976_v35  ;;  %v2065_v15 = vadd.f32 %v2064_v30, %v2063_v8  ;;  %v2170_v24 = vadd.f32 %v2169_v61, %v2168_v31  ;;  %v2078_v38 = vrot.slane %v2070_v18, %v5976_v35 }
 0x2c9   : > { %v2163_v11 = vadd.f32 %v2162_v21, %v2161_v29  ;;  %v2268_v39 = vadd.f32 %v2267_v28, %v2246_v5  ;;  %v2276_v36 = vadd.f32 %v2275_v7, %v2243_v50  ;;  %v6115_v25 = vcombine.low %v4960_v55, %v4965_v44 }
 0x2ca   : > { %2590 = vst.msk [vmem:[%s5032_s28 + $0x25] ss:$8 sm:$0xf] %vm5005_vm1, %v1984_v41  ;;  %v2071_v40 = vcombine.low %v2056_v9, %v2065_v15  ;;  %v2171_v2 = vrot.slane %v2170_v24, 2  ;;  %v6116_v44 = vcombine.low %v4979_v34, %v4986_v12 }
 0x2cb   : > { %v2164_v32 = vrot.slane %v2163_v11, 1  ;;  %v2269_v6 = vrot.slane %v2268_v39, 4  ;;  %v2277_v4 = vadd.f32 %v2276_v36, %v2247_v56  ;;  %v2187_v52 = vrot.slane %v6115_v25, %v5976_v35 }
 0x2cc   : > { %v2085_v13 = vrot.slane %v2071_v40, %v5976_v35  ;;  %v2172_v3 = vadd.f32 %v2171_v2, %v2170_v24  ;;  %v2296_v37 = vrot.slane %v6116_v44, %v5976_v35 }
 0x2cd   : > { %v2270_v14 = vadd.f32 %v2269_v6, %v2268_v39  ;;  %v2165_v19 = vadd.f32 %v2164_v32, %v2163_v11  ;;  %v2278_v33 = vrot.slane %v2277_v4, 4 }
 0x2ce   : > { %v2086_v47 = vcombine.low %v2078_v38, %v2085_v13  ;;  %v2173_v48 = vrot.slane %v2172_v3, 1 }
 0x2cf   : > { %v2271_v26 = vrot.slane %v2270_v14, 2  ;;  %v2279_v51 = vadd.f32 %v2278_v33, %v2277_v4 }
 0x2d0   : > { %v2093_v1 = vrot.slane %v2086_v47, %v5976_v35  ;;  %v2174_v18 = vadd.f32 %v2173_v48, %v2172_v3 }
 0x2d1   : > { %v2272_v23 = vadd.f32 %v2271_v26, %v2270_v14  ;;  %v2280_v42 = vrot.slane %v2279_v51, 2 }
 0x2d2   : > { %2599 = vst.msk [vmem:[%s5032_s28 + $0x26] ss:$8 sm:$0xf] %vm5005_vm1, %v2093_v1  ;;  %v2180_v53 = vcombine.low %v2165_v19, %v2174_v18 }
 0x2d3   : > { %v2273_v59 = vrot.slane %v2272_v23, 1  ;;  %v2281_v0 = vadd.f32 %v2280_v42, %v2279_v51 }
 0x2d4   : > { %v2194_v49 = vrot.slane %v2180_v53, %v5976_v35 }
 0x2d5   : > { %v2274_v58 = vadd.f32 %v2273_v59, %v2272_v23  ;;  %v2282_v22 = vrot.slane %v2281_v0, 1 }
 0x2d6   : > { %v2195_v20 = vcombine.low %v2187_v52, %v2194_v49 }
 0x2d7   : > { %v2283_v55 = vadd.f32 %v2282_v22, %v2281_v0 }
 0x2d8   : > { %v2202_v46 = vrot.slane %v2195_v20, %v5976_v35 }
 0x2d9   : > { %v2289_v10 = vcombine.low %v2274_v58, %v2283_v55 }
 0x2da   : > { %2608 = vst.msk [vmem:[%s5032_s28 + $0x27] ss:$8 sm:$0xf] %vm5005_vm1, %v2202_v46 }
 0x2db   : > { %v2303_v54 = vrot.slane %v2289_v10, %v5976_v35 }
 0x2dd   : > { %v2304_v63 = vcombine.low %v2296_v37, %v2303_v54 }
 0x2df   : > { %v2311_v34 = vrot.slane %v2304_v63, %v5976_v35 }
 0x2e1   : > { %2617 = vst.msk [vmem:[%s5032_s28 + $0x40] ss:$8 sm:$0xf] %vm5005_vm1, %v2311_v34 }
 0x2e2   : > { %2939 = shalt.err (!%p2936_p4)
}
 0x2e3   : > { %s2940_s23 = scalar_lea.hbm %s5282_s11, 1536  ;;  %s2944_s25 = scalar_lea.hbm %s5353_s5, 7680 }
 0x2e4   : > { %p2941_p12 = scmp.ne.s32.totalorder %s5282_s11, %s2940_s23  ;;  %p2945_p10 = scmp.lt.u32.totalorder %s5282_s11, %s5353_s5 }
 0x2e5   : > { %p2946_p5 = scmp.lt.u32.totalorder %s2944_s25, %s2940_s23  ;;  %p2948_p6 = scmp.lt.u32.totalorder %s2940_s23, %s5282_s11 }
 0x2e6   : > { %p2942_p8 = pnand %p2941_p12, %p6117_p9 }
 0x2e7   : > { %p2947_p2 = por %p2946_p5, %p2945_p10 }
 0x2e8   : > { %p2943_p7 = pneg %p2942_p8 }
 0x2e9   : > { %p2949_p1 = por %p2948_p6, %p2947_p2 }
 0x2eb   : > { %p2950_p3 = pnand %p2949_p1, %p2943_p7 }
 0x2ed   : > { %2953 = shalt.err (!%p2950_p3)
}
 0x2ee   : > { %s3065_s15 = smov 512   ;;  %s3066_s9 = smov 2560  }
 0x2ef   : > { %s3067_s30 = smov 32  }
 0x2f0   : > { %2639 = dma.vmem_to_hbm [thread:$0]  (%p6117_p9), %s5284_s10, 1536, %s5282_s11, %s2317_s21, %s3065_s15, %s3066_s9, %s3067_s30  }
 0x2f1 PF: > { %p2660_p13 = scmp.ge.s32.totalorder %s3050_s20, 2  ;;  %s2345_s3 = sand.u32 1, %s3014_s0  }
 0x2f2   : > { %p6118_p11 = scmp.ne.s32.totalorder %s5562_s29, 0  ;;  %s2346_s17 = scalar_lea.sflag [#allocation7], %s2345_s3 }
 0x2f4   : > { %p2656_p0 = pnand %p2660_p13, %p6118_p11 }
 0x2f6   : > { %3009 = dma.done.wait (!%p2656_p0), %s2346_s17, 1536  }
 0x2f7   : > { %3011 = vsyncadd (!%p2656_p0), %s2346_s17, 4294965760  ;;  %s6119_s8 = sld [smem:[#allocation21_spill]]  ;;  %s6120_s24 = sld [smem:[#allocation22_spill]] }
 0x2f8   : > { %p27_p9 = scmp.ge.s32.totalorder %s3174_s22, 7   ;;  %s6121_s0 = smov %s3018_s13 }
 0x2f9   : > { %s6122_s13 = smov %s3022_s14  ;;  %s6123_s14 = smov %s3368_s26 }
 0x2fa   : > { %s6124_s15 = smov %s3030_s16  ;;  %s6125_s16 = smov %s3034_s1 }
 0x2fb   : > { %s6127_s17 = smov %s3042_s18  ;;  %s6128_s18 = smov %s3046_s19 }
 0x2fc   : > { %s6130_s20 = smov %s3174_s22  ;;  %29 = sbr.rel (!%p27_p9) target bundleno = 30 (0x1e), region = 133 }
 0x2fd   : > { %s6126_s1 = smov %s6119_s8  ;;  %s6129_s19 = smov %s6120_s24 }
 0x303   :  { %2351 = vsyncpa [#allocation6], 1 }
 0x304   :  { %2353 = vsyncpa [#allocation6 + $0x1], 1 }
 0x305   :  { %2354 = vsyncpa [#allocation9], 1 }
 0x306   :  { %2356 = vsyncpa [#allocation9 + $0x1], 1 }
 0x307   :  { %2357 = vsyncpa [#allocation7], 1 }
 0x308   :  { %2359 = vsyncpa [#allocation7 + $0x1], 1 }

</bundles_post_ra>
